<compile_context>
chip_gen: v7x
topology: tpu7x:2x2x1
jax: 0.10.0
libtpu: 0.0.40
codegen_flags: <defaults>
</compile_context>

<pallas_src>
import jax
import jax.numpy as jnp
from jax.experimental import pallas as pl
from jax.experimental.pallas import tpu as pltpu


def _resnet_block_kernel(H, W, C, res_scale):
    """Kernel body for static H, W, C, res_scale (one batch element per step)."""
    HW = H * W

    def conv3x3(pad_ref, patch_ref, w_ref, b_ref):
        # Build one lane-dense (H*W, 9*C) im2col patch in VMEM, then a single
        # MXU matmul against the (9*C, C) weight.  Every column block starts
        # at a multiple of C (=128) -> lane-aligned stores; K = 9*C.
        for dy in range(3):
            for dx in range(3):
                col = (dy * 3 + dx) * C
                patch_ref[:, col:col + C] = (
                    pad_ref[dy:dy + H, dx:dx + W, :].reshape(HW, C))
        out = jnp.dot(patch_ref[...], w_ref[...],
                      preferred_element_type=jnp.float32)
        return out + b_ref[...]          # (H*W, C) f32, bias broadcast on lanes

    def kernel(x_ref, w0_ref, b0_ref, w1_ref, b1_ref, out_ref,
               pad_ref, patch_ref):
        # x_ref    : (1, H, W, C)    input tile (NHWC)
        # w*_ref   : (9*C, C)        conv weights (HWIO flattened to (kh*kw*Cin, Cout))
        # b*_ref   : (1, C)          biases
        # out_ref  : (1, H, W, C)    x + res_scale * conv1(relu(conv0(x)))
        # pad_ref  : (H+2, W+2, C)   VMEM scratch: zero-padded activations
        # patch_ref: (H*W, 9*C)      VMEM scratch: im2col patch

        # ---- conv0 + ReLU --------------------------------------------------
        # Zero-pad inside the kernel; border stays zero for the whole step.
        pad_ref[...] = jnp.zeros_like(pad_ref)
        pad_ref[1:H + 1, 1:W + 1, :] = x_ref[0]
        h = conv3x3(pad_ref, patch_ref, w0_ref, b0_ref)
        h = jnp.maximum(h, 0.0)                                # ReLU (f32 VPU)

        # ---- conv1 (CNA mode: no activation on the second conv) -------------
        # Reuse pad_ref: only the interior is rewritten, border is still zero.
        pad_ref[1:H + 1, 1:W + 1, :] = h.reshape(H, W, C)
        y = conv3x3(pad_ref, patch_ref, w1_ref, b1_ref)

        # ---- residual: out = x + res_scale * y  (single lane-dense store) ---
        out_ref[0] = (x_ref[0]
                      + res_scale * y.reshape(H, W, C)).astype(out_ref.dtype)

    return kernel


def resnet_block_forward(x_nhwc, w0_hwio, b0, w1_hwio, b1, *, res_scale=1.0):
    """ResNetBlock forward (NHWC).  x: (N, H, W, C) f32 -> (N, H, W, C) f32."""
    N, H, W, C = x_nhwc.shape
    assert w0_hwio.shape == (3, 3, C, C) and w1_hwio.shape == (3, 3, C, C)
    assert b0.shape == (C,) and b1.shape == (C,)

    # Tiny one-time parameter reshapes (negligible traffic).
    w0 = w0_hwio.reshape(9 * C, C)
    w1 = w1_hwio.reshape(9 * C, C)
    b0_2d = b0.reshape(1, C)
    b1_2d = b1.reshape(1, C)

    return pl.pallas_call(
        _resnet_block_kernel(H, W, C, float(res_scale)),
        out_shape=jax.ShapeDtypeStruct((N, H, W, C), x_nhwc.dtype),
        grid_spec=pltpu.PrefetchScalarGridSpec(
            num_scalar_prefetch=0,
            grid=(N,),
            in_specs=[
                pl.BlockSpec((1, H, W, C), lambda n: (n, 0, 0, 0)),
                pl.BlockSpec((9 * C, C), lambda n: (0, 0)),
                pl.BlockSpec((1, C), lambda n: (0, 0)),
                pl.BlockSpec((9 * C, C), lambda n: (0, 0)),
                pl.BlockSpec((1, C), lambda n: (0, 0)),
            ],
            out_specs=pl.BlockSpec((1, H, W, C), lambda n: (n, 0, 0, 0)),
            scratch_shapes=[
                pltpu.VMEM((H + 2, W + 2, C), jnp.float32),
                pltpu.VMEM((H * W, 9 * C), jnp.float32),
            ],
        ),
        compiler_params=pltpu.CompilerParams(
            dimension_semantics=("parallel",),
            vmem_limit_bytes=32 * 1024 * 1024,
        ),
    )(x_nhwc, w0, b0_2d, w1, b1_2d)


def _reference(x_nhwc, w0_hwio, b0, w1_hwio, b1, *, res_scale=1.0):
    """Plain-JAX reference: conv3x3 -> ReLU -> conv3x3, residual add (NHWC)."""
    dn = ("NHWC", "HWIO", "NHWC")
    h = jax.lax.conv_general_dilated(x_nhwc, w0_hwio, (1, 1), "SAME",
                                     dimension_numbers=dn)
    h = jnp.maximum(h + b0.reshape(1, 1, 1, -1), 0.0)
    y = jax.lax.conv_general_dilated(h, w1_hwio, (1, 1), "SAME",
                                     dimension_numbers=dn)
    y = y + b1.reshape(1, 1, 1, -1)
    return x_nhwc + res_scale * y


if __name__ == "__main__":
    key = jax.random.PRNGKey(0)
    kx, kw0, kb0, kw1, kb1 = jax.random.split(key, 5)

    # in_nc = mid_nc = out_nc = 128 keeps the channel (lane) axis dense.
    N, H, W, C = 2, 16, 16, 128
    x = jax.random.normal(kx, (N, H, W, C), dtype=jnp.float32)
    w0 = 0.05 * jax.random.normal(kw0, (3, 3, C, C), dtype=jnp.float32)
    b0 = 0.05 * jax.random.normal(kb0, (C,), dtype=jnp.float32)
    w1 = 0.05 * jax.random.normal(kw1, (3, 3, C, C), dtype=jnp.float32)
    b1 = 0.05 * jax.random.normal(kb1, (C,), dtype=jnp.float32)

    out = jax.block_until_ready(
        resnet_block_forward(x, w0, b0, w1, b1, res_scale=1.0))
    ref = jax.block_until_ready(
        _reference(x, w0, b0, w1, b1, res_scale=1.0))

    assert out.shape == (N, H, W, C)
    assert jnp.allclose(out, ref, atol=1e-3, rtol=1e-3), \
        float(jnp.max(jnp.abs(out - ref)))

    print("KERNEL_OK")
</pallas_src>

<mosaic_0001>
module attributes {stable_mosaic.version = 11 : i64} {
  func.func @kernel(%arg0: i32, %arg1: memref<1x16x16x128xf32, #tpu.memory_space<vmem>>, %arg2: memref<1152x128xf32, #tpu.memory_space<vmem>>, %arg3: memref<1x128xf32, #tpu.memory_space<vmem>>, %arg4: memref<1152x128xf32, #tpu.memory_space<vmem>>, %arg5: memref<1x128xf32, #tpu.memory_space<vmem>>, %arg6: memref<1x16x16x128xf32, #tpu.memory_space<vmem>>, %arg7: memref<18x18x128xf32, #tpu.memory_space<vmem>>, %arg8: memref<256x1152xf32, #tpu.memory_space<vmem>>) attributes {dimension_semantics = [#tpu.dimension_semantics<parallel>], iteration_bounds = array<i64: 2>, scalar_prefetch = 0 : i64, scratch_operands = 2 : i64, tpu.core_type = #tpu.core_type<tc>, window_params = [{transform_indices = @transform_0, window_bounds = array<i64: 1, 16, 16, 128>}, {pipeline_mode = #tpu.pipeline_mode<synchronous>, transform_indices = @transform_1, window_bounds = array<i64: 1152, 128>}, {pipeline_mode = #tpu.pipeline_mode<synchronous>, transform_indices = @transform_2, window_bounds = array<i64: 1, 128>}, {pipeline_mode = #tpu.pipeline_mode<synchronous>, transform_indices = @transform_3, window_bounds = array<i64: 1152, 128>}, {pipeline_mode = #tpu.pipeline_mode<synchronous>, transform_indices = @transform_4, window_bounds = array<i64: 1, 128>}, {transform_indices = @transform_5, window_bounds = array<i64: 1, 16, 16, 128>}]} {
    %cst = arith.constant 0.000000e+00 : f32
    %0 = vector.broadcast %cst : f32 to vector<18x18x128xf32>
    %c0 = arith.constant 0 : index
    %c0_0 = arith.constant 0 : index
    %c0_1 = arith.constant 0 : index
    %1 = vector.load %arg7[%c0, %c0_0, %c0_1] : memref<18x18x128xf32, #tpu.memory_space<vmem>>, vector<18x18x128xf32>
    tpu.vector_store %arg7[%c0, %c0_0, %c0_1], %0 {strides = array<i32>} : memref<18x18x128xf32, #tpu.memory_space<vmem>>, vector<18x18x128xf32>,
    %c0_2 = arith.constant 0 : index
    %c0_3 = arith.constant 0 : index
    %c0_4 = arith.constant 0 : index
    %c0_5 = arith.constant 0 : index
    %2 = vector.load %arg1[%c0_2, %c0_3, %c0_4, %c0_5] : memref<1x16x16x128xf32, #tpu.memory_space<vmem>>, vector<1x16x16x128xf32>
    %3 = vector.shape_cast %2 : vector<1x16x16x128xf32> to vector<16x16x128xf32>
    %c1 = arith.constant 1 : index
    %c1_6 = arith.constant 1 : index
    %c0_7 = arith.constant 0 : index
    %4 = vector.load %arg7[%c1, %c1_6, %c0_7] : memref<18x18x128xf32, #tpu.memory_space<vmem>>, vector<16x16x128xf32>
    tpu.vector_store %arg7[%c1, %c1_6, %c0_7], %3 {strides = array<i32>} : memref<18x18x128xf32, #tpu.memory_space<vmem>>, vector<16x16x128xf32>,
    %c0_8 = arith.constant 0 : index
    %c0_9 = arith.constant 0 : index
    %c0_10 = arith.constant 0 : index
    %5 = vector.load %arg7[%c0_8, %c0_9, %c0_10] : memref<18x18x128xf32, #tpu.memory_space<vmem>>, vector<16x16x128xf32>
    %6 = vector.shape_cast %5 : vector<16x16x128xf32> to vector<256x128xf32>
    %c0_11 = arith.constant 0 : index
    %c0_12 = arith.constant 0 : index
    %7 = vector.load %arg8[%c0_11, %c0_12] : memref<256x1152xf32, #tpu.memory_space<vmem>>, vector<256x128xf32>
    tpu.vector_store %arg8[%c0_11, %c0_12], %6 {strides = array<i32>} : memref<256x1152xf32, #tpu.memory_space<vmem>>, vector<256x128xf32>,
    %c0_13 = arith.constant 0 : index
    %c1_14 = arith.constant 1 : index
    %c0_15 = arith.constant 0 : index
    %8 = vector.load %arg7[%c0_13, %c1_14, %c0_15] : memref<18x18x128xf32, #tpu.memory_space<vmem>>, vector<16x16x128xf32>
    %9 = vector.shape_cast %8 : vector<16x16x128xf32> to vector<256x128xf32>
    %c0_16 = arith.constant 0 : index
    %c128 = arith.constant 128 : index
    %10 = vector.load %arg8[%c0_16, %c128] : memref<256x1152xf32, #tpu.memory_space<vmem>>, vector<256x128xf32>
    tpu.vector_store %arg8[%c0_16, %c128], %9 {strides = array<i32>} : memref<256x1152xf32, #tpu.memory_space<vmem>>, vector<256x128xf32>,
    %c0_17 = arith.constant 0 : index
    %c2 = arith.constant 2 : index
    %c0_18 = arith.constant 0 : index
    %11 = vector.load %arg7[%c0_17, %c2, %c0_18] : memref<18x18x128xf32, #tpu.memory_space<vmem>>, vector<16x16x128xf32>
    %12 = vector.shape_cast %11 : vector<16x16x128xf32> to vector<256x128xf32>
    %c0_19 = arith.constant 0 : index
    %c256 = arith.constant 256 : index
    %13 = vector.load %arg8[%c0_19, %c256] : memref<256x1152xf32, #tpu.memory_space<vmem>>, vector<256x128xf32>
    tpu.vector_store %arg8[%c0_19, %c256], %12 {strides = array<i32>} : memref<256x1152xf32, #tpu.memory_space<vmem>>, vector<256x128xf32>,
    %c1_20 = arith.constant 1 : index
    %c0_21 = arith.constant 0 : index
    %c0_22 = arith.constant 0 : index
    %14 = vector.load %arg7[%c1_20, %c0_21, %c0_22] : memref<18x18x128xf32, #tpu.memory_space<vmem>>, vector<16x16x128xf32>
    %15 = vector.shape_cast %14 : vector<16x16x128xf32> to vector<256x128xf32>
    %c0_23 = arith.constant 0 : index
    %c384 = arith.constant 384 : index
    %16 = vector.load %arg8[%c0_23, %c384] : memref<256x1152xf32, #tpu.memory_space<vmem>>, vector<256x128xf32>
    tpu.vector_store %arg8[%c0_23, %c384], %15 {strides = array<i32>} : memref<256x1152xf32, #tpu.memory_space<vmem>>, vector<256x128xf32>,
    %c1_24 = arith.constant 1 : index
    %c1_25 = arith.constant 1 : index
    %c0_26 = arith.constant 0 : index
    %17 = vector.load %arg7[%c1_24, %c1_25, %c0_26] : memref<18x18x128xf32, #tpu.memory_space<vmem>>, vector<16x16x128xf32>
    %18 = vector.shape_cast %17 : vector<16x16x128xf32> to vector<256x128xf32>
    %c0_27 = arith.constant 0 : index
    %c512 = arith.constant 512 : index
    %19 = vector.load %arg8[%c0_27, %c512] : memref<256x1152xf32, #tpu.memory_space<vmem>>, vector<256x128xf32>
    tpu.vector_store %arg8[%c0_27, %c512], %18 {strides = array<i32>} : memref<256x1152xf32, #tpu.memory_space<vmem>>, vector<256x128xf32>,
    %c1_28 = arith.constant 1 : index
    %c2_29 = arith.constant 2 : index
    %c0_30 = arith.constant 0 : index
    %20 = vector.load %arg7[%c1_28, %c2_29, %c0_30] : memref<18x18x128xf32, #tpu.memory_space<vmem>>, vector<16x16x128xf32>
    %21 = vector.shape_cast %20 : vector<16x16x128xf32> to vector<256x128xf32>
    %c0_31 = arith.constant 0 : index
    %c640 = arith.constant 640 : index
    %22 = vector.load %arg8[%c0_31, %c640] : memref<256x1152xf32, #tpu.memory_space<vmem>>, vector<256x128xf32>
    tpu.vector_store %arg8[%c0_31, %c640], %21 {strides = array<i32>} : memref<256x1152xf32, #tpu.memory_space<vmem>>, vector<256x128xf32>,
    %c2_32 = arith.constant 2 : index
    %c0_33 = arith.constant 0 : index
    %c0_34 = arith.constant 0 : index
    %23 = vector.load %arg7[%c2_32, %c0_33, %c0_34] : memref<18x18x128xf32, #tpu.memory_space<vmem>>, vector<16x16x128xf32>
    %24 = vector.shape_cast %23 : vector<16x16x128xf32> to vector<256x128xf32>
    %c0_35 = arith.constant 0 : index
    %c768 = arith.constant 768 : index
    %25 = vector.load %arg8[%c0_35, %c768] : memref<256x1152xf32, #tpu.memory_space<vmem>>, vector<256x128xf32>
    tpu.vector_store %arg8[%c0_35, %c768], %24 {strides = array<i32>} : memref<256x1152xf32, #tpu.memory_space<vmem>>, vector<256x128xf32>,
    %c2_36 = arith.constant 2 : index
    %c1_37 = arith.constant 1 : index
    %c0_38 = arith.constant 0 : index
    %26 = vector.load %arg7[%c2_36, %c1_37, %c0_38] : memref<18x18x128xf32, #tpu.memory_space<vmem>>, vector<16x16x128xf32>
    %27 = vector.shape_cast %26 : vector<16x16x128xf32> to vector<256x128xf32>
    %c0_39 = arith.constant 0 : index
    %c896 = arith.constant 896 : index
    %28 = vector.load %arg8[%c0_39, %c896] : memref<256x1152xf32, #tpu.memory_space<vmem>>, vector<256x128xf32>
    tpu.vector_store %arg8[%c0_39, %c896], %27 {strides = array<i32>} : memref<256x1152xf32, #tpu.memory_space<vmem>>, vector<256x128xf32>,
    %c2_40 = arith.constant 2 : index
    %c2_41 = arith.constant 2 : index
    %c0_42 = arith.constant 0 : index
    %29 = vector.load %arg7[%c2_40, %c2_41, %c0_42] : memref<18x18x128xf32, #tpu.memory_space<vmem>>, vector<16x16x128xf32>
    %30 = vector.shape_cast %29 : vector<16x16x128xf32> to vector<256x128xf32>
    %c0_43 = arith.constant 0 : index
    %c1024 = arith.constant 1024 : index
    %31 = vector.load %arg8[%c0_43, %c1024] : memref<256x1152xf32, #tpu.memory_space<vmem>>, vector<256x128xf32>
    tpu.vector_store %arg8[%c0_43, %c1024], %30 {strides = array<i32>} : memref<256x1152xf32, #tpu.memory_space<vmem>>, vector<256x128xf32>,
    %c0_44 = arith.constant 0 : index
    %c0_45 = arith.constant 0 : index
    %32 = vector.load %arg8[%c0_44, %c0_45] : memref<256x1152xf32, #tpu.memory_space<vmem>>, vector<256x1152xf32>
    %c0_46 = arith.constant 0 : index
    %c0_47 = arith.constant 0 : index
    %33 = vector.load %arg2[%c0_46, %c0_47] : memref<1152x128xf32, #tpu.memory_space<vmem>>, vector<1152x128xf32>
    %cst_48 = arith.constant dense<0.000000e+00> : vector<256x128xf32>
    %34 = tpu.matmul %32, %33, %cst_48 {dimension_numbers = #tpu.dot_dimension_numbers<[1], [0], [0], [1], [0, 0, 1, 1], [], []>} : vector<256x1152xf32>, vector<1152x128xf32>, vector<256x128xf32> -> vector<256x128xf32>
    %c0_49 = arith.constant 0 : index
    %c0_50 = arith.constant 0 : index
    %35 = vector.load %arg3[%c0_49, %c0_50] : memref<1x128xf32, #tpu.memory_space<vmem>>, vector<1x128xf32>
    %36 = vector.broadcast %35 : vector<1x128xf32> to vector<256x128xf32>
    %37 = arith.addf %34, %36 : vector<256x128xf32>
    %cst_51 = arith.constant 0.000000e+00 : f32
    %38 = vector.broadcast %cst_51 : f32 to vector<256x128xf32>
    %39 = arith.maximumf %37, %38 : vector<256x128xf32>
    %40 = vector.shape_cast %39 : vector<256x128xf32> to vector<16x16x128xf32>
    %c1_52 = arith.constant 1 : index
    %c1_53 = arith.constant 1 : index
    %c0_54 = arith.constant 0 : index
    %41 = vector.load %arg7[%c1_52, %c1_53, %c0_54] : memref<18x18x128xf32, #tpu.memory_space<vmem>>, vector<16x16x128xf32>
    tpu.vector_store %arg7[%c1_52, %c1_53, %c0_54], %40 {strides = array<i32>} : memref<18x18x128xf32, #tpu.memory_space<vmem>>, vector<16x16x128xf32>,
    %c0_55 = arith.constant 0 : index
    %c0_56 = arith.constant 0 : index
    %c0_57 = arith.constant 0 : index
    %42 = vector.load %arg7[%c0_55, %c0_56, %c0_57] : memref<18x18x128xf32, #tpu.memory_space<vmem>>, vector<16x16x128xf32>
    %43 = vector.shape_cast %42 : vector<16x16x128xf32> to vector<256x128xf32>
    %c0_58 = arith.constant 0 : index
    %c0_59 = arith.constant 0 : index
    %44 = vector.load %arg8[%c0_58, %c0_59] : memref<256x1152xf32, #tpu.memory_space<vmem>>, vector<256x128xf32>
    tpu.vector_store %arg8[%c0_58, %c0_59], %43 {strides = array<i32>} : memref<256x1152xf32, #tpu.memory_space<vmem>>, vector<256x128xf32>,
    %c0_60 = arith.constant 0 : index
    %c1_61 = arith.constant 1 : index
    %c0_62 = arith.constant 0 : index
    %45 = vector.load %arg7[%c0_60, %c1_61, %c0_62] : memref<18x18x128xf32, #tpu.memory_space<vmem>>, vector<16x16x128xf32>
    %46 = vector.shape_cast %45 : vector<16x16x128xf32> to vector<256x128xf32>
    %c0_63 = arith.constant 0 : index
    %c128_64 = arith.constant 128 : index
    %47 = vector.load %arg8[%c0_63, %c128_64] : memref<256x1152xf32, #tpu.memory_space<vmem>>, vector<256x128xf32>
    tpu.vector_store %arg8[%c0_63, %c128_64], %46 {strides = array<i32>} : memref<256x1152xf32, #tpu.memory_space<vmem>>, vector<256x128xf32>,
    %c0_65 = arith.constant 0 : index
    %c2_66 = arith.constant 2 : index
    %c0_67 = arith.constant 0 : index
    %48 = vector.load %arg7[%c0_65, %c2_66, %c0_67] : memref<18x18x128xf32, #tpu.memory_space<vmem>>, vector<16x16x128xf32>
    %49 = vector.shape_cast %48 : vector<16x16x128xf32> to vector<256x128xf32>
    %c0_68 = arith.constant 0 : index
    %c256_69 = arith.constant 256 : index
    %50 = vector.load %arg8[%c0_68, %c256_69] : memref<256x1152xf32, #tpu.memory_space<vmem>>, vector<256x128xf32>
    tpu.vector_store %arg8[%c0_68, %c256_69], %49 {strides = array<i32>} : memref<256x1152xf32, #tpu.memory_space<vmem>>, vector<256x128xf32>,
    %c1_70 = arith.constant 1 : index
    %c0_71 = arith.constant 0 : index
    %c0_72 = arith.constant 0 : index
    %51 = vector.load %arg7[%c1_70, %c0_71, %c0_72] : memref<18x18x128xf32, #tpu.memory_space<vmem>>, vector<16x16x128xf32>
    %52 = vector.shape_cast %51 : vector<16x16x128xf32> to vector<256x128xf32>
    %c0_73 = arith.constant 0 : index
    %c384_74 = arith.constant 384 : index
    %53 = vector.load %arg8[%c0_73, %c384_74] : memref<256x1152xf32, #tpu.memory_space<vmem>>, vector<256x128xf32>
    tpu.vector_store %arg8[%c0_73, %c384_74], %52 {strides = array<i32>} : memref<256x1152xf32, #tpu.memory_space<vmem>>, vector<256x128xf32>,
    %c1_75 = arith.constant 1 : index
    %c1_76 = arith.constant 1 : index
    %c0_77 = arith.constant 0 : index
    %54 = vector.load %arg7[%c1_75, %c1_76, %c0_77] : memref<18x18x128xf32, #tpu.memory_space<vmem>>, vector<16x16x128xf32>
    %55 = vector.shape_cast %54 : vector<16x16x128xf32> to vector<256x128xf32>
    %c0_78 = arith.constant 0 : index
    %c512_79 = arith.constant 512 : index
    %56 = vector.load %arg8[%c0_78, %c512_79] : memref<256x1152xf32, #tpu.memory_space<vmem>>, vector<256x128xf32>
    tpu.vector_store %arg8[%c0_78, %c512_79], %55 {strides = array<i32>} : memref<256x1152xf32, #tpu.memory_space<vmem>>, vector<256x128xf32>,
    %c1_80 = arith.constant 1 : index
    %c2_81 = arith.constant 2 : index
    %c0_82 = arith.constant 0 : index
    %57 = vector.load %arg7[%c1_80, %c2_81, %c0_82] : memref<18x18x128xf32, #tpu.memory_space<vmem>>, vector<16x16x128xf32>
    %58 = vector.shape_cast %57 : vector<16x16x128xf32> to vector<256x128xf32>
    %c0_83 = arith.constant 0 : index
    %c640_84 = arith.constant 640 : index
    %59 = vector.load %arg8[%c0_83, %c640_84] : memref<256x1152xf32, #tpu.memory_space<vmem>>, vector<256x128xf32>
    tpu.vector_store %arg8[%c0_83, %c640_84], %58 {strides = array<i32>} : memref<256x1152xf32, #tpu.memory_space<vmem>>, vector<256x128xf32>,
    %c2_85 = arith.constant 2 : index
    %c0_86 = arith.constant 0 : index
    %c0_87 = arith.constant 0 : index
    %60 = vector.load %arg7[%c2_85, %c0_86, %c0_87] : memref<18x18x128xf32, #tpu.memory_space<vmem>>, vector<16x16x128xf32>
    %61 = vector.shape_cast %60 : vector<16x16x128xf32> to vector<256x128xf32>
    %c0_88 = arith.constant 0 : index
    %c768_89 = arith.constant 768 : index
    %62 = vector.load %arg8[%c0_88, %c768_89] : memref<256x1152xf32, #tpu.memory_space<vmem>>, vector<256x128xf32>
    tpu.vector_store %arg8[%c0_88, %c768_89], %61 {strides = array<i32>} : memref<256x1152xf32, #tpu.memory_space<vmem>>, vector<256x128xf32>,
    %c2_90 = arith.constant 2 : index
    %c1_91 = arith.constant 1 : index
    %c0_92 = arith.constant 0 : index
    %63 = vector.load %arg7[%c2_90, %c1_91, %c0_92] : memref<18x18x128xf32, #tpu.memory_space<vmem>>, vector<16x16x128xf32>
    %64 = vector.shape_cast %63 : vector<16x16x128xf32> to vector<256x128xf32>
    %c0_93 = arith.constant 0 : index
    %c896_94 = arith.constant 896 : index
    %65 = vector.load %arg8[%c0_93, %c896_94] : memref<256x1152xf32, #tpu.memory_space<vmem>>, vector<256x128xf32>
    tpu.vector_store %arg8[%c0_93, %c896_94], %64 {strides = array<i32>} : memref<256x1152xf32, #tpu.memory_space<vmem>>, vector<256x128xf32>,
    %c2_95 = arith.constant 2 : index
    %c2_96 = arith.constant 2 : index
    %c0_97 = arith.constant 0 : index
    %66 = vector.load %arg7[%c2_95, %c2_96, %c0_97] : memref<18x18x128xf32, #tpu.memory_space<vmem>>, vector<16x16x128xf32>
    %67 = vector.shape_cast %66 : vector<16x16x128xf32> to vector<256x128xf32>
    %c0_98 = arith.constant 0 : index
    %c1024_99 = arith.constant 1024 : index
    %68 = vector.load %arg8[%c0_98, %c1024_99] : memref<256x1152xf32, #tpu.memory_space<vmem>>, vector<256x128xf32>
    tpu.vector_store %arg8[%c0_98, %c1024_99], %67 {strides = array<i32>} : memref<256x1152xf32, #tpu.memory_space<vmem>>, vector<256x128xf32>,
    %c0_100 = arith.constant 0 : index
    %c0_101 = arith.constant 0 : index
    %69 = vector.load %arg8[%c0_100, %c0_101] : memref<256x1152xf32, #tpu.memory_space<vmem>>, vector<256x1152xf32>
    %c0_102 = arith.constant 0 : index
    %c0_103 = arith.constant 0 : index
    %70 = vector.load %arg4[%c0_102, %c0_103] : memref<1152x128xf32, #tpu.memory_space<vmem>>, vector<1152x128xf32>
    %cst_104 = arith.constant dense<0.000000e+00> : vector<256x128xf32>
    %71 = tpu.matmul %69, %70, %cst_104 {dimension_numbers = #tpu.dot_dimension_numbers<[1], [0], [0], [1], [0, 0, 1, 1], [], []>} : vector<256x1152xf32>, vector<1152x128xf32>, vector<256x128xf32> -> vector<256x128xf32>
    %c0_105 = arith.constant 0 : index
    %c0_106 = arith.constant 0 : index
    %72 = vector.load %arg5[%c0_105, %c0_106] : memref<1x128xf32, #tpu.memory_space<vmem>>, vector<1x128xf32>
    %73 = vector.broadcast %72 : vector<1x128xf32> to vector<256x128xf32>
    %74 = arith.addf %71, %73 : vector<256x128xf32>
    %c0_107 = arith.constant 0 : index
    %c0_108 = arith.constant 0 : index
    %c0_109 = arith.constant 0 : index
    %c0_110 = arith.constant 0 : index
    %75 = vector.load %arg1[%c0_107, %c0_108, %c0_109, %c0_110] : memref<1x16x16x128xf32, #tpu.memory_space<vmem>>, vector<1x16x16x128xf32>
    %76 = vector.shape_cast %75 : vector<1x16x16x128xf32> to vector<16x16x128xf32>
    %77 = vector.shape_cast %74 : vector<256x128xf32> to vector<16x16x128xf32>
    %cst_111 = arith.constant 1.000000e+00 : f32
    %78 = vector.broadcast %cst_111 : f32 to vector<16x16x128xf32>
    %79 = arith.mulf %78, %77 : vector<16x16x128xf32>
    %80 = arith.addf %76, %79 : vector<16x16x128xf32>
    %c0_112 = arith.constant 0 : index
    %c0_113 = arith.constant 0 : index
    %c0_114 = arith.constant 0 : index
    %c0_115 = arith.constant 0 : index
    %81 = vector.load %arg6[%c0_112, %c0_113, %c0_114, %c0_115] : memref<1x16x16x128xf32, #tpu.memory_space<vmem>>, vector<1x16x16x128xf32>
    %82 = vector.shape_cast %81 : vector<1x16x16x128xf32> to vector<16x16x128xf32>
    %83 = vector.shape_cast %80 : vector<16x16x128xf32> to vector<1x16x16x128xf32>
    tpu.vector_store %arg6[%c0_112, %c0_113, %c0_114, %c0_115], %83 {strides = array<i32>} : memref<1x16x16x128xf32, #tpu.memory_space<vmem>>, vector<1x16x16x128xf32>,
    return
  }
  func.func @transform_0(%arg0: i32) -> (i32, i32, i32, i32) {
    %c0_i32 = arith.constant 0 : i32
    %c0_i32_0 = arith.constant 0 : i32
    %c0_i32_1 = arith.constant 0 : i32
    %c0_i32_2 = arith.constant 0 : i32
    return %arg0, %c0_i32, %c0_i32_0, %c0_i32_1 : i32, i32, i32, i32
  }
  func.func @transform_1(%arg0: i32) -> (i32, i32) {
    %c0_i32 = arith.constant 0 : i32
    %c0_i32_0 = arith.constant 0 : i32
    %c0_i32_1 = arith.constant 0 : i32
    return %c0_i32, %c0_i32_0 : i32, i32
  }
  func.func @transform_2(%arg0: i32) -> (i32, i32) {
    %c0_i32 = arith.constant 0 : i32
    %c0_i32_0 = arith.constant 0 : i32
    %c0_i32_1 = arith.constant 0 : i32
    return %c0_i32, %c0_i32_0 : i32, i32
  }
  func.func @transform_3(%arg0: i32) -> (i32, i32) {
    %c0_i32 = arith.constant 0 : i32
    %c0_i32_0 = arith.constant 0 : i32
    %c0_i32_1 = arith.constant 0 : i32
    return %c0_i32, %c0_i32_0 : i32, i32
  }
  func.func @transform_4(%arg0: i32) -> (i32, i32) {
    %c0_i32 = arith.constant 0 : i32
    %c0_i32_0 = arith.constant 0 : i32
    %c0_i32_1 = arith.constant 0 : i32
    return %c0_i32, %c0_i32_0 : i32, i32
  }
  func.func @transform_5(%arg0: i32) -> (i32, i32, i32, i32) {
    %c0_i32 = arith.constant 0 : i32
    %c0_i32_0 = arith.constant 0 : i32
    %c0_i32_1 = arith.constant 0 : i32
    %c0_i32_2 = arith.constant 0 : i32
    return %arg0, %c0_i32, %c0_i32_0, %c0_i32_1 : i32, i32, i32, i32
  }
}

</mosaic_0001>

<bundles_post_ra>
// kernel: tpu_custom_call.1
= control target key start
LH: loop header
LB: loop body
LE: loop exit
PB: predicated region body
PF: predicated region fallthrough
CT: control target
= control target key end

     0   :  { %10 = vsyncpa [#allocation5], 0  ;;  %s8067_s0 = inlined_call_operand.hbm [shape: f32[2,16,16,128], index: 0, kind: input, shape index: {}]   ;;  %s8068_s1 = inlined_call_operand.hbm [shape: f32[1152,128], index: 1, kind: input, shape index: {}]   ;;  %s8069_s2 = inlined_call_operand.vmem [shape: f32[1,128], index: 2, kind: input, shape index: {}]   ;;  %s8070_s3 = inlined_call_operand.hbm [shape: f32[1152,128], index: 3, kind: input, shape index: {}]   ;;  %s8071_s4 = inlined_call_operand.vmem [shape: f32[1,128], index: 4, kind: input, shape index: {}]   ;;  %s8072_s5 = inlined_call_operand.hbm [shape: f32[2,16,16,128], index: 5, kind: output, shape index: {}]  }
   0x1   :  { %12 = vsyncpa [#allocation5 + $0x1], 0 }
   0x2   :  { %13 = vsyncpa [#allocation8], 0 }
   0x3   :  { %14 = vsyncpa [#allocation6], 0 }
   0x4   :  { %16 = vsyncpa [#allocation6 + $0x1], 0  ;;  %s6433_s18 = smov 0   ;;  %s6435_s19 = smov 0  }
   0x5   :  { %s6437_s20 = smov 0   ;;  %s6439_s21 = smov 0  }
   0x6 LB: > { %s6454_s22 = sadd.s32 4294967295, %s6391_s21   ;;  %s4938_s23 = sadd.s32 4294967294, %s6391_s21   ;;  %s6391_s21 = sphi %s6439_s21, %s8163_s21   ;;  %s6387_s20 = sphi %s6437_s20, %s8162_s20   ;;  %s6383_s19 = sphi %s6435_s19, %s8161_s19   ;;  %s6379_s18 = sphi %s6433_s18, %s8160_s18  }
   0x7   : > { %p42_p0 = scmp.ne.s32.totalorder %s6383_s19, %s6379_s18  ;;  %p8073_p1 = scmp.eq.s32.totalorder %s6454_s22, 0 }
   0x8   : > { %p156_p3 = scmp.eq.s32.totalorder %s4938_s23, 1  ;;  %p4939_p5 = scmp.ge.s32.totalorder %s6391_s21, 1 }
   0x9   : > { %p6463_p4 = por %p8073_p1, %p42_p0  ;;  %p163_p7 = scmp.lt.s32.totalorder %s6391_s21, 3 }
   0xa   : > { %p6468_p6 = por %p156_p3, %p42_p0  ;;  %s6393_s27 = smov [#allocation7]  }
   0xb   : > { %s8108_s24 = scalar_select %p6463_p4, 1, 0 }
   0xc   : > { %s8109_s25 = scalar_select %p6468_p6, 1, 0 }
   0xd   : > { %p6473_p8 = pnand %p4939_p5, %p163_p7  ;;  %s175_s28 = sshll.u32 %s6393_s27, 4  ;;  %s6477_s28 = int_to_ptr.vmem [resolvable:$true] %s175_s28 }
   0xe   : > { %s6394_s30 = smov [#allocation9]   ;;  %s6235_s9 = scalar_lea.hbm %s8068_s1, 18432 }
   0xf   : > { %p6140_p9 = pneg %p6473_p8  ;;  %s191_s6 = sshll.u32 %s6394_s30, 4  ;;  %s6488_s6 = int_to_ptr.vmem [resolvable:$true] %s191_s6 }
  0x10   : > { %p6236_p12 = scmp.ne.s32.totalorder %s8068_s1, %s6235_s9  ;;  %p6242_p5 = scmp.lt.u32.totalorder %s6235_s9, %s8068_s1 }
  0x11   : > { %p6484_p11 = pnand %p6140_p9, %p8073_p1 }
  0x13   : > { %p6237_p13 = pneg %p6484_p11 }
  0x15   : > { %p6238_p0 = pnand %p6237_p13, %p6236_p12 }
  0x17   : > { %p6239_p3 = pneg %p6238_p0 }
  0x19   : > { %p6244_p7 = pnand %p6242_p5, %p6239_p3 }
  0x1b   : > { %6247 = shalt.err (!%p6244_p7)
}
  0x1c   : > { %s6248_s14 = scalar_lea.vmem %s6477_s28, 18432  ;;  %p6256_p2 = scmp.lt.s32.totalorder %s6477_s28, %s6477_s28 }
  0x1d   : > { %p6249_p9 = scmp.ne.s32.totalorder %s6477_s28, %s6248_s14  ;;  %p6257_p12 = scmp.lt.s32.totalorder %s6248_s14, %s6248_s14 }
  0x1f   : > { %p6251_p10 = pnand %p6249_p9, %p6237_p13  ;;  %p6258_p0 = por %p6257_p12, %p6256_p2 }
  0x21   : > { %p6252_p1 = pneg %p6251_p10 }
  0x23   : > { %p6259_p6 = pnand %p6258_p0, %p6252_p1 }
  0x25   : > { %6262 = shalt.err (!%p6259_p6)
}
  0x26   : > { %s6395_s15 = smov 128   ;;  %s6396_s16 = smov 8  }
  0x27   : > { %6143 = dma.hbm_to_vmem [thread:$0]  (!%p6484_p11), %s8068_s1, 18432, %s6477_s28, [#allocation8], %s6395_s15, %s6395_s15, %s6396_s16  }
  0x28   : > { %s6263_s7 = scalar_lea.hbm %s8070_s3, 18432 }
  0x29   : > { %p6264_p1 = scmp.ne.s32.totalorder %s8070_s3, %s6263_s7  ;;  %p6270_p10 = scmp.lt.u32.totalorder %s6263_s7, %s8070_s3 }
  0x2b   : > { %p6266_p2 = pnand %p6264_p1, %p6237_p13 }
  0x2d   : > { %p6267_p6 = pneg %p6266_p2 }
  0x2f   : > { %p6272_p3 = pnand %p6270_p10, %p6267_p6 }
  0x31   : > { %6275 = shalt.err (!%p6272_p3)
}
  0x32   : > { %s6276_s28 = scalar_lea.vmem %s6488_s6, 18432  ;;  %p6284_p12 = scmp.lt.s32.totalorder %s6488_s6, %s6488_s6 }
  0x33   : > { %p6277_p5 = scmp.ne.s32.totalorder %s6488_s6, %s6276_s28  ;;  %p6285_p0 = scmp.lt.s32.totalorder %s6276_s28, %s6276_s28 }
  0x35   : > { %p6279_p7 = pnand %p6277_p5, %p6237_p13  ;;  %p6286_p1 = por %p6285_p0, %p6284_p12 }
  0x37   : > { %p6280_p9 = pneg %p6279_p7 }
  0x39   : > { %p6287_p2 = pnand %p6286_p1, %p6280_p9 }
  0x3b   : > { %6290 = shalt.err (!%p6287_p2)
}
  0x3c   : > { %6146 = dma.hbm_to_vmem [thread:$0]  (!%p6484_p11), %s8070_s3, 18432, %s6488_s6, [#allocation8], %s6395_s15, %s6395_s15, %s6396_s16  }
  0x3d   : > { %s6549_s29 = sadd.s32 1, %s6391_s21   ;;  %s29_s14 = sadd.s32 1, %s6387_s20 }
  0x3e   : > { %s26_s17 = ssub.s32 %s6391_s21, %s6549_s29  ;;  %p36_p13 = scmp.ne.s32.totalorder %s6387_s20, %s6383_s19 }
  0x3f   : > { %p27_p6 = scmp.eq.s32.totalorder %s26_s17, 0  ;;  %p37_p10 = scmp.eq.s32.totalorder %s6391_s21, 0 }
  0x40   : > { %p8112_p3 = scmp.eq.s32.totalorder %s6454_s22, 1  ;;  %p6157_p7 = scmp.lt.s32.totalorder %s6391_s21, 2 }
  0x41   : > { %s6565_s27 = scalar_select %p27_p6, %s6387_s20, %s29_s14  }
  0x42   : > { %p6559_p5 = por %p8112_p3, %p36_p13  ;;  %p38_p9 = por %p37_p10, %p36_p13 }
  0x43   : > { %s208_s30 = sand.u32 1, %s6387_s20   ;;  %s4958_s6 = sshll.u32 %s6391_s21, 12 }
  0x44   : > { %s8113_s23 = scalar_select %p6559_p5, 1, 0 }
  0x45   : > { %s4943_s7 = sshll.u32 %s208_s30, 8  ;;  %s6572_s10 = scalar_lea.hbm %s8067_s0, %s4958_s6 }
  0x46   : > { %s212_s11 = scalar_lea.vmem [#allocation4], %s4943_s7  ;;  %p6576_p11 = pnand %p6157_p7, %p38_p9 }
  0x47   : > { %s219_s28 = sshll.u32 %s212_s11, 4  ;;  %s6580_s13 = scalar_lea.sflag [#allocation5], %s208_s30  ;;  %s6574_s28 = int_to_ptr.vmem [resolvable:$true] %s219_s28 }
  0x48   : > { %s6291_s14 = scalar_lea.hbm %s6572_s10, 4096  ;;  %p6293_p0 = pneg %p6576_p11 }
  0x49   : > { %p6292_p12 = scmp.ne.s32.totalorder %s6572_s10, %s6291_s14  ;;  %s6296_s6 = scalar_lea.hbm %s8067_s0, 8192 }
  0x4a   : > { %p6297_p13 = scmp.lt.u32.totalorder %s6572_s10, %s8067_s0  ;;  %p6298_p6 = scmp.lt.u32.totalorder %s6296_s6, %s6291_s14 }
  0x4b   : > { %p6294_p1 = pnand %p6293_p0, %p6292_p12  ;;  %p6300_p3 = scmp.lt.u32.totalorder %s6291_s14, %s6572_s10 }
  0x4c   : > { %p6299_p10 = por %p6298_p6, %p6297_p13 }
  0x4d   : > { %p6295_p2 = pneg %p6294_p1 }
  0x4e   : > { %p6301_p7 = por %p6300_p3, %p6299_p10 }
  0x50   : > { %p6302_p9 = pnand %p6301_p7, %p6295_p2 }
  0x52   : > { %6305 = shalt.err (!%p6302_p9)
}
  0x53   : > { %s6306_s30 = scalar_lea.vmem %s6574_s28, 4096  ;;  %s6397_s11 = smov [#allocation4]  }
  0x54   : > { %p6307_p12 = scmp.ne.s32.totalorder %s6574_s28, %s6306_s30  ;;  %s6311_s17 = sshll.u32 %s6397_s11, 4  ;;  %s6312_s17 = int_to_ptr.vmem [resolvable:$false] %s6311_s17 }
  0x55   : > { %s6313_s7 = scalar_lea.vmem %s6312_s17, 8192  ;;  %p6314_p4 = scmp.lt.s32.totalorder %s6574_s28, %s6312_s17 }
  0x56   : > { %p6309_p1 = pnand %p6307_p12, %p6293_p0  ;;  %p6315_p13 = scmp.lt.s32.totalorder %s6313_s7, %s6306_s30 }
  0x58   : > { %p6310_p5 = pneg %p6309_p1  ;;  %p6316_p6 = por %p6315_p13, %p6314_p4 }
  0x5a   : > { %p6317_p10 = pnand %p6316_p6, %p6310_p5 }
  0x5c   : > { %6320 = shalt.err (!%p6317_p10)
}
  0x5d   : > { %6150 = dma.hbm_to_vmem [thread:$0]  (!%p6576_p11), %s6572_s10, 4096, %s6574_s28, %s6580_s13, %s6395_s15, %s6395_s15, %s6396_s16  }
  0x5e   : > { %231 = sbr.rel (%p6473_p8) target bundleno = 1533 (0x5fd), region = 40 }
  0x65   : > { %s6614_s14 = sand.u32 1, %s6383_s19   ;;  %p8115_p4 = scmp.ne.s32.totalorder %s8108_s24, 0 }
  0x66   : > { %s4947_s6 = sshll.u32 %s6614_s14, 8  ;;  %s234_s8 = scalar_lea.sflag [#allocation5], %s6614_s14 }
  0x67   : > { %s6620_s12 = scalar_lea.vmem [#allocation4], %s4947_s6 }
  0x68   : > { %6366 = dma.done.wait (%p8115_p4), %s234_s8, 4096  }
  0x69   : > { %6368 = vsyncadd (%p8115_p4), %s234_s8, 4294963200  ;;  %p8116_p5 = scmp.eq.s32.totalorder %s6454_s22, 0 }
  0x6b   : > { %6370 = dma.done.wait (%p8116_p5), [#allocation8], 36864   ;;  %p8117_p8 = pmov %p8116_p5 }
  0x6c   : > { %v8076_v0 = vmov 0.0|0.0   ;;  %v6399_v1 = vmov 0.0   ;;  %v1256_v2 = vld [vmem:[#allocation7] sm:$0xff]  ;;  %v1257_v3 = vld [vmem:[#allocation7 + $0x8] sm:$0xff]  ;;  %v1258_v4 = vld [vmem:[#allocation7 + $0x10] sm:$0xff]  ;;  %s7899_s10 = scalar_lea.vmem [#allocation10], %s4947_s6 }
  0x6d   : > { %6372 = vsyncadd (%p8117_p8), [#allocation8], 4294930432  ;;  %5216 = vmatprep.subr.bf16.mxu0 %v8076_v0  ;;  %272 = vst [vmem:[#allocation2] sm:$0xff] %v6399_v1  ;;  %v5217_v5 = vpack.c.bf16 %v1257_v3, %v1256_v2  ;;  %v1259_v6 = vld [vmem:[#allocation7 + $0x18] sm:$0xff]  ;;  %v1260_v8 = vld [vmem:[#allocation7 + $0x20] sm:$0xff]  ;;  %s4959_s28 = sshll.u32 %s6454_s22, 12 }
  0x6e   : > { %273 = vst [vmem:[#allocation2 + $0x8] sm:$0xff] %v6399_v1  ;;  %274 = vst [vmem:[#allocation2 + $0x10] sm:$0x3] %v6399_v1  ;;  %v5220_v7 = vpack.c.bf16 %v1259_v6, %v1258_v4  ;;  %v1261_v9 = vld [vmem:[#allocation7 + $0x28] sm:$0xff]  ;;  %v1262_v11 = vld [vmem:[#allocation7 + $0x30] sm:$0xff]  ;;  %s4846_s13 = sshll.u32 %s7899_s10, 4  ;;  %s8019_s11 = scalar_lea.hbm %s8072_s5, %s4959_s28  ;;  %s8021_s13 = int_to_ptr.vmem [resolvable:$true] %s4846_s13 }
  0x6f   : > { %275 = vst [vmem:[#allocation2 + $0x18] sm:$0xff] %v6399_v1  ;;  %276 = vst [vmem:[#allocation2 + $0x20] sm:$0xff] %v6399_v1  ;;  %5218 = vmatpush1.bf16.msra.mxu0 %v5217_v5  ;;  %v5223_v10 = vpack.c.bf16 %v1261_v9, %v1260_v8  ;;  %v1263_v12 = vld [vmem:[#allocation7 + $0x38] sm:$0xff]  ;;  %v1264_v15 = vld [vmem:[#allocation7 + $0x40] sm:$0xff]  ;;  %s4833_s22 = scalar_lea.sflag [#allocation6], %s6614_s14  ;;  %s6321_s17 = scalar_lea.vmem %s8021_s13, 4096 }
  0x70   : > { %277 = vst [vmem:[#allocation2 + $0x28] sm:$0x3] %v6399_v1  ;;  %278 = vst [vmem:[#allocation2 + $0x30] sm:$0xff] %v6399_v1  ;;  %5219 = vmatprep.subr.bf16.mxu0 %v8076_v0  ;;  %v5226_v14 = vpack.c.bf16 %v1263_v12, %v1262_v11  ;;  %v1265_v16 = vld [vmem:[#allocation7 + $0x48] sm:$0xff]  ;;  %v6689_v17 = vld [vmem:[%s6620_s12] sm:$0xff]  ;;  %p6322_p11 = scmp.ne.s32.totalorder %s8021_s13, %s6321_s17  ;;  %p8157_p0 = scmp.ne.s32.totalorder %s8113_s23, 0 }
  0x71   : > { %279 = vst [vmem:[#allocation2 + $0x38] sm:$0xff] %v6399_v1  ;;  %280 = vst [vmem:[#allocation2 + $0x40] sm:$0x3] %v6399_v1  ;;  %v6693_v18 = vld [vmem:[%s6620_s12 + $0x8] sm:$0xff]  ;;  %v6696_v19 = vld [vmem:[%s6620_s12 + $0x10] sm:$0xff]  ;;  %v5229_v22 = vpack.c.bf16 %v1265_v16, %v1264_v15  ;;  %s6400_s7 = smov [#allocation10]  }
  0x72   : > { %281 = vst [vmem:[#allocation2 + $0x48] sm:$0xff] %v6399_v1  ;;  %282 = vst [vmem:[#allocation2 + $0x50] sm:$0xff] %v6399_v1  ;;  %v6701_v20 = vld [vmem:[%s6620_s12 + $0x18] sm:$0xff]  ;;  %v6704_v21 = vld [vmem:[%s6620_s12 + $0x20] sm:$0xff]  ;;  %p6323_p2 = pnand %p6322_p11, %p8157_p0  ;;  %s6325_s6 = sshll.u32 %s6400_s7, 4  ;;  %s6326_s6 = int_to_ptr.vmem [resolvable:$false] %s6325_s6 }
  0x73   : > { %283 = vst [vmem:[#allocation2 + $0x58] sm:$0x3] %v6399_v1  ;;  %284 = vst [vmem:[#allocation2 + $0x60] sm:$0xff] %v6399_v1  ;;  %5221 = vmatpush1.bf16.msra.mxu0 %v5220_v7  ;;  %v6709_v23 = vld [vmem:[%s6620_s12 + $0x28] sm:$0xff]  ;;  %v1266_v24 = vld [vmem:[#allocation7 + $0x50] sm:$0xff]  ;;  %s6327_s8 = scalar_lea.vmem %s6326_s6, 8192  ;;  %p6328_p7 = scmp.lt.s32.totalorder %s8021_s13, %s6326_s6 }
  0x74   : > { %285 = vst [vmem:[#allocation2 + $0x68] sm:$0xff] %v6399_v1  ;;  %286 = vst [vmem:[#allocation2 + $0x70] sm:$0x3] %v6399_v1  ;;  %5222 = vmatprep.subr.bf16.mxu0 %v8076_v0  ;;  %v1267_v25 = vld [vmem:[#allocation7 + $0x58] sm:$0xff]  ;;  %v6714_v26 = vld [vmem:[%s6620_s12 + $0x30] sm:$0xff]  ;;  %p6324_p3 = pneg %p6323_p2  ;;  %p6329_p9 = scmp.lt.s32.totalorder %s6327_s8, %s6321_s17 }
  0x75   : > { %287 = vst [vmem:[#allocation2 + $0x78] sm:$0xff] %v6399_v1  ;;  %288 = vst [vmem:[#allocation2 + $0x80] sm:$0xff] %v6399_v1  ;;  %v455_v13 = vld [vmem:[#allocation2 + $0x1] sm:$0xff]  ;;  %v6721_v28 = vld [vmem:[%s6620_s12 + $0x40] sm:$0xff]  ;;  %v5232_v31 = vpack.c.bf16 %v1267_v25, %v1266_v24 }
  0x76   : > { %289 = vst [vmem:[#allocation2 + $0x88] sm:$0x3] %v6399_v1  ;;  %290 = vst [vmem:[#allocation2 + $0x90] sm:$0xff] %v6399_v1  ;;  %1471 = vmatprep.mubr.f32.mxu0 %v455_v13  ;;  %v6718_v27 = vld [vmem:[%s6620_s12 + $0x38] sm:$0xff]  ;;  %v6726_v29 = vld [vmem:[%s6620_s12 + $0x48] sm:$0xff]  ;;  %p6330_p12 = por %p6329_p9, %p6328_p7 }
  0x77   : > { %291 = vst [vmem:[#allocation2 + $0x98] sm:$0xff] %v6399_v1  ;;  %292 = vst [vmem:[#allocation2 + $0xa0] sm:$0x3] %v6399_v1  ;;  %5224 = vmatpush1.bf16.msra.mxu0 %v5223_v10  ;;  %v6729_v30 = vld [vmem:[%s6620_s12 + $0x50] sm:$0xff]  ;;  %v6734_v32 = vld [vmem:[%s6620_s12 + $0x58] sm:$0xff] }
  0x78   : > { %293 = vst [vmem:[#allocation2 + $0xa8] sm:$0xff] %v6399_v1  ;;  %294 = vst [vmem:[#allocation2 + $0xb0] sm:$0xff] %v6399_v1  ;;  %5225 = vmatprep.subr.bf16.mxu0 %v8076_v0  ;;  %v1268_v33 = vld [vmem:[#allocation7 + $0x60] sm:$0xff]  ;;  %v1269_v34 = vld [vmem:[#allocation7 + $0x68] sm:$0xff]  ;;  %p6331_p1 = pnand %p6330_p12, %p6324_p3 }
  0x79   : > { %295 = vst [vmem:[#allocation2 + $0xb8] sm:$0x3] %v6399_v1  ;;  %296 = vst [vmem:[#allocation2 + $0xc0] sm:$0xff] %v6399_v1  ;;  %v6739_v35 = vld [vmem:[%s6620_s12 + $0x60] sm:$0xff]  ;;  %v6743_v36 = vld [vmem:[%s6620_s12 + $0x68] sm:$0xff]  ;;  %v5235_v37 = vpack.c.bf16 %v1269_v34, %v1268_v33 }
  0x7a   : > { %297 = vst [vmem:[#allocation2 + $0xc8] sm:$0xff] %v6399_v1  ;;  %298 = vst [vmem:[#allocation2 + $0xd0] sm:$0x3] %v6399_v1  ;;  %v6747_v38 = vld [vmem:[%s6620_s12 + $0x70] sm:$0xff]  ;;  %v1271_v40 = vld [vmem:[#allocation7 + $0x78] sm:$0xff] }
  0x7b   : > { %299 = vst [vmem:[#allocation2 + $0xd8] sm:$0xff] %v6399_v1  ;;  %300 = vst [vmem:[#allocation2 + $0xe0] sm:$0xff] %v6399_v1  ;;  %5227 = vmatpush1.bf16.msra.mxu0 %v5226_v14  ;;  %v1270_v39 = vld [vmem:[#allocation7 + $0x70] sm:$0xff]  ;;  %v6752_v41 = vld [vmem:[%s6620_s12 + $0x78] sm:$0xff] }
  0x7c   : > { %301 = vst [vmem:[#allocation2 + $0xe8] sm:$0x3] %v6399_v1  ;;  %302 = vst [vmem:[#allocation2 + $0xf0] sm:$0xff] %v6399_v1  ;;  %5228 = vmatprep.subr.bf16.mxu0 %v8076_v0  ;;  %v6756_v42 = vld [vmem:[%s6620_s12 + $0x80] sm:$0xff]  ;;  %v5238_v43 = vpack.c.bf16 %v1271_v40, %v1270_v39  ;;  %v6760_v44 = vld [vmem:[%s6620_s12 + $0x88] sm:$0xff] }
  0x7d   : > { %303 = vst [vmem:[#allocation2 + $0xf8] sm:$0xff] %v6399_v1  ;;  %304 = vst [vmem:[#allocation2 + $0x100] sm:$0x3] %v6399_v1  ;;  %v1272_v45 = vld [vmem:[#allocation7 + $0x80] sm:$0xff]  ;;  %v1273_v46 = vld [vmem:[#allocation7 + $0x88] sm:$0xff] }
  0x7e   : > { %305 = vst [vmem:[#allocation2 + $0x108] sm:$0xff] %v6399_v1  ;;  %306 = vst [vmem:[#allocation2 + $0x110] sm:$0xff] %v6399_v1  ;;  %v6765_v47 = vld [vmem:[%s6620_s12 + $0x90] sm:$0xff]  ;;  %v6769_v48 = vld [vmem:[%s6620_s12 + $0x98] sm:$0xff]  ;;  %v5241_v50 = vpack.c.bf16 %v1273_v46, %v1272_v45 }
  0x7f   : > { %307 = vst [vmem:[#allocation2 + $0x118] sm:$0x3] %v6399_v1  ;;  %308 = vst [vmem:[#allocation2 + $0x120] sm:$0xff] %v6399_v1  ;;  %5230 = vmatpush1.bf16.msra.mxu0 %v5229_v22  ;;  %v6772_v49 = vld [vmem:[%s6620_s12 + $0xa0] sm:$0xff]  ;;  %v6777_v51 = vld [vmem:[%s6620_s12 + $0xa8] sm:$0xff] }
  0x80   : > { %309 = vst [vmem:[#allocation2 + $0x128] sm:$0xff] %v6399_v1  ;;  %310 = vst [vmem:[#allocation2 + $0x130] sm:$0x3] %v6399_v1  ;;  %5231 = vmatprep.subr.bf16.mxu0 %v8076_v0  ;;  %v6780_v52 = vld [vmem:[%s6620_s12 + $0xb0] sm:$0xff]  ;;  %v1275_v54 = vld [vmem:[#allocation7 + $0x98] sm:$0xff] }
  0x81   : > { %311 = vst [vmem:[#allocation2 + $0x138] sm:$0xff] %v6399_v1  ;;  %312 = vst [vmem:[#allocation2 + $0x140] sm:$0xff] %v6399_v1  ;;  %v1274_v53 = vld [vmem:[#allocation7 + $0x90] sm:$0xff]  ;;  %v6786_v55 = vld [vmem:[%s6620_s12 + $0xb8] sm:$0xff] }
  0x82   : > { %313 = vst [vmem:[#allocation2 + $0x148] sm:$0x3] %v6399_v1  ;;  %314 = vst [vmem:[#allocation2 + $0x150] sm:$0xff] %v6399_v1  ;;  %v6790_v56 = vld [vmem:[%s6620_s12 + $0xc0] sm:$0xff]  ;;  %v5244_v57 = vpack.c.bf16 %v1275_v54, %v1274_v53  ;;  %v1277_v59 = vld [vmem:[#allocation7 + $0xa8] sm:$0xff] }
  0x83   : > { %315 = vst [vmem:[#allocation2 + $0x158] sm:$0xff] %v6399_v1  ;;  %316 = vst [vmem:[#allocation2 + $0x160] sm:$0x3] %v6399_v1  ;;  %5233 = vmatpush1.bf16.msra.mxu0 %v5232_v31  ;;  %v1276_v58 = vld [vmem:[#allocation7 + $0xa0] sm:$0xff]  ;;  %v6795_v60 = vld [vmem:[%s6620_s12 + $0xc8] sm:$0xff] }
  0x84   : > { %317 = vst [vmem:[#allocation2 + $0x168] sm:$0xff] %v6399_v1  ;;  %318 = vst [vmem:[#allocation2 + $0x170] sm:$0xff] %v6399_v1  ;;  %5234 = vmatprep.subr.bf16.mxu0 %v8076_v0  ;;  %v5247_v61 = vpack.c.bf16 %v1277_v59, %v1276_v58  ;;  %v1278_v62 = vld [vmem:[#allocation7 + $0xb0] sm:$0xff]  ;;  %v1279_v63 = vld [vmem:[#allocation7 + $0xb8] sm:$0xff] }
  0x85   : > { %319 = vst [vmem:[#allocation2 + $0x178] sm:$0x3] %v6399_v1  ;;  %320 = vst [vmem:[#allocation2 + $0x180] sm:$0xff] %v6399_v1  ;;  %v6800_v2 = vld [vmem:[%s6620_s12 + $0xd0] sm:$0xff]  ;;  %v5250_v3 = vpack.c.bf16 %v1279_v63, %v1278_v62  ;;  %v1280_v4 = vld [vmem:[#allocation7 + $0xc0] sm:$0xff] }
  0x86   : > { %321 = vst [vmem:[#allocation2 + $0x188] sm:$0xff] %v6399_v1  ;;  %322 = vst [vmem:[#allocation2 + $0x190] sm:$0x3] %v6399_v1  ;;  %v1281_v5 = vld [vmem:[#allocation7 + $0xc8] sm:$0xff]  ;;  %v6805_v6 = vld [vmem:[%s6620_s12 + $0xd8] sm:$0xff] }
  0x87   : > { %323 = vst [vmem:[#allocation2 + $0x198] sm:$0xff] %v6399_v1  ;;  %324 = vst [vmem:[#allocation2 + $0x1a0] sm:$0xff] %v6399_v1  ;;  %5236 = vmatpush1.bf16.msra.mxu0 %v5235_v37  ;;  %v5253_v7 = vpack.c.bf16 %v1281_v5, %v1280_v4  ;;  %v1282_v8 = vld [vmem:[#allocation7 + $0xd0] sm:$0xff]  ;;  %v1283_v9 = vld [vmem:[#allocation7 + $0xd8] sm:$0xff] }
  0x88   : > { %325 = vst [vmem:[#allocation2 + $0x1a8] sm:$0x3] %v6399_v1  ;;  %359 = vst [vmem:[#allocation2 + $0x19] sm:$0xff] %v6689_v17  ;;  %5237 = vmatprep.subr.bf16.mxu0 %v8076_v0  ;;  %v6810_v10 = vld [vmem:[%s6620_s12 + $0xe0] sm:$0xff]  ;;  %v5256_v11 = vpack.c.bf16 %v1283_v9, %v1282_v8  ;;  %v1285_v13 = vld [vmem:[#allocation7 + $0xe8] sm:$0xff] }
  0x89   : > { %360 = vst [vmem:[#allocation2 + $0x21] sm:$0xff] %v6693_v18  ;;  %361 = vst [vmem:[#allocation2 + $0x31] sm:$0xff] %v6696_v19  ;;  %v1284_v12 = vld [vmem:[#allocation7 + $0xe0] sm:$0xff]  ;;  %v6815_v14 = vld [vmem:[%s6620_s12 + $0xe8] sm:$0xff] }
  0x8a   : > { %362 = vst [vmem:[#allocation2 + $0x39] sm:$0xff] %v6701_v20  ;;  %363 = vst [vmem:[#allocation2 + $0x49] sm:$0xff] %v6704_v21  ;;  %v5259_v15 = vpack.c.bf16 %v1285_v13, %v1284_v12  ;;  %v1286_v16 = vld [vmem:[#allocation7 + $0xf0] sm:$0xff]  ;;  %v1287_v22 = vld [vmem:[#allocation7 + $0xf8] sm:$0xff] }
  0x8b   : > { %364 = vst [vmem:[#allocation2 + $0x51] sm:$0xff] %v6709_v23  ;;  %365 = vst [vmem:[#allocation2 + $0x61] sm:$0xff] %v6714_v26  ;;  %5239 = vmatpush1.bf16.msra.mxu0 %v5238_v43  ;;  %v5262_v24 = vpack.c.bf16 %v1287_v22, %v1286_v16  ;;  %v1288_v25 = vld [vmem:[#allocation7 + $0x100] sm:$0xff]  ;;  %v1289_v31 = vld [vmem:[#allocation7 + $0x108] sm:$0xff] }
  0x8c   : > { %366 = vst [vmem:[#allocation2 + $0x69] sm:$0xff] %v6718_v27  ;;  %367 = vst [vmem:[#allocation2 + $0x79] sm:$0xff] %v6721_v28  ;;  %5240 = vmatprep.subr.bf16.mxu0 %v8076_v0  ;;  %v5265_v33 = vpack.c.bf16 %v1289_v31, %v1288_v25  ;;  %v456_v34 = vld [vmem:[#allocation2 + $0x9] sm:$0xff]  ;;  %v1290_v37 = vld [vmem:[#allocation7 + $0x110] sm:$0xff] }
  0x8d   : > { %368 = vst [vmem:[#allocation2 + $0x81] sm:$0xff] %v6726_v29  ;;  %369 = vst [vmem:[#allocation2 + $0x91] sm:$0xff] %v6729_v30  ;;  %v1291_v39 = vld [vmem:[#allocation7 + $0x118] sm:$0xff]  ;;  %v1292_v43 = vld [vmem:[#allocation7 + $0x120] sm:$0xff] }
  0x8e   : > { %370 = vst [vmem:[#allocation2 + $0x99] sm:$0xff] %v6734_v32  ;;  %371 = vst [vmem:[#allocation2 + $0xa9] sm:$0xff] %v6739_v35  ;;  %v5268_v40 = vpack.c.bf16 %v1291_v39, %v1290_v37  ;;  %v1293_v45 = vld [vmem:[#allocation7 + $0x128] sm:$0xff]  ;;  %v1294_v53 = vld [vmem:[#allocation7 + $0x130] sm:$0xff] }
  0x8f   : > { %372 = vst [vmem:[#allocation2 + $0xb1] sm:$0xff] %v6743_v36  ;;  %373 = vst [vmem:[#allocation2 + $0xc1] sm:$0xff] %v6747_v38  ;;  %5242 = vmatpush1.bf16.msra.mxu0 %v5241_v50  ;;  %v6825_v46 = vld [vmem:[#allocation2 + $0x18] sm:$0xff]  ;;  %v5271_v50 = vpack.c.bf16 %v1293_v45, %v1292_v43  ;;  %v1295_v54 = vld [vmem:[#allocation7 + $0x138] sm:$0xff] }
  0x90   : > { %374 = vst [vmem:[#allocation2 + $0xc9] sm:$0xff] %v6752_v41  ;;  %375 = vst [vmem:[#allocation2 + $0xd9] sm:$0xff] %v6756_v42  ;;  %5243 = vmatprep.subr.bf16.mxu0 %v8076_v0  ;;  %v5274_v58 = vpack.c.bf16 %v1295_v54, %v1294_v53  ;;  %v6835_v59 = vld [vmem:[#allocation2 + $0x30] sm:$0xff]  ;;  %v1299_v63 = vld [vmem:[#allocation7 + $0x158] sm:$0xff] }
  0x91   : > { %376 = vst [vmem:[#allocation2 + $0xe1] sm:$0xff] %v6760_v44  ;;  %377 = vst [vmem:[#allocation2 + $0xf1] sm:$0xff] %v6765_v47  ;;  %v6837_v62 = vld [vmem:[#allocation2 + $0x32] sm:$0xff]  ;;  %v1302_v9 = vld [vmem:[#allocation7 + $0x170] sm:$0xff] }
  0x92   : > { %378 = vst [vmem:[#allocation2 + $0xf9] sm:$0xff] %v6769_v48  ;;  %379 = vst [vmem:[#allocation2 + $0x109] sm:$0xff] %v6772_v49  ;;  %5088 = vmatprep.mubr.f32.mxu1 %v6837_v62  ;;  %v1300_v4 = vld [vmem:[#allocation7 + $0x160] sm:$0xff]  ;;  %v1301_v5 = vld [vmem:[#allocation7 + $0x168] sm:$0xff] }
  0x93   : > { %380 = vst [vmem:[#allocation2 + $0x111] sm:$0xff] %v6777_v51  ;;  %381 = vst [vmem:[#allocation2 + $0x121] sm:$0xff] %v6780_v52  ;;  %5245 = vmatpush1.bf16.msra.mxu0 %v5244_v57  ;;  %v6830_v57 = vld [vmem:[#allocation2 + $0x20] sm:$0xff]  ;;  %v5283_v8 = vpack.c.bf16 %v1301_v5, %v1300_v4  ;;  %v1304_v13 = vld [vmem:[#allocation7 + $0x180] sm:$0xff] }
  0x94   : > { %382 = vst [vmem:[#allocation2 + $0x129] sm:$0xff] %v6786_v55  ;;  %383 = vst [vmem:[#allocation2 + $0x139] sm:$0xff] %v6790_v56  ;;  %5246 = vmatprep.subr.bf16.mxu0 %v8076_v0  ;;  %v1306_v22 = vld [vmem:[#allocation7 + $0x190] sm:$0xff]  ;;  %v1308_v31 = vld [vmem:[#allocation7 + $0x1a0] sm:$0xff] }
  0x95   : > { %384 = vst [vmem:[#allocation2 + $0x141] sm:$0xff] %v6795_v60  ;;  %385 = vst [vmem:[#allocation2 + $0x151] sm:$0xff] %v6800_v2  ;;  %v1310_v37 = vld [vmem:[#allocation7 + $0x1b0] sm:$0xff]  ;;  %v1312_v43 = vld [vmem:[#allocation7 + $0x1c0] sm:$0xff] }
  0x96   : > { %386 = vst [vmem:[#allocation2 + $0x159] sm:$0xff] %v6805_v6  ;;  %387 = vst [vmem:[#allocation2 + $0x169] sm:$0xff] %v6810_v10  ;;  %v6873_v39 = vld [vmem:[#allocation2 + $0x80] sm:$0xff]  ;;  %v6878_v45 = vld [vmem:[#allocation2 + $0x90] sm:$0xff] }
  0x97   : > { %5248 = vmatpush1.bf16.msra.mxu0 %v5247_v61  ;;  %388 = vst [vmem:[#allocation2 + $0x171] sm:$0xff] %v6815_v14  ;;  %v1314_v53 = vld [vmem:[#allocation7 + $0x1d0] sm:$0xff]  ;;  %v6883_v54 = vld [vmem:[#allocation2 + $0x98] sm:$0xff] }
  0x98   : > { %5249 = vmatprep.subr.bf16.mxu0 %v8076_v0  ;;  %v6907_v4 = vld [vmem:[#allocation2 + $0xd8] sm:$0xff]  ;;  %v6915_v5 = vld [vmem:[#allocation2 + $0xf0] sm:$0xff] }
  0x9b   : > { %5251 = vmatpush1.bf16.msra.mxu0 %v5250_v3  ;;  %v6843_v3 = vld [vmem:[#allocation2 + $0x38] sm:$0xff] }
  0x9c   : > { %5252 = vmatprep.subr.bf16.mxu0 %v8076_v0 }
  0x9f   : > { %5254 = vmatpush1.bf16.msra.mxu0 %v5253_v7  ;;  %v6848_v7 = vld [vmem:[#allocation2 + $0x48] sm:$0xff] }
  0xa0   : > { %5255 = vmatprep.subr.bf16.mxu0 %v8076_v0 }
  0xa3   : > { %5257 = vmatpush1.bf16.msra.mxu0 %v5256_v11  ;;  %v6853_v11 = vld [vmem:[#allocation2 + $0x50] sm:$0xff] }
  0xa4   : > { %5258 = vmatprep.subr.bf16.mxu0 %v8076_v0 }
  0xa7   : > { %5260 = vmatpush1.bf16.msra.mxu0 %v5259_v15  ;;  %v6858_v15 = vld [vmem:[#allocation2 + $0x60] sm:$0xff] }
  0xa8   : > { %5261 = vmatprep.subr.bf16.mxu0 %v8076_v0 }
  0xab   : > { %5263 = vmatpush1.bf16.msra.mxu0 %v5262_v24  ;;  %v6863_v24 = vld [vmem:[#allocation2 + $0x68] sm:$0xff] }
  0xac   : > { %5264 = vmatprep.subr.bf16.mxu0 %v8076_v0 }
  0xae   : > { %1472 = vmatmul.mubr.f32.vlgmr.msra.gmra.mrb[0].mxu0 %v6399_v1 }
  0xaf   : > { %5266 = vmatpush1.bf16.msra.mxu0 %v5265_v33  ;;  %1476 = vmatprep.mubr.f32.mxu0 %v456_v34  ;;  %v6868_v33 = vld [vmem:[#allocation2 + $0x78] sm:$0xff] }
  0xb0   : > { %5267 = vmatprep.subr.bf16.mxu0 %v8076_v0 }
  0xb2   : > { %1477 = vmatmul.mubr.f32.gmra.mrb[2].mxu0 %v6399_v1  ;;  %v1296_v1 = vld [vmem:[#allocation7 + $0x140] sm:$0xff] }
  0xb3   : > { %1481 = vmatprep.mubr.f32.mxu0 %v6689_v17  ;;  %5269 = vmatpush1.bf16.msra.mxu0 %v5268_v40  ;;  %v1297_v17 = vld [vmem:[#allocation7 + $0x148] sm:$0xff] }
  0xb4   : > { %5270 = vmatprep.subr.bf16.mxu0 %v8076_v0  ;;  %v5277_v61 = vpack.c.bf16 %v1297_v17, %v1296_v1  ;;  %v1316_v1 = vld [vmem:[#allocation7 + $0x1e0] sm:$0xff]  ;;  %v6888_v17 = vld [vmem:[#allocation2 + $0xa8] sm:$0xff] }
  0xb6   : > { %1482 = vmatmul.mubr.f32.gmra.mrb[4].mxu0 %v6825_v46 }
  0xb7   : > { %1486 = vmatprep.mubr.f32.mxu0 %v6693_v18  ;;  %5272 = vmatpush1.bf16.msra.mxu0 %v5271_v50  ;;  %v1298_v18 = vld [vmem:[#allocation7 + $0x150] sm:$0xff] }
  0xb8   : > { %5273 = vmatprep.subr.bf16.mxu0 %v8076_v0 }
  0xba   : > { %1487 = vmatmul.mubr.f32.gmra.mrb[6].mxu0 %v6830_v57 }
  0xbb   : > { %1491 = vmatprep.mubr.f32.mxu0 %v6696_v19  ;;  %5275 = vmatpush1.bf16.msra.mxu0 %v5274_v58  ;;  %v5280_v19 = vpack.c.bf16 %v1299_v63, %v1298_v18  ;;  %v1318_v18 = vld [vmem:[#allocation7 + $0x1f0] sm:$0xff]  ;;  %v6893_v63 = vld [vmem:[#allocation2 + $0xb0] sm:$0xff] }
  0xbc   : > { %5276 = vmatprep.subr.bf16.mxu0 %v8076_v0 }
  0xbe   : > { %1492 = vmatmul.mubr.f32.gmra.mrb[8].mxu0 %v6835_v59 }
  0xbf   : > { %1496 = vmatprep.mubr.f32.mxu0 %v6701_v20  ;;  %5278 = vmatpush1.bf16.msra.mxu0 %v5277_v61  ;;  %v1303_v20 = vld [vmem:[#allocation7 + $0x178] sm:$0xff] }
  0xc0   : > { %5279 = vmatprep.subr.bf16.mxu0 %v8076_v0  ;;  %v5286_v12 = vpack.c.bf16 %v1303_v20, %v1302_v9  ;;  %v1320_v9 = vld [vmem:[#allocation7 + $0x200] sm:$0xff]  ;;  %v519_v20 = vld [vmem:[#allocation2 + $0x2] sm:$0xff] }
  0xc2   : > { %1497 = vmatmul.mubr.f32.gmra.mrb[10].mxu0 %v6843_v3 }
  0xc3   : > { %1501 = vmatprep.mubr.f32.mxu0 %v6704_v21  ;;  %5281 = vmatpush1.bf16.msra.mxu0 %v5280_v19  ;;  %v1305_v21 = vld [vmem:[#allocation7 + $0x188] sm:$0xff] }
  0xc4   : > { %5282 = vmatprep.subr.bf16.mxu0 %v8076_v0  ;;  %v5289_v16 = vpack.c.bf16 %v1305_v21, %v1304_v13  ;;  %v1322_v13 = vld [vmem:[#allocation7 + $0x210] sm:$0xff]  ;;  %v1323_v21 = vld [vmem:[#allocation7 + $0x218] sm:$0xff] }
  0xc6   : > { %1502 = vmatmul.mubr.f32.gmra.mrb[12].mxu0 %v6848_v7 }
  0xc7   : > { %1506 = vmatprep.mubr.f32.mxu0 %v6709_v23  ;;  %5284 = vmatpush1.bf16.msra.mxu0 %v5283_v8  ;;  %v1307_v23 = vld [vmem:[#allocation7 + $0x198] sm:$0xff] }
  0xc8   : > { %5285 = vmatprep.subr.bf16.mxu0 %v8076_v0  ;;  %v5292_v25 = vpack.c.bf16 %v1307_v23, %v1306_v22  ;;  %v6958_v8 = vld [vmem:[%s6620_s12 + $0xf8] sm:$0xff]  ;;  %v1325_v22 = vld [vmem:[#allocation7 + $0x228] sm:$0xff] }
  0xc9   : > { %390 = vst [vmem:[#allocation2 + $0x189] sm:$0xff] %v6958_v8  ;;  %v6974_v23 = vld [vmem:[#allocation2 + $0x1a] sm:$0xff] }
  0xca   : > { %1507 = vmatmul.mubr.f32.gmra.mrb[14].mxu0 %v6853_v11 }
  0xcb   : > { %1511 = vmatprep.mubr.f32.mxu0 %v6714_v26  ;;  %5287 = vmatpush1.bf16.msra.mxu0 %v5286_v12  ;;  %v1309_v26 = vld [vmem:[#allocation7 + $0x1a8] sm:$0xff] }
  0xcc   : > { %5288 = vmatprep.subr.bf16.mxu0 %v8076_v0  ;;  %v5295_v34 = vpack.c.bf16 %v1309_v26, %v1308_v31  ;;  %v1327_v31 = vld [vmem:[#allocation7 + $0x238] sm:$0xff] }
  0xce   : > { %1512 = vmatmul.mubr.f32.gmra.mrb[16].mxu0 %v6858_v15 }
  0xcf   : > { %1516 = vmatprep.mubr.f32.mxu0 %v6718_v27  ;;  %5290 = vmatpush1.bf16.msra.mxu0 %v5289_v16  ;;  %v1311_v27 = vld [vmem:[#allocation7 + $0x1b8] sm:$0xff]  ;;  %v5316_v16 = vpack.c.bf16 %v1323_v21, %v1322_v13  ;;  %v1342_v13 = vld [vmem:[#allocation7 + $0x2b0] sm:$0xff] }
  0xd0   : > { %5291 = vmatprep.subr.bf16.mxu0 %v8076_v0  ;;  %v5298_v40 = vpack.c.bf16 %v1311_v27, %v1310_v37  ;;  %v1330_v27 = vld [vmem:[#allocation7 + $0x250] sm:$0xff] }
  0xd1   : > { %v7017_v21 = vld [vmem:[#allocation2 + $0x82] sm:$0xff] }
  0xd2   : > { %1517 = vmatmul.mubr.f32.gmra.mrb[18].mxu0 %v6863_v24 }
  0xd3   : > { %1521 = vmatprep.mubr.f32.mxu0 %v6721_v28  ;;  %5293 = vmatpush1.bf16.msra.mxu0 %v5292_v25  ;;  %v1313_v28 = vld [vmem:[#allocation7 + $0x1c8] sm:$0xff]  ;;  %v1326_v25 = vld [vmem:[#allocation7 + $0x230] sm:$0xff] }
  0xd4   : > { %5294 = vmatprep.subr.bf16.mxu0 %v8076_v0  ;;  %v5301_v50 = vpack.c.bf16 %v1313_v28, %v1312_v43  ;;  %v5322_v26 = vpack.c.bf16 %v1327_v31, %v1326_v25  ;;  %v1332_v28 = vld [vmem:[#allocation7 + $0x260] sm:$0xff]  ;;  %v7027_v25 = vld [vmem:[#allocation2 + $0x9a] sm:$0xff] }
  0xd6   : > { %1522 = vmatmul.mubr.f32.gmra.mrb[20].mxu0 %v6868_v33 }
  0xd7   : > { %1526 = vmatprep.mubr.f32.mxu0 %v6726_v29  ;;  %5296 = vmatpush1.bf16.msra.mxu0 %v5295_v34  ;;  %v1315_v29 = vld [vmem:[#allocation7 + $0x1d8] sm:$0xff]  ;;  %v1328_v34 = vld [vmem:[#allocation7 + $0x240] sm:$0xff] }
  0xd8   : > { %5297 = vmatprep.subr.bf16.mxu0 %v8076_v0  ;;  %v5304_v58 = vpack.c.bf16 %v1315_v29, %v1314_v53  ;;  %v1334_v29 = vld [vmem:[#allocation7 + $0x270] sm:$0xff] }
  0xda   : > { %1527 = vmatmul.mubr.f32.gmra.mrb[22].mxu0 %v6873_v39 }
  0xdb   : > { %1531 = vmatprep.mubr.f32.mxu0 %v6729_v30  ;;  %5299 = vmatpush1.bf16.msra.mxu0 %v5298_v40  ;;  %v1317_v30 = vld [vmem:[#allocation7 + $0x1e8] sm:$0xff]  ;;  %v1331_v40 = vld [vmem:[#allocation7 + $0x258] sm:$0xff] }
  0xdc   : > { %5300 = vmatprep.subr.bf16.mxu0 %v8076_v0  ;;  %v5307_v61 = vpack.c.bf16 %v1317_v30, %v1316_v1  ;;  %v5328_v43 = vpack.c.bf16 %v1331_v40, %v1330_v27  ;;  %v1336_v30 = vld [vmem:[#allocation7 + $0x280] sm:$0xff] }
  0xdd   : > { %v7037_v27 = vld [vmem:[#allocation2 + $0xb2] sm:$0xff] }
  0xde   : > { %1532 = vmatmul.mubr.f32.gmra.mrb[24].mxu0 %v6878_v45 }
  0xdf   : > { %1536 = vmatprep.mubr.f32.mxu0 %v6734_v32  ;;  %5302 = vmatpush1.bf16.msra.mxu0 %v5301_v50  ;;  %v1319_v32 = vld [vmem:[#allocation7 + $0x1f8] sm:$0xff]  ;;  %v1333_v50 = vld [vmem:[#allocation7 + $0x268] sm:$0xff] }
  0xe0   : > { %5303 = vmatprep.subr.bf16.mxu0 %v8076_v0  ;;  %v5310_v19 = vpack.c.bf16 %v1319_v32, %v1318_v18  ;;  %v5331_v53 = vpack.c.bf16 %v1333_v50, %v1332_v28  ;;  %v1338_v32 = vld [vmem:[#allocation7 + $0x290] sm:$0xff]  ;;  %v7059_v28 = vld [vmem:[#allocation2 + $0xf2] sm:$0xff] }
  0xe1   : > { %v1385_v50 = vld [vmem:[#allocation7 + $0x408] sm:$0xff] }
  0xe2   : > { %1537 = vmatmul.mubr.f32.gmra.mrb[26].mxu0 %v6883_v54 }
  0xe3   : > { %1541 = vmatprep.mubr.f32.mxu0 %v6739_v35  ;;  %5305 = vmatpush1.bf16.msra.mxu0 %v5304_v58  ;;  %v6898_v35 = vld [vmem:[#allocation2 + $0xc0] sm:$0xff]  ;;  %v6997_v58 = vld [vmem:[#allocation2 + $0x52] sm:$0xff] }
  0xe4   : > { %5306 = vmatprep.subr.bf16.mxu0 %v8076_v0 }
  0xe6   : > { %1542 = vmatmul.mubr.f32.gmra.mrb[28].mxu0 %v6888_v17 }
  0xe7   : > { %1546 = vmatprep.mubr.f32.mxu0 %v6743_v36  ;;  %5308 = vmatpush1.bf16.msra.mxu0 %v5307_v61  ;;  %v6903_v36 = vld [vmem:[#allocation2 + $0xc8] sm:$0xff] }
  0xe8   : > { %5309 = vmatprep.subr.bf16.mxu0 %v8076_v0  ;;  %v7002_v61 = vld [vmem:[#allocation2 + $0x62] sm:$0xff] }
  0xea   : > { %1547 = vmatmul.mubr.f32.gmra.mrb[30].mxu0 %v6893_v63 }
  0xeb   : > { %1551 = vmatprep.mubr.f32.mxu0 %v6747_v38  ;;  %5311 = vmatpush1.bf16.msra.mxu0 %v5310_v19  ;;  %v6911_v38 = vld [vmem:[#allocation2 + $0xe0] sm:$0xff]  ;;  %v7007_v19 = vld [vmem:[#allocation2 + $0x6a] sm:$0xff] }
  0xec   : > { %5312 = vmatprep.subr.bf16.mxu0 %v8076_v0 }
  0xee   : > { %1552 = vmatmul.mubr.f32.gmra.mrb[32].mxu0 %v6898_v35 }
  0xef   : > { %1556 = vmatprep.mubr.f32.mxu0 %v6752_v41  ;;  %v6919_v41 = vld [vmem:[#allocation2 + $0xf8] sm:$0xff] }
  0xf2   : > { %1557 = vmatmul.mubr.f32.gmra.mrb[34].mxu0 %v6903_v36 }
  0xf3   : > { %1561 = vmatprep.mubr.f32.mxu0 %v6756_v42  ;;  %v6923_v42 = vld [vmem:[#allocation2 + $0x108] sm:$0xff] }
  0xf6   : > { %1562 = vmatmul.mubr.f32.gmra.mrb[36].mxu0 %v6907_v4 }
  0xf7   : > { %1566 = vmatprep.mubr.f32.mxu0 %v6760_v44  ;;  %v6927_v44 = vld [vmem:[#allocation2 + $0x110] sm:$0xff] }
  0xfa   : > { %1567 = vmatmul.mubr.f32.gmra.mrb[38].mxu0 %v6911_v38 }
  0xfb   : > { %1571 = vmatprep.mubr.f32.mxu0 %v6765_v47  ;;  %v6931_v47 = vld [vmem:[#allocation2 + $0x120] sm:$0xff] }
  0xfe   : > { %1572 = vmatmul.mubr.f32.gmra.mrb[40].mxu0 %v6915_v5 }
  0xff   : > { %1576 = vmatprep.mubr.f32.mxu0 %v6769_v48  ;;  %v6935_v48 = vld [vmem:[#allocation2 + $0x128] sm:$0xff] }
 0x102   : > { %1577 = vmatmul.mubr.f32.gmra.mrb[42].mxu0 %v6919_v41 }
 0x103   : > { %1581 = vmatprep.mubr.f32.mxu0 %v6772_v49  ;;  %v6939_v49 = vld [vmem:[#allocation2 + $0x138] sm:$0xff] }
 0x106   : > { %1582 = vmatmul.mubr.f32.gmra.mrb[44].mxu0 %v6923_v42 }
 0x107   : > { %1586 = vmatprep.mubr.f32.mxu0 %v6777_v51  ;;  %v6943_v51 = vld [vmem:[#allocation2 + $0x140] sm:$0xff] }
 0x10a   : > { %1587 = vmatmul.mubr.f32.gmra.mrb[46].mxu0 %v6927_v44 }
 0x10b   : > { %1591 = vmatprep.mubr.f32.mxu0 %v6780_v52  ;;  %v6947_v52 = vld [vmem:[#allocation2 + $0x150] sm:$0xff] }
 0x10e   : > { %1592 = vmatmul.mubr.f32.gmra.mrb[48].mxu0 %v6931_v47 }
 0x10f   : > { %1596 = vmatprep.mubr.f32.mxu0 %v6786_v55  ;;  %v6950_v55 = vld [vmem:[%s6620_s12 + $0xf0] sm:$0xff] }
 0x110   : > { %389 = vst [vmem:[#allocation2 + $0x181] sm:$0xff] %v6950_v55 }
 0x112   : > { %1597 = vmatmul.mubr.f32.gmra.mrb[50].mxu0 %v6935_v48 }
 0x113   : > { %1601 = vmatprep.mubr.f32.mxu0 %v6790_v56  ;;  %v6955_v56 = vld [vmem:[#allocation2 + $0x158] sm:$0xff] }
 0x116   : > { %1602 = vmatmul.mubr.f32.gmra.mrb[52].mxu0 %v6939_v49 }
 0x117   : > { %1606 = vmatprep.mubr.f32.mxu0 %v6795_v60  ;;  %v6963_v60 = vld [vmem:[#allocation2 + $0x168] sm:$0xff] }
 0x11a   : > { %1607 = vmatmul.mubr.f32.gmra.mrb[54].mxu0 %v6943_v51 }
 0x11b   : > { %1611 = vmatprep.mubr.f32.mxu0 %v6800_v2  ;;  %v6967_v2 = vld [vmem:[#allocation2 + $0x170] sm:$0xff] }
 0x11e   : > { %1612 = vmatmul.mubr.f32.gmra.mrb[56].mxu0 %v6947_v52 }
 0x11f   : > { %1616 = vmatprep.mubr.f32.mxu0 %v6805_v6  ;;  %v1321_v6 = vld [vmem:[#allocation7 + $0x208] sm:$0xff] }
 0x120   : > { %v5313_v12 = vpack.c.bf16 %v1321_v6, %v1320_v9  ;;  %v1340_v6 = vld [vmem:[#allocation7 + $0x2a0] sm:$0xff] }
 0x122   : > { %1617 = vmatmul.mubr.f32.gmra.mrb[58].mxu0 %v6955_v56 }
 0x123   : > { %1621 = vmatprep.mubr.f32.mxu0 %v6810_v10  ;;  %v520_v10 = vld [vmem:[#allocation2 + $0xa] sm:$0xff] }
 0x126   : > { %1622 = vmatmul.mubr.f32.gmra.mrb[60].mxu0 %v6963_v60 }
 0x127   : > { %1626 = vmatprep.mubr.f32.mxu0 %v6815_v14  ;;  %v1324_v14 = vld [vmem:[#allocation7 + $0x220] sm:$0xff] }
 0x12a   : > { %1627 = vmatmul.mubr.f32.gmra.mrb[62].mxu0 %v6967_v2 }
 0x12b   : > { %1696 = vmatprep.mubr.f32.mxu0 %v6825_v46  ;;  %v5319_v46 = vpack.c.bf16 %v1325_v22, %v1324_v14  ;;  %v7022_v14 = vld [vmem:[#allocation2 + $0x92] sm:$0xff] }
 0x12e   : > { %1697 = vmatmul.mubr.f32.vlgmr.msra.gmra.mrb[0].mxu0 %v519_v20  ;;  %v7012_v20 = vld [vmem:[#allocation2 + $0x7a] sm:$0xff] }
 0x12f   : > { %5314 = vmatpush1.bf16.msra.mxu0 %v5313_v12  ;;  %1701 = vmatprep.mubr.f32.mxu0 %v6830_v57  ;;  %v6979_v57 = vld [vmem:[#allocation2 + $0x22] sm:$0xff] }
 0x130   : > { %5315 = vmatprep.subr.bf16.mxu0 %v8076_v0 }
 0x132   : > { %1702 = vmatmul.mubr.f32.gmra.mrb[2].mxu0 %v520_v10 }
 0x133   : > { %1706 = vmatprep.mubr.f32.mxu0 %v6835_v59  ;;  %5317 = vmatpush1.bf16.msra.mxu0 %v5316_v16  ;;  %v1329_v59 = vld [vmem:[#allocation7 + $0x248] sm:$0xff]  ;;  %v1344_v16 = vld [vmem:[#allocation7 + $0x2c0] sm:$0xff] }
 0x134   : > { %5318 = vmatprep.subr.bf16.mxu0 %v8076_v0  ;;  %v5325_v37 = vpack.c.bf16 %v1329_v59, %v1328_v34  ;;  %v7032_v34 = vld [vmem:[#allocation2 + $0xaa] sm:$0xff] }
 0x136   : > { %1707 = vmatmul.mubr.f32.gmra.mrb[4].mxu0 %v6974_v23 }
 0x137   : > { %1711 = vmatprep.mubr.f32.mxu0 %v6843_v3  ;;  %5320 = vmatpush1.bf16.msra.mxu0 %v5319_v46  ;;  %v6987_v3 = vld [vmem:[#allocation2 + $0x3a] sm:$0xff] }
 0x138   : > { %5321 = vmatprep.subr.bf16.mxu0 %v8076_v0  ;;  %v1346_v46 = vld [vmem:[#allocation7 + $0x2d0] sm:$0xff] }
 0x13a   : > { %1712 = vmatmul.mubr.f32.gmra.mrb[6].mxu0 %v6979_v57 }
 0x13b   : > { %1716 = vmatprep.mubr.f32.mxu0 %v6848_v7  ;;  %5323 = vmatpush1.bf16.msra.mxu0 %v5322_v26  ;;  %v6992_v7 = vld [vmem:[#allocation2 + $0x4a] sm:$0xff] }
 0x13c   : > { %5324 = vmatprep.subr.bf16.mxu0 %v8076_v0  ;;  %v1348_v26 = vld [vmem:[#allocation7 + $0x2e0] sm:$0xff] }
 0x13e   : > { %1717 = vmatmul.mubr.f32.gmra.mrb[8].mxu0 %v6837_v62 }
 0x13f   : > { %1721 = vmatprep.mubr.f32.mxu0 %v6853_v11  ;;  %5326 = vmatpush1.bf16.msra.mxu0 %v5325_v37  ;;  %v1335_v11 = vld [vmem:[#allocation7 + $0x278] sm:$0xff]  ;;  %v1350_v37 = vld [vmem:[#allocation7 + $0x2f0] sm:$0xff] }
 0x140   : > { %5327 = vmatprep.subr.bf16.mxu0 %v8076_v0  ;;  %v5334_v1 = vpack.c.bf16 %v1335_v11, %v1334_v29  ;;  %v1387_v29 = vld [vmem:[#allocation7 + $0x418] sm:$0xff] }
 0x142   : > { %1722 = vmatmul.mubr.f32.gmra.mrb[10].mxu0 %v6987_v3 }
 0x143   : > { %1726 = vmatprep.mubr.f32.mxu0 %v6858_v15  ;;  %5329 = vmatpush1.bf16.msra.mxu0 %v5328_v43  ;;  %v1337_v15 = vld [vmem:[#allocation7 + $0x288] sm:$0xff] }
 0x144   : > { %5330 = vmatprep.subr.bf16.mxu0 %v8076_v0  ;;  %v5337_v18 = vpack.c.bf16 %v1337_v15, %v1336_v30  ;;  %v7051_v43 = vld [vmem:[#allocation2 + $0xda] sm:$0xff] }
 0x145   : > { %v1389_v30 = vld [vmem:[#allocation7 + $0x428] sm:$0xff] }
 0x146   : > { %1727 = vmatmul.mubr.f32.gmra.mrb[12].mxu0 %v6992_v7 }
 0x147   : > { %1731 = vmatprep.mubr.f32.mxu0 %v6863_v24  ;;  %5332 = vmatpush1.bf16.msra.mxu0 %v5331_v53  ;;  %v1339_v24 = vld [vmem:[#allocation7 + $0x298] sm:$0xff] }
 0x148   : > { %5333 = vmatprep.subr.bf16.mxu0 %v8076_v0  ;;  %v5340_v9 = vpack.c.bf16 %v1339_v24, %v1338_v32  ;;  %v1391_v32 = vld [vmem:[#allocation7 + $0x438] sm:$0xff] }
 0x14a   : > { %1732 = vmatmul.mubr.f32.gmra.mrb[14].mxu0 %v6997_v58 }
 0x14b   : > { %1736 = vmatprep.mubr.f32.mxu0 %v6868_v33  ;;  %5335 = vmatpush1.bf16.msra.mxu0 %v5334_v1  ;;  %v1341_v33 = vld [vmem:[#allocation7 + $0x2a8] sm:$0xff]  ;;  %v1388_v1 = vld [vmem:[#allocation7 + $0x420] sm:$0xff] }
 0x14c   : > { %5336 = vmatprep.subr.bf16.mxu0 %v8076_v0  ;;  %v5343_v12 = vpack.c.bf16 %v1341_v33, %v1340_v6  ;;  %v5416_v15 = vpack.c.bf16 %v1389_v30, %v1388_v1  ;;  %v1393_v6 = vld [vmem:[#allocation7 + $0x448] sm:$0xff]  ;;  %v1359_v1 = vld [vmem:[#allocation7 + $0x338] sm:$0xff] }
 0x14e   : > { %1737 = vmatmul.mubr.f32.gmra.mrb[16].mxu0 %v7002_v61 }
 0x14f   : > { %1741 = vmatprep.mubr.f32.mxu0 %v6873_v39  ;;  %5338 = vmatpush1.bf16.msra.mxu0 %v5337_v18  ;;  %v1343_v39 = vld [vmem:[#allocation7 + $0x2b8] sm:$0xff]  ;;  %v1390_v18 = vld [vmem:[#allocation7 + $0x430] sm:$0xff] }
 0x150   : > { %5339 = vmatprep.subr.bf16.mxu0 %v8076_v0  ;;  %v5346_v10 = vpack.c.bf16 %v1343_v39, %v1342_v13  ;;  %v5420_v24 = vpack.c.bf16 %v1391_v32, %v1390_v18  ;;  %v1395_v13 = vld [vmem:[#allocation7 + $0x458] sm:$0xff]  ;;  %v7097_v39 = vld [vmem:[#allocation2 + $0x180] sm:$0xff] }
 0x151   : > { %v6204_v18 = vld [vmem:[#allocation2 + $0x39] sm:$0xff] }
 0x152   : > { %1742 = vmatmul.mubr.f32.gmra.mrb[18].mxu0 %v7007_v19 }
 0x153   : > { %1746 = vmatprep.mubr.f32.mxu0 %v6878_v45  ;;  %5341 = vmatpush1.bf16.msra.mxu0 %v5340_v9  ;;  %v1345_v45 = vld [vmem:[#allocation7 + $0x2c8] sm:$0xff]  ;;  %v1392_v9 = vld [vmem:[#allocation7 + $0x440] sm:$0xff] }
 0x154   : > { %5342 = vmatprep.subr.bf16.mxu0 %v8076_v0  ;;  %v5349_v22 = vpack.c.bf16 %v1345_v45, %v1344_v16  ;;  %v5424_v33 = vpack.c.bf16 %v1393_v6, %v1392_v9  ;;  %v1396_v16 = vld [vmem:[#allocation7 + $0x460] sm:$0xff]  ;;  %v1397_v45 = vld [vmem:[#allocation7 + $0x468] sm:$0xff] }
 0x155   : > { %v6205_v9 = vld [vmem:[#allocation2 + $0x49] sm:$0xff] }
 0x156   : > { %1747 = vmatmul.mubr.f32.gmra.mrb[20].mxu0 %v7012_v20 }
 0x157   : > { %1751 = vmatprep.mubr.f32.mxu0 %v6883_v54  ;;  %5344 = vmatpush1.bf16.msra.mxu0 %v5343_v12  ;;  %v1347_v54 = vld [vmem:[#allocation7 + $0x2d8] sm:$0xff]  ;;  %v1394_v12 = vld [vmem:[#allocation7 + $0x450] sm:$0xff] }
 0x158   : > { %5345 = vmatprep.subr.bf16.mxu0 %v8076_v0  ;;  %v5352_v31 = vpack.c.bf16 %v1347_v54, %v1346_v46  ;;  %v7107_v46 = vld [vmem:[#allocation2 + $0x172] sm:$0xff]  ;;  %v1398_v54 = vld [vmem:[#allocation7 + $0x470] sm:$0xff] }
 0x15a   : > { %1752 = vmatmul.mubr.f32.gmra.mrb[22].mxu0 %v7017_v21 }
 0x15b   : > { %1756 = vmatprep.mubr.f32.mxu0 %v6888_v17  ;;  %5347 = vmatpush1.bf16.msra.mxu0 %v5346_v10  ;;  %v1349_v17 = vld [vmem:[#allocation7 + $0x2e8] sm:$0xff]  ;;  %v5428_v10 = vpack.c.bf16 %v1395_v13, %v1394_v12 }
 0x15c   : > { %5348 = vmatprep.subr.bf16.mxu0 %v8076_v0  ;;  %v5355_v59 = vpack.c.bf16 %v1349_v17, %v1348_v26  ;;  %v1352_v26 = vld [vmem:[#allocation7 + $0x300] sm:$0xff]  ;;  %v1353_v17 = vld [vmem:[#allocation7 + $0x308] sm:$0xff] }
 0x15d   : > { %v6206_v12 = vld [vmem:[#allocation2 + $0x51] sm:$0xff] }
 0x15e   : > { %1757 = vmatmul.mubr.f32.gmra.mrb[24].mxu0 %v7022_v14 }
 0x15f   : > { %1761 = vmatprep.mubr.f32.mxu0 %v6893_v63  ;;  %5350 = vmatpush1.bf16.msra.mxu0 %v5349_v22  ;;  %v1351_v63 = vld [vmem:[#allocation7 + $0x2f8] sm:$0xff] }
 0x160   : > { %5351 = vmatprep.subr.bf16.mxu0 %v8076_v0  ;;  %v5358_v40 = vpack.c.bf16 %v1351_v63, %v1350_v37  ;;  %v7103_v22 = vld [vmem:[#allocation2 + $0x188] sm:$0xff]  ;;  %v5361_v37 = vpack.c.bf16 %v1353_v17, %v1352_v26  ;;  %v1354_v63 = vld [vmem:[#allocation7 + $0x310] sm:$0xff] }
 0x161   : > { %v1370_v26 = vld [vmem:[#allocation7 + $0x390] sm:$0xff] }
 0x162   : > { %1762 = vmatmul.mubr.f32.gmra.mrb[26].mxu0 %v7027_v25  ;;  %v6209_v17 = vld [vmem:[#allocation2 + $0x79] sm:$0xff] }
 0x163   : > { %1766 = vmatprep.mubr.f32.mxu0 %v6898_v35  ;;  %5353 = vmatpush1.bf16.msra.mxu0 %v5352_v31  ;;  %v7042_v35 = vld [vmem:[#allocation2 + $0xc2] sm:$0xff] }
 0x164   : > { %5354 = vmatprep.subr.bf16.mxu0 %v8076_v0  ;;  %v1399_v31 = vld [vmem:[#allocation7 + $0x478] sm:$0xff] }
 0x166   : > { %1767 = vmatmul.mubr.f32.gmra.mrb[28].mxu0 %v7032_v34 }
 0x167   : > { %1771 = vmatprep.mubr.f32.mxu0 %v6903_v36  ;;  %5356 = vmatpush1.bf16.msra.mxu0 %v5355_v59  ;;  %v7047_v36 = vld [vmem:[#allocation2 + $0xca] sm:$0xff]  ;;  %v5436_v59 = vpack.c.bf16 %v1399_v31, %v1398_v54 }
 0x168   : > { %5357 = vmatprep.subr.bf16.mxu0 %v8076_v0  ;;  %v6208_v54 = vld [vmem:[#allocation2 + $0x69] sm:$0xff] }
 0x16a   : > { %1772 = vmatmul.mubr.f32.gmra.mrb[30].mxu0 %v7037_v27 }
 0x16b   : > { %1776 = vmatprep.mubr.f32.mxu0 %v6907_v4  ;;  %5359 = vmatpush1.bf16.msra.mxu0 %v5358_v40  ;;  %v7055_v4 = vld [vmem:[#allocation2 + $0xe2] sm:$0xff] }
 0x16c   : > { %5360 = vmatprep.subr.bf16.mxu0 %v8076_v0  ;;  %v1355_v40 = vld [vmem:[#allocation7 + $0x318] sm:$0xff] }
 0x16e   : > { %1777 = vmatmul.mubr.f32.gmra.mrb[32].mxu0 %v7042_v35 }
 0x16f   : > { %1781 = vmatprep.mubr.f32.mxu0 %v6911_v38  ;;  %v7063_v38 = vld [vmem:[#allocation2 + $0xfa] sm:$0xff] }
 0x172   : > { %1782 = vmatmul.mubr.f32.gmra.mrb[34].mxu0 %v7047_v36 }
 0x173   : > { %1786 = vmatprep.mubr.f32.mxu0 %v6915_v5  ;;  %v7067_v5 = vld [vmem:[#allocation2 + $0x10a] sm:$0xff] }
 0x176   : > { %1787 = vmatmul.mubr.f32.gmra.mrb[36].mxu0 %v7051_v43 }
 0x177   : > { %1791 = vmatprep.mubr.f32.mxu0 %v6919_v41  ;;  %v7071_v41 = vld [vmem:[#allocation2 + $0x112] sm:$0xff] }
 0x17a   : > { %1792 = vmatmul.mubr.f32.gmra.mrb[38].mxu0 %v7055_v4 }
 0x17b   : > { %1796 = vmatprep.mubr.f32.mxu0 %v6923_v42  ;;  %v7075_v42 = vld [vmem:[#allocation2 + $0x122] sm:$0xff] }
 0x17e   : > { %1797 = vmatmul.mubr.f32.gmra.mrb[40].mxu0 %v7059_v28 }
 0x17f   : > { %1801 = vmatprep.mubr.f32.mxu0 %v6927_v44  ;;  %v1384_v44 = vld [vmem:[#allocation7 + $0x400] sm:$0xff] }
 0x180   : > { %v5408_v53 = vpack.c.bf16 %v1385_v50, %v1384_v44  ;;  %v6201_v44 = vld [vmem:[#allocation2 + $0x19] sm:$0xff]  ;;  %v5364_v50 = vpack.c.bf16 %v1355_v40, %v1354_v63  ;;  %v6210_v63 = vld [vmem:[#allocation2 + $0x81] sm:$0xff] }
 0x182   : > { %1802 = vmatmul.mubr.f32.gmra.mrb[42].mxu0 %v7063_v38  ;;  %5409 = vmatprep.subr.bf16.mxu1 %v5408_v53 }
 0x183   : > { %1806 = vmatprep.mubr.f32.mxu0 %v6931_v47  ;;  %v7079_v47 = vld [vmem:[#allocation2 + $0x12a] sm:$0xff]  ;;  %5411 = vmatpush3.bf16.msra.mxu1 %v5408_v53 }
 0x184   : > { %v1356_v53 = vld [vmem:[#allocation7 + $0x320] sm:$0xff] }
 0x186   : > { %1807 = vmatmul.mubr.f32.gmra.mrb[44].mxu0 %v7067_v5 }
 0x187   : > { %1811 = vmatprep.mubr.f32.mxu0 %v6935_v48  ;;  %v1386_v48 = vld [vmem:[#allocation7 + $0x410] sm:$0xff] }
 0x188   : > { %v5412_v11 = vpack.c.bf16 %v1387_v29, %v1386_v48  ;;  %v1357_v48 = vld [vmem:[#allocation7 + $0x328] sm:$0xff] }
 0x189   : > { %v5367_v29 = vpack.c.bf16 %v1357_v48, %v1356_v53  ;;  %v1376_v48 = vld [vmem:[#allocation7 + $0x3c0] sm:$0xff] }
 0x18a   : > { %1812 = vmatmul.mubr.f32.gmra.mrb[46].mxu0 %v7071_v41  ;;  %5413 = vmatprep.subr.bf16.mxu1 %v5412_v11 }
 0x18b   : > { %1816 = vmatprep.mubr.f32.mxu0 %v6939_v49  ;;  %v7083_v49 = vld [vmem:[#allocation2 + $0x13a] sm:$0xff]  ;;  %5415 = vmatpush3.bf16.msra.mxu1 %v5412_v11 }
 0x18c   : > { %5417 = vmatprep.subr.bf16.mxu1 %v5416_v15  ;;  %v1358_v11 = vld [vmem:[#allocation7 + $0x330] sm:$0xff] }
 0x18d   : > { %v5370_v30 = vpack.c.bf16 %v1359_v1, %v1358_v11  ;;  %v1378_v11 = vld [vmem:[#allocation7 + $0x3d0] sm:$0xff]  ;;  %v6213_v1 = vld [vmem:[#allocation2 + $0xa9] sm:$0xff] }
 0x18e   : > { %1817 = vmatmul.mubr.f32.gmra.mrb[48].mxu0 %v7075_v42 }
 0x18f   : > { %1821 = vmatprep.mubr.f32.mxu0 %v6943_v51  ;;  %v7087_v51 = vld [vmem:[#allocation2 + $0x142] sm:$0xff]  ;;  %5419 = vmatpush3.bf16.msra.mxu1 %v5416_v15  ;;  %v1360_v15 = vld [vmem:[#allocation7 + $0x340] sm:$0xff] }
 0x190   : > { %5421 = vmatprep.subr.bf16.mxu1 %v5420_v24 }
 0x192   : > { %1822 = vmatmul.mubr.f32.gmra.mrb[50].mxu0 %v7079_v47 }
 0x193   : > { %1826 = vmatprep.mubr.f32.mxu0 %v6947_v52  ;;  %v7091_v52 = vld [vmem:[#allocation2 + $0x152] sm:$0xff]  ;;  %5423 = vmatpush3.bf16.msra.mxu1 %v5420_v24  ;;  %v1362_v24 = vld [vmem:[#allocation7 + $0x350] sm:$0xff] }
 0x194   : > { %5425 = vmatprep.subr.bf16.mxu1 %v5424_v33 }
 0x196   : > { %1827 = vmatmul.mubr.f32.gmra.mrb[52].mxu0 %v7083_v49 }
 0x197   : > { %1831 = vmatprep.mubr.f32.mxu0 %v6955_v56  ;;  %v7095_v56 = vld [vmem:[#allocation2 + $0x15a] sm:$0xff]  ;;  %5427 = vmatpush3.bf16.msra.mxu1 %v5424_v33  ;;  %v1364_v33 = vld [vmem:[#allocation7 + $0x360] sm:$0xff] }
 0x198   : > { %5429 = vmatprep.subr.bf16.mxu1 %v5428_v10 }
 0x19a   : > { %1832 = vmatmul.mubr.f32.gmra.mrb[54].mxu0 %v7087_v51 }
 0x19b   : > { %1836 = vmatprep.mubr.f32.mxu0 %v6963_v60  ;;  %v7101_v60 = vld [vmem:[#allocation2 + $0x16a] sm:$0xff]  ;;  %5431 = vmatpush3.bf16.msra.mxu1 %v5428_v10  ;;  %v1366_v10 = vld [vmem:[#allocation7 + $0x370] sm:$0xff] }
 0x19e   : > { %1837 = vmatmul.mubr.f32.gmra.mrb[56].mxu0 %v7091_v52 }
 0x19f   : > { %1841 = vmatprep.mubr.f32.mxu0 %v6967_v2  ;;  %v5432_v2 = vpack.c.bf16 %v1397_v45, %v1396_v16  ;;  %v6207_v16 = vld [vmem:[#allocation2 + $0x61] sm:$0xff] }
 0x1a1   : > { %5433 = vmatprep.subr.bf16.mxu1 %v5432_v2 }
 0x1a2   : > { %1842 = vmatmul.mubr.f32.gmra.mrb[58].mxu0 %v7095_v56  ;;  %5435 = vmatpush3.bf16.msra.mxu1 %v5432_v2  ;;  %v1368_v2 = vld [vmem:[#allocation7 + $0x380] sm:$0xff] }
 0x1a3   : > { %1846 = vmatprep.mubr.f32.mxu0 %v7097_v39  ;;  %5437 = vmatprep.subr.bf16.mxu1 %v5436_v59 }
 0x1a6   : > { %1847 = vmatmul.mubr.f32.gmra.mrb[60].mxu0 %v7101_v60  ;;  %5439 = vmatpush3.bf16.msra.mxu1 %v5436_v59 }
 0x1a7   : > { %1851 = vmatprep.mubr.f32.mxu0 %v7103_v22  ;;  %5440 = vmatprep.subr.bf16.mxu1 %v8076_v0 }
 0x1a9   : > { %5089 = vmatmul.mubr.f32.vlgmr.msra.gmra.mrb[0].mxu1 %v6987_v3 }
 0x1aa   : > { %1852 = vmatmul.mubr.f32.gmra.mrb[62].mxu0 %v7107_v46  ;;  %5091 = vmatprep.mubr.f32.mxu1 %v6992_v7 }
 0x1ab   : > { %1921 = vmatprep.mubr.f32.mxu0 %v6974_v23  ;;  %v6202_v23 = vld [vmem:[#allocation2 + $0x21] sm:$0xff] }
 0x1ad   : > { %5092 = vmatmul.mubr.f32.gmra.mrb[2].mxu1 %v6997_v58 }
 0x1ae   : > { %1922 = vmatmul.mubr.f32.vlgmr.msra.gmra.mrb[0].mxu0 %v6201_v44  ;;  %5094 = vmatprep.mubr.f32.mxu1 %v7002_v61  ;;  %v1374_v44 = vld [vmem:[#allocation7 + $0x3b0] sm:$0xff] }
 0x1af   : > { %5362 = vmatpush1.bf16.msra.mxu0 %v5361_v37  ;;  %1926 = vmatprep.mubr.f32.mxu0 %v6979_v57  ;;  %v6203_v57 = vld [vmem:[#allocation2 + $0x31] sm:$0xff] }
 0x1b0   : > { %5363 = vmatprep.subr.bf16.mxu0 %v8076_v0  ;;  %v1372_v37 = vld [vmem:[#allocation7 + $0x3a0] sm:$0xff] }
 0x1b1   : > { %5095 = vmatmul.mubr.f32.gmra.mrb[4].mxu1 %v7007_v19 }
 0x1b2   : > { %1927 = vmatmul.mubr.f32.gmra.mrb[2].mxu0 %v6202_v23  ;;  %5097 = vmatprep.mubr.f32.mxu1 %v7012_v20  ;;  %v6212_v23 = vld [vmem:[#allocation2 + $0x99] sm:$0xff] }
 0x1b3   : > { %1931 = vmatprep.mubr.f32.mxu0 %v6837_v62  ;;  %5365 = vmatpush1.bf16.msra.mxu0 %v5364_v50  ;;  %v1361_v62 = vld [vmem:[#allocation7 + $0x348] sm:$0xff] }
 0x1b4   : > { %5366 = vmatprep.subr.bf16.mxu0 %v8076_v0  ;;  %v5373_v32 = vpack.c.bf16 %v1361_v62, %v1360_v15  ;;  %v6211_v50 = vld [vmem:[#allocation2 + $0x91] sm:$0xff] }
 0x1b5   : > { %5098 = vmatmul.mubr.f32.gmra.mrb[6].mxu1 %v7017_v21  ;;  %v6214_v15 = vld [vmem:[#allocation2 + $0xb1] sm:$0xff] }
 0x1b6   : > { %1932 = vmatmul.mubr.f32.gmra.mrb[4].mxu0 %v6203_v57  ;;  %5100 = vmatprep.mubr.f32.mxu1 %v7022_v14 }
 0x1b7   : > { %1936 = vmatprep.mubr.f32.mxu0 %v6987_v3  ;;  %5368 = vmatpush1.bf16.msra.mxu0 %v5367_v29  ;;  %v1363_v3 = vld [vmem:[#allocation7 + $0x358] sm:$0xff] }
 0x1b8   : > { %5369 = vmatprep.subr.bf16.mxu0 %v8076_v0  ;;  %v5376_v6 = vpack.c.bf16 %v1363_v3, %v1362_v24  ;;  %v742_v24 = vld [vmem:[#allocation2 + $0x18a] sm:$0xff]  ;;  %v6215_v3 = vld [vmem:[#allocation2 + $0xc1] sm:$0xff] }
 0x1b9   : > { %5101 = vmatmul.mubr.f32.gmra.mrb[8].mxu1 %v7027_v25 }
 0x1ba   : > { %1937 = vmatmul.mubr.f32.gmra.mrb[6].mxu0 %v6204_v18  ;;  %5103 = vmatprep.mubr.f32.mxu1 %v7032_v34  ;;  %v741_v18 = vld [vmem:[#allocation2 + $0x182] sm:$0xff] }
 0x1bb   : > { %1941 = vmatprep.mubr.f32.mxu0 %v6992_v7  ;;  %5371 = vmatpush1.bf16.msra.mxu0 %v5370_v30  ;;  %v1365_v7 = vld [vmem:[#allocation7 + $0x368] sm:$0xff]  ;;  %v1380_v30 = vld [vmem:[#allocation7 + $0x3e0] sm:$0xff] }
 0x1bc   : > { %5372 = vmatprep.subr.bf16.mxu0 %v8076_v0  ;;  %v5379_v13 = vpack.c.bf16 %v1365_v7, %v1364_v33  ;;  %v6218_v33 = vld [vmem:[#allocation2 + $0xe1] sm:$0xff]  ;;  %v6219_v7 = vld [vmem:[#allocation2 + $0xf1] sm:$0xff] }
 0x1bd   : > { %5104 = vmatmul.mubr.f32.gmra.mrb[10].mxu1 %v7037_v27 }
 0x1be   : > { %1942 = vmatmul.mubr.f32.gmra.mrb[8].mxu0 %v6205_v9  ;;  %5106 = vmatprep.mubr.f32.mxu1 %v7042_v35 }
 0x1bf   : > { %1946 = vmatprep.mubr.f32.mxu0 %v6997_v58  ;;  %5374 = vmatpush1.bf16.msra.mxu0 %v5373_v32  ;;  %v1367_v58 = vld [vmem:[#allocation7 + $0x378] sm:$0xff] }
 0x1c0   : > { %5375 = vmatprep.subr.bf16.mxu0 %v8076_v0  ;;  %v5382_v45 = vpack.c.bf16 %v1367_v58, %v1366_v10  ;;  %v1383_v32 = vld [vmem:[#allocation7 + $0x3f8] sm:$0xff]  ;;  %v3461_v10 = vld [vmem:[#allocation9 + $0x8] sm:$0xff]  ;;  %v776_v58 = vld [vmem:[#allocation2 + $0x30] sm:$0xff] }
 0x1c1   : > { %5107 = vmatmul.mubr.f32.gmra.mrb[12].mxu1 %v7047_v36 }
 0x1c2   : > { %1947 = vmatmul.mubr.f32.gmra.mrb[10].mxu0 %v6206_v12  ;;  %5109 = vmatprep.mubr.f32.mxu1 %v7051_v43  ;;  %v6221_v12 = vld [vmem:[#allocation2 + $0x109] sm:$0xff] }
 0x1c3   : > { %1951 = vmatprep.mubr.f32.mxu0 %v7002_v61  ;;  %5377 = vmatpush1.bf16.msra.mxu0 %v5376_v6  ;;  %v1369_v61 = vld [vmem:[#allocation7 + $0x388] sm:$0xff]  ;;  %v6216_v6 = vld [vmem:[#allocation2 + $0xc9] sm:$0xff] }
 0x1c4   : > { %5378 = vmatprep.subr.bf16.mxu0 %v8076_v0  ;;  %v5385_v31 = vpack.c.bf16 %v1369_v61, %v1368_v2  ;;  %v3465_v61 = vld [vmem:[#allocation9 + $0x28] sm:$0xff] }
 0x1c5   : > { %5110 = vmatmul.mubr.f32.gmra.mrb[14].mxu1 %v7055_v4 }
 0x1c6   : > { %1952 = vmatmul.mubr.f32.gmra.mrb[12].mxu0 %v6207_v16  ;;  %5112 = vmatprep.mubr.f32.mxu1 %v7059_v28 }
 0x1c7   : > { %1956 = vmatprep.mubr.f32.mxu0 %v7007_v19  ;;  %5380 = vmatpush1.bf16.msra.mxu0 %v5379_v13  ;;  %v1371_v19 = vld [vmem:[#allocation7 + $0x398] sm:$0xff]  ;;  %v840_v13 = vld [vmem:[#allocation2 + $0x31] sm:$0xff] }
 0x1c8   : > { %5381 = vmatprep.subr.bf16.mxu0 %v8076_v0  ;;  %v5388_v59 = vpack.c.bf16 %v1371_v19, %v1370_v26  ;;  %v3466_v26 = vld [vmem:[#allocation9 + $0x30] sm:$0xff]  ;;  %v3467_v19 = vld [vmem:[#allocation9 + $0x38] sm:$0xff] }
 0x1c9   : > { %5113 = vmatmul.mubr.f32.gmra.mrb[16].mxu1 %v7063_v38 }
 0x1ca   : > { %1957 = vmatmul.mubr.f32.gmra.mrb[14].mxu0 %v6208_v54  ;;  %5115 = vmatprep.mubr.f32.mxu1 %v7067_v5  ;;  %v777_v54 = vld [vmem:[#allocation2 + $0x38] sm:$0xff] }
 0x1cb   : > { %1961 = vmatprep.mubr.f32.mxu0 %v7012_v20  ;;  %5383 = vmatpush1.bf16.msra.mxu0 %v5382_v45  ;;  %v1373_v20 = vld [vmem:[#allocation7 + $0x3a8] sm:$0xff] }
 0x1cc   : > { %5384 = vmatprep.subr.bf16.mxu0 %v8076_v0  ;;  %v5391_v40 = vpack.c.bf16 %v1373_v20, %v1372_v37  ;;  %v841_v45 = vld [vmem:[#allocation2 + $0x39] sm:$0xff]  ;;  %v843_v20 = vld [vmem:[#allocation2 + $0x51] sm:$0xff] }
 0x1cd   : > { %5116 = vmatmul.mubr.f32.gmra.mrb[18].mxu1 %v7071_v41  ;;  %v3589_v37 = vld [vmem:[#allocation9 + $0x408] sm:$0xff] }
 0x1ce   : > { %1962 = vmatmul.mubr.f32.gmra.mrb[16].mxu0 %v6209_v17  ;;  %5118 = vmatprep.mubr.f32.mxu1 %v7075_v42  ;;  %v3588_v17 = vld [vmem:[#allocation9 + $0x400] sm:$0xff] }
 0x1cf   : > { %1966 = vmatprep.mubr.f32.mxu0 %v7017_v21  ;;  %5386 = vmatpush1.bf16.msra.mxu0 %v5385_v31  ;;  %v1375_v21 = vld [vmem:[#allocation7 + $0x3b8] sm:$0xff] }
 0x1d0   : > { %5387 = vmatprep.subr.bf16.mxu0 %v8076_v0  ;;  %v5394_v53 = vpack.c.bf16 %v1375_v21, %v1374_v44  ;;  %v842_v31 = vld [vmem:[#allocation2 + $0x49] sm:$0xff]  ;;  %v3469_v21 = vld [vmem:[#allocation9 + $0x48] sm:$0xff] }
 0x1d1   : > { %5119 = vmatmul.mubr.f32.gmra.mrb[20].mxu1 %v7079_v47  ;;  %v3468_v44 = vld [vmem:[#allocation9 + $0x40] sm:$0xff] }
 0x1d2   : > { %1967 = vmatmul.mubr.f32.gmra.mrb[18].mxu0 %v6210_v63  ;;  %5121 = vmatprep.mubr.f32.mxu1 %v7083_v49  ;;  %v7187_v63 = vpack.c.bf16 %v3589_v37, %v3588_v17  ;;  %v856_v17 = vld [vmem:[#allocation2 + $0xf1] sm:$0xff]  ;;  %v857_v37 = vld [vmem:[#allocation2 + $0xf9] sm:$0xff] }
 0x1d3   : > { %1971 = vmatprep.mubr.f32.mxu0 %v7022_v14  ;;  %5389 = vmatpush1.bf16.msra.mxu0 %v5388_v59  ;;  %v1377_v14 = vld [vmem:[#allocation7 + $0x3c8] sm:$0xff]  ;;  %v778_v59 = vld [vmem:[#allocation2 + $0x48] sm:$0xff] }
 0x1d4   : > { %5390 = vmatprep.subr.bf16.mxu0 %v8076_v0  ;;  %v5397_v29 = vpack.c.bf16 %v1377_v14, %v1376_v48  ;;  %8118 = vst [vmem:[#allocation14_spill] sm:$0xff] %v7187_v63  ;;  %v5453_v48 = vpack.c.bf16 %v3469_v21, %v3468_v44  ;;  %v3470_v14 = vld [vmem:[#allocation9 + $0x50] sm:$0xff]  ;;  %v794_v44 = vld [vmem:[#allocation2 + $0x108] sm:$0xff]  ;;  %v859_v21 = vld [vmem:[#allocation2 + $0x111] sm:$0xff] }
 0x1d5   : > { %5122 = vmatmul.mubr.f32.gmra.mrb[22].mxu1 %v7087_v51 }
 0x1d6   : > { %1972 = vmatmul.mubr.f32.gmra.mrb[20].mxu0 %v6211_v50  ;;  %5124 = vmatprep.mubr.f32.mxu1 %v7091_v52  ;;  %v779_v50 = vld [vmem:[#allocation2 + $0x50] sm:$0xff] }
 0x1d7   : > { %1976 = vmatprep.mubr.f32.mxu0 %v7027_v25  ;;  %5392 = vmatpush1.bf16.msra.mxu0 %v5391_v40  ;;  %v1379_v25 = vld [vmem:[#allocation7 + $0x3d8] sm:$0xff]  ;;  %v5450_v40 = vpack.c.bf16 %v3467_v19, %v3466_v26  ;;  %v791_v19 = vld [vmem:[#allocation2 + $0xe0] sm:$0xff] }
 0x1d8   : > { %5393 = vmatprep.subr.bf16.mxu0 %v8076_v0  ;;  %v5400_v57 = vpack.c.bf16 %v1379_v25, %v1378_v11  ;;  %v845_v11 = vld [vmem:[#allocation2 + $0x69] sm:$0xff]  ;;  %v855_v26 = vld [vmem:[#allocation2 + $0xe1] sm:$0xff] }
 0x1d9   : > { %5125 = vmatmul.mubr.f32.gmra.mrb[24].mxu1 %v7095_v56 }
 0x1da   : > { %1977 = vmatmul.mubr.f32.gmra.mrb[22].mxu0 %v6212_v23  ;;  %5127 = vmatprep.mubr.f32.mxu1 %v7101_v60  ;;  %v3471_v23 = vld [vmem:[#allocation9 + $0x58] sm:$0xff] }
 0x1db   : > { %1981 = vmatprep.mubr.f32.mxu0 %v7032_v34  ;;  %5395 = vmatpush1.bf16.msra.mxu0 %v5394_v53  ;;  %v1381_v34 = vld [vmem:[#allocation7 + $0x3e8] sm:$0xff]  ;;  %v844_v53 = vld [vmem:[#allocation2 + $0x61] sm:$0xff]  ;;  %v5456_v25 = vpack.c.bf16 %v3471_v23, %v3470_v14 }
 0x1dc   : > { %5396 = vmatprep.subr.bf16.mxu0 %v8076_v0  ;;  %v5403_v62 = vpack.c.bf16 %v1381_v34, %v1380_v30  ;;  %v781_v30 = vld [vmem:[#allocation2 + $0x68] sm:$0xff]  ;;  %v846_v34 = vld [vmem:[#allocation2 + $0x79] sm:$0xff] }
 0x1dd   : > { %5128 = vmatmul.mubr.f32.gmra.mrb[26].mxu1 %v7107_v46  ;;  %v3489_v14 = vld [vmem:[#allocation9 + $0xe8] sm:$0xff] }
 0x1de   : > { %1982 = vmatmul.mubr.f32.gmra.mrb[24].mxu0 %v6213_v1  ;;  %5130 = vmatprep.mubr.f32.mxu1 %v741_v18  ;;  %v3472_v1 = vld [vmem:[#allocation9 + $0x60] sm:$0xff] }
 0x1df   : > { %1986 = vmatprep.mubr.f32.mxu0 %v7037_v27  ;;  %5398 = vmatpush1.bf16.msra.mxu0 %v5397_v29  ;;  %v1382_v27 = vld [vmem:[#allocation7 + $0x3f0] sm:$0xff] }
 0x1e0   : > { %5399 = vmatprep.subr.bf16.mxu0 %v8076_v0  ;;  %v5406_v9 = vpack.c.bf16 %v1383_v32, %v1382_v27  ;;  %v780_v29 = vld [vmem:[#allocation2 + $0x60] sm:$0xff]  ;;  %v782_v27 = vld [vmem:[#allocation2 + $0x78] sm:$0xff] }
 0x1e1   : > { %5131 = vmatmul.mubr.f32.gmra.mrb[28].mxu1 %v742_v24  ;;  %v847_v32 = vld [vmem:[#allocation2 + $0x81] sm:$0xff] }
 0x1e2   : > { %1987 = vmatmul.mubr.f32.gmra.mrb[26].mxu0 %v6214_v15 }
 0x1e3   : > { %1991 = vmatprep.mubr.f32.mxu0 %v7042_v35  ;;  %5401 = vmatpush1.bf16.msra.mxu0 %v5400_v57  ;;  %v6217_v35 = vld [vmem:[#allocation2 + $0xd9] sm:$0xff] }
 0x1e4   : > { %5402 = vmatprep.subr.bf16.mxu0 %v8076_v0  ;;  %v3473_v57 = vld [vmem:[#allocation9 + $0x68] sm:$0xff] }
 0x1e5   : > { %v5459_v15 = vpack.c.bf16 %v3473_v57, %v3472_v1  ;;  %v3491_v1 = vld [vmem:[#allocation9 + $0xf8] sm:$0xff]  ;;  %v3590_v57 = vld [vmem:[#allocation9 + $0x410] sm:$0xff] }
 0x1e6   : > { %1992 = vmatmul.mubr.f32.gmra.mrb[28].mxu0 %v6215_v3  ;;  %v3476_v3 = vld [vmem:[#allocation9 + $0x80] sm:$0xff] }
 0x1e7   : > { %1996 = vmatprep.mubr.f32.mxu0 %v7047_v36  ;;  %5404 = vmatpush1.bf16.msra.mxu0 %v5403_v62  ;;  %v6220_v36 = vld [vmem:[#allocation2 + $0xf9] sm:$0xff] }
 0x1e8   : > { %5405 = vmatprep.subr.bf16.mxu0 %v8076_v0  ;;  %v3474_v62 = vld [vmem:[#allocation9 + $0x70] sm:$0xff] }
 0x1ea   : > { %1997 = vmatmul.mubr.f32.gmra.mrb[30].mxu0 %v6216_v6  ;;  %v783_v6 = vld [vmem:[#allocation2 + $0x80] sm:$0xff] }
 0x1eb   : > { %2001 = vmatprep.mubr.f32.mxu0 %v7051_v43  ;;  %5407 = vmatpush1.bf16.msra.mxu0 %v5406_v9  ;;  %v6222_v43 = vld [vmem:[#allocation2 + $0x111] sm:$0xff] }
 0x1ec   : > { %5633 = vmatprep.subr.bf16.mxu0 %v7187_v63  ;;  %v3477_v9 = vld [vmem:[#allocation9 + $0x88] sm:$0xff] }
 0x1ee   : > { %2002 = vmatmul.mubr.f32.gmra.mrb[32].mxu0 %v6217_v35  ;;  %v848_v35 = vld [vmem:[#allocation2 + $0x91] sm:$0xff] }
 0x1ef   : > { %2006 = vmatprep.mubr.f32.mxu0 %v7055_v4  ;;  %v6223_v4 = vld [vmem:[#allocation2 + $0x121] sm:$0xff] }
 0x1f2   : > { %2007 = vmatmul.mubr.f32.gmra.mrb[34].mxu0 %v6218_v33  ;;  %v5465_v33 = vpack.c.bf16 %v3477_v9, %v3476_v3  ;;  %v3592_v3 = vld [vmem:[#allocation9 + $0x420] sm:$0xff]  ;;  %v3593_v9 = vld [vmem:[#allocation9 + $0x428] sm:$0xff] }
 0x1f3   : > { %2011 = vmatprep.mubr.f32.mxu0 %v7059_v28  ;;  %v6224_v28 = vld [vmem:[#allocation2 + $0x129] sm:$0xff] }
 0x1f6   : > { %2012 = vmatmul.mubr.f32.gmra.mrb[36].mxu0 %v6219_v7  ;;  %v3478_v7 = vld [vmem:[#allocation9 + $0x90] sm:$0xff] }
 0x1f7   : > { %2016 = vmatprep.mubr.f32.mxu0 %v7063_v38  ;;  %v6225_v38 = vld [vmem:[#allocation2 + $0x139] sm:$0xff] }
 0x1fa   : > { %2017 = vmatmul.mubr.f32.gmra.mrb[38].mxu0 %v6220_v36  ;;  %v3479_v36 = vld [vmem:[#allocation9 + $0x98] sm:$0xff] }
 0x1fb   : > { %2021 = vmatprep.mubr.f32.mxu0 %v7067_v5  ;;  %v6226_v5 = vld [vmem:[#allocation2 + $0x141] sm:$0xff] }
 0x1fe   : > { %2022 = vmatmul.mubr.f32.gmra.mrb[40].mxu0 %v6221_v12  ;;  %v784_v12 = vld [vmem:[#allocation2 + $0x90] sm:$0xff] }
 0x1ff   : > { %2026 = vmatprep.mubr.f32.mxu0 %v7071_v41  ;;  %v6227_v41 = vld [vmem:[#allocation2 + $0x151] sm:$0xff] }
 0x202   : > { %2027 = vmatmul.mubr.f32.gmra.mrb[42].mxu0 %v6222_v43  ;;  %v849_v43 = vld [vmem:[#allocation2 + $0x99] sm:$0xff] }
 0x203   : > { %2031 = vmatprep.mubr.f32.mxu0 %v7075_v42  ;;  %v6228_v42 = vld [vmem:[#allocation2 + $0x159] sm:$0xff] }
 0x206   : > { %2032 = vmatmul.mubr.f32.gmra.mrb[44].mxu0 %v6223_v4  ;;  %v5468_v4 = vpack.c.bf16 %v3479_v36, %v3478_v7  ;;  %v7215_v7 = vld [vmem:[#allocation2] sm:$0xff]  ;;  %v2661_v36 = vld [vmem:[#allocation2 + $0x9] sm:$0xff] }
 0x207   : > { %2036 = vmatprep.mubr.f32.mxu0 %v7079_v47  ;;  %v6229_v47 = vld [vmem:[#allocation2 + $0x169] sm:$0xff] }
 0x20a   : > { %2037 = vmatmul.mubr.f32.gmra.mrb[46].mxu0 %v6224_v28  ;;  %v3480_v28 = vld [vmem:[#allocation9 + $0xa0] sm:$0xff] }
 0x20b   : > { %2041 = vmatprep.mubr.f32.mxu0 %v7083_v49  ;;  %v6230_v49 = vld [vmem:[#allocation2 + $0x171] sm:$0xff] }
 0x20e   : > { %2042 = vmatmul.mubr.f32.gmra.mrb[48].mxu0 %v6225_v38  ;;  %v3481_v38 = vld [vmem:[#allocation9 + $0xa8] sm:$0xff] }
 0x20f   : > { %2046 = vmatprep.mubr.f32.mxu0 %v7087_v51  ;;  %v934_v51 = vld [vmem:[#allocation2 + $0x19a] sm:$0xff] }
 0x210   : > { %5133 = vmatprep.mubr.f32.mxu1 %v934_v51  ;;  %v786_v51 = vld [vmem:[#allocation2 + $0xa8] sm:$0xff] }
 0x212   : > { %2047 = vmatmul.mubr.f32.gmra.mrb[50].mxu0 %v6226_v5  ;;  %v785_v5 = vld [vmem:[#allocation2 + $0x98] sm:$0xff] }
 0x213   : > { %2051 = vmatprep.mubr.f32.mxu0 %v7091_v52  ;;  %v935_v52 = vld [vmem:[#allocation2 + $0x1a2] sm:$0xff] }
 0x214   : > { %5134 = vmatmul.mubr.f32.gmra.mrb[30].mxu1 %v935_v52  ;;  %v851_v52 = vld [vmem:[#allocation2 + $0xb1] sm:$0xff] }
 0x216   : > { %2052 = vmatmul.mubr.f32.gmra.mrb[52].mxu0 %v6227_v41  ;;  %v850_v41 = vld [vmem:[#allocation2 + $0xa9] sm:$0xff] }
 0x217   : > { %2056 = vmatprep.mubr.f32.mxu0 %v7095_v56  ;;  %v3460_v56 = vld [vmem:[#allocation9] sm:$0xff] }
 0x218   : > { %v5441_v16 = vpack.c.bf16 %v3461_v10, %v3460_v56  ;;  %v3484_v56 = vld [vmem:[#allocation9 + $0xc0] sm:$0xff]  ;;  %v3485_v10 = vld [vmem:[#allocation9 + $0xc8] sm:$0xff] }
 0x21a   : > { %2057 = vmatmul.mubr.f32.gmra.mrb[54].mxu0 %v6228_v42  ;;  %5442 = vmatpush1.bf16.msra.mxu1 %v5441_v16  ;;  %v5471_v42 = vpack.c.bf16 %v3481_v38, %v3480_v28  ;;  %v5477_v16 = vpack.c.bf16 %v3485_v10, %v3484_v56  ;;  %v864_v38 = vld [vmem:[#allocation2 + $0x151] sm:$0xff] }
 0x21b   : > { %2061 = vmatprep.mubr.f32.mxu0 %v7101_v60  ;;  %v3462_v60 = vld [vmem:[#allocation9 + $0x10] sm:$0xff]  ;;  %5443 = vmatprep.subr.bf16.mxu1 %v8076_v0  ;;  %v3493_v56 = vld [vmem:[#allocation9 + $0x108] sm:$0xff] }
 0x21e   : > { %2062 = vmatmul.mubr.f32.gmra.mrb[56].mxu0 %v6229_v47  ;;  %v3482_v47 = vld [vmem:[#allocation9 + $0xb0] sm:$0xff] }
 0x21f   : > { %2066 = vmatprep.mubr.f32.mxu0 %v7107_v46  ;;  %v3463_v46 = vld [vmem:[#allocation9 + $0x18] sm:$0xff] }
 0x220   : > { %v5444_v2 = vpack.c.bf16 %v3463_v46, %v3462_v60  ;;  %v787_v60 = vld [vmem:[#allocation2 + $0xb0] sm:$0xff]  ;;  %v3486_v46 = vld [vmem:[#allocation9 + $0xd0] sm:$0xff] }
 0x222   : > { %2067 = vmatmul.mubr.f32.gmra.mrb[58].mxu0 %v6230_v49  ;;  %5445 = vmatpush1.bf16.msra.mxu1 %v5444_v2  ;;  %v3483_v49 = vld [vmem:[#allocation9 + $0xb8] sm:$0xff]  ;;  %v788_v2 = vld [vmem:[#allocation2 + $0xc0] sm:$0xff] }
 0x223   : > { %2071 = vmatprep.mubr.f32.mxu0 %v741_v18  ;;  %5446 = vmatprep.subr.bf16.mxu1 %v8076_v0  ;;  %v3475_v18 = vld [vmem:[#allocation9 + $0x78] sm:$0xff] }
 0x226   : > { %2072 = vmatmul.mubr.f32.gmra.mrb[60].mxu0 %v6950_v55  ;;  %v3464_v55 = vld [vmem:[#allocation9 + $0x20] sm:$0xff] }
 0x227   : > { %2076 = vmatprep.mubr.f32.mxu0 %v742_v24  ;;  %v5462_v24 = vpack.c.bf16 %v3475_v18, %v3474_v62  ;;  %v862_v18 = vld [vmem:[#allocation2 + $0x139] sm:$0xff] }
 0x22a   : > { %2077 = vmatmul.mubr.f32.gmra.mrb[62].mxu0 %v6958_v8  ;;  %v5447_v8 = vpack.c.bf16 %v3465_v61, %v3464_v55  ;;  %v853_v55 = vld [vmem:[#allocation2 + $0xc9] sm:$0xff] }
 0x22b   : > { %2146 = vmatprep.mubr.f32.mxu0 %v840_v13  ;;  %v5474_v13 = vpack.c.bf16 %v3483_v49, %v3482_v47  ;;  %v3597_v47 = vld [vmem:[#allocation9 + $0x448] sm:$0xff]  ;;  %v800_v49 = vld [vmem:[#allocation2 + $0x150] sm:$0xff] }
 0x22c   : > { %5448 = vmatpush1.bf16.msra.mxu1 %v5447_v8  ;;  %v790_v8 = vld [vmem:[#allocation2 + $0xd8] sm:$0xff] }
 0x22d   : > { %5449 = vmatprep.subr.bf16.mxu1 %v8076_v0 }
 0x22e   : > { %2147 = vmatmul.mubr.f32.vlgmr.msra.gmra.mrb[0].mxu0 %v776_v58  ;;  %v852_v58 = vld [vmem:[#allocation2 + $0xc1] sm:$0xff] }
 0x22f   : > { %2151 = vmatprep.mubr.f32.mxu0 %v841_v45  ;;  %5635 = vmatpush3.bf16.msra.mxu0 %v7187_v63  ;;  %v3487_v45 = vld [vmem:[#allocation9 + $0xd8] sm:$0xff] }
 0x230   : > { %5451 = vmatpush1.bf16.msra.mxu1 %v5450_v40  ;;  %v5480_v61 = vpack.c.bf16 %v3487_v45, %v3486_v46  ;;  %v858_v40 = vld [vmem:[#allocation2 + $0x109] sm:$0xff] }
 0x231   : > { %5452 = vmatprep.subr.bf16.mxu1 %v8076_v0  ;;  %v866_v45 = vld [vmem:[#allocation2 + $0x169] sm:$0xff] }
 0x232   : > { %2152 = vmatmul.mubr.f32.gmra.mrb[2].mxu0 %v777_v54  ;;  %v789_v54 = vld [vmem:[#allocation2 + $0xc8] sm:$0xff] }
 0x233   : > { %2156 = vmatprep.mubr.f32.mxu0 %v842_v31  ;;  %v854_v31 = vld [vmem:[#allocation2 + $0xd9] sm:$0xff] }
 0x234   : > { %5454 = vmatpush1.bf16.msra.mxu1 %v5453_v48  ;;  %v3488_v48 = vld [vmem:[#allocation9 + $0xe0] sm:$0xff] }
 0x235   : > { %5455 = vmatprep.subr.bf16.mxu1 %v8076_v0  ;;  %v5483_v23 = vpack.c.bf16 %v3489_v14, %v3488_v48  ;;  %v3496_v48 = vld [vmem:[#allocation9 + $0x120] sm:$0xff]  ;;  %v3497_v14 = vld [vmem:[#allocation9 + $0x128] sm:$0xff] }
 0x236   : > { %2157 = vmatmul.mubr.f32.gmra.mrb[4].mxu0 %v778_v59  ;;  %v792_v59 = vld [vmem:[#allocation2 + $0xf0] sm:$0xff] }
 0x237   : > { %2161 = vmatprep.mubr.f32.mxu0 %v843_v20  ;;  %v793_v20 = vld [vmem:[#allocation2 + $0xf8] sm:$0xff] }
 0x238   : > { %5457 = vmatpush1.bf16.msra.mxu1 %v5456_v25  ;;  %v3490_v25 = vld [vmem:[#allocation9 + $0xf0] sm:$0xff] }
 0x239   : > { %5458 = vmatprep.subr.bf16.mxu1 %v8076_v0 }
 0x23a   : > { %2162 = vmatmul.mubr.f32.gmra.mrb[6].mxu0 %v779_v50  ;;  %v795_v50 = vld [vmem:[#allocation2 + $0x110] sm:$0xff] }
 0x23b   : > { %2166 = vmatprep.mubr.f32.mxu0 %v844_v53  ;;  %v860_v53 = vld [vmem:[#allocation2 + $0x121] sm:$0xff] }
 0x23c   : > { %5460 = vmatpush1.bf16.msra.mxu1 %v5459_v15  ;;  %v797_v15 = vld [vmem:[#allocation2 + $0x128] sm:$0xff] }
 0x23d   : > { %5461 = vmatprep.subr.bf16.mxu1 %v8076_v0 }
 0x23e   : > { %2167 = vmatmul.mubr.f32.gmra.mrb[8].mxu0 %v780_v29  ;;  %v796_v29 = vld [vmem:[#allocation2 + $0x120] sm:$0xff] }
 0x23f   : > { %2171 = vmatprep.mubr.f32.mxu0 %v845_v11  ;;  %v861_v11 = vld [vmem:[#allocation2 + $0x129] sm:$0xff] }
 0x240   : > { %5463 = vmatpush1.bf16.msra.mxu1 %v5462_v24 }
 0x241   : > { %5464 = vmatprep.subr.bf16.mxu1 %v8076_v0 }
 0x242   : > { %2172 = vmatmul.mubr.f32.gmra.mrb[10].mxu0 %v781_v30  ;;  %v3591_v30 = vld [vmem:[#allocation9 + $0x418] sm:$0xff] }
 0x243   : > { %2176 = vmatprep.mubr.f32.mxu0 %v846_v34  ;;  %v5486_v34 = vpack.c.bf16 %v3491_v1, %v3490_v25  ;;  %v7204_v62 = vpack.c.bf16 %v3591_v30, %v3590_v57  ;;  %v871_v57 = vld [vmem:[#allocation2 + $0x1a1] sm:$0xff] }
 0x244   : > { %5466 = vmatpush1.bf16.msra.mxu1 %v5465_v33  ;;  %v863_v33 = vld [vmem:[#allocation2 + $0x141] sm:$0xff] }
 0x245   : > { %5467 = vmatprep.subr.bf16.mxu1 %v8076_v0  ;;  %8119 = vst [vmem:[#allocation15_spill] sm:$0xff] %v7204_v62  ;;  %5637 = vmatprep.subr.bf16.mxu0 %v7204_v62  ;;  %v3498_v30 = vld [vmem:[#allocation9 + $0x130] sm:$0xff] }
 0x246   : > { %2177 = vmatmul.mubr.f32.gmra.mrb[12].mxu0 %v782_v27 }
 0x247   : > { %2181 = vmatprep.mubr.f32.mxu0 %v847_v32  ;;  %v2660_v32 = vld [vmem:[#allocation2 + $0x1] sm:$0xff]  ;;  %5639 = vmatpush3.bf16.msra.mxu0 %v7204_v62 }
 0x248   : > { %5469 = vmatpush1.bf16.msra.mxu1 %v5468_v4  ;;  %3675 = vmatprep.mubr.f32.mxu1 %v2660_v32  ;;  %v799_v4 = vld [vmem:[#allocation2 + $0x140] sm:$0xff]  ;;  %v3501_v32 = vld [vmem:[#allocation9 + $0x148] sm:$0xff] }
 0x249   : > { %5470 = vmatprep.subr.bf16.mxu1 %v8076_v0 }
 0x24a   : > { %2182 = vmatmul.mubr.f32.gmra.mrb[14].mxu0 %v783_v6  ;;  %v798_v6 = vld [vmem:[#allocation2 + $0x138] sm:$0xff] }
 0x24b   : > { %2186 = vmatprep.mubr.f32.mxu0 %v848_v35  ;;  %v7213_v35 = vpack.c.bf16 %v3593_v9, %v3592_v3 }
 0x24c   : > { %5472 = vmatpush1.bf16.msra.mxu1 %v5471_v42  ;;  %v3596_v42 = vld [vmem:[#allocation9 + $0x440] sm:$0xff] }
 0x24d   : > { %5473 = vmatprep.subr.bf16.mxu1 %v8076_v0  ;;  %8120 = vst [vmem:[#allocation16_spill] sm:$0xff] %v7213_v35  ;;  %5641 = vmatprep.subr.bf16.mxu0 %v7213_v35 }
 0x24e   : > { %2187 = vmatmul.mubr.f32.gmra.mrb[16].mxu0 %v784_v12  ;;  %v3594_v12 = vld [vmem:[#allocation9 + $0x430] sm:$0xff] }
 0x24f   : > { %2191 = vmatprep.mubr.f32.mxu0 %v849_v43  ;;  %v3595_v43 = vld [vmem:[#allocation9 + $0x438] sm:$0xff]  ;;  %5643 = vmatpush3.bf16.msra.mxu0 %v7213_v35 }
 0x250   : > { %5475 = vmatpush1.bf16.msra.mxu1 %v5474_v13  ;;  %v7220_v28 = vpack.c.bf16 %v3595_v43, %v3594_v12  ;;  %v3492_v13 = vld [vmem:[#allocation9 + $0x100] sm:$0xff] }
 0x251   : > { %5476 = vmatprep.subr.bf16.mxu1 %v8076_v0  ;;  %v5489_v10 = vpack.c.bf16 %v3493_v56, %v3492_v13  ;;  %v3507_v13 = vld [vmem:[#allocation9 + $0x178] sm:$0xff] }
 0x252   : > { %2192 = vmatmul.mubr.f32.gmra.mrb[18].mxu0 %v785_v5  ;;  %8121 = vst [vmem:[#allocation17_spill] sm:$0xff] %v7220_v28  ;;  %5645 = vmatprep.subr.bf16.mxu0 %v7220_v28 }
 0x253   : > { %2196 = vmatprep.mubr.f32.mxu0 %v850_v41  ;;  %5647 = vmatpush3.bf16.msra.mxu0 %v7220_v28 }
 0x254   : > { %5478 = vmatpush1.bf16.msra.mxu1 %v5477_v16  ;;  %v801_v16 = vld [vmem:[#allocation2 + $0x158] sm:$0xff] }
 0x255   : > { %5479 = vmatprep.subr.bf16.mxu1 %v8076_v0 }
 0x256   : > { %2197 = vmatmul.mubr.f32.gmra.mrb[20].mxu0 %v786_v51  ;;  %v7229_v51 = vpack.c.bf16 %v3597_v47, %v3596_v42 }
 0x257   : > { %2201 = vmatprep.mubr.f32.mxu0 %v851_v52  ;;  %v865_v52 = vld [vmem:[#allocation2 + $0x159] sm:$0xff] }
 0x258   : > { %5481 = vmatpush1.bf16.msra.mxu1 %v5480_v61  ;;  %8122 = vst [vmem:[#allocation18_spill] sm:$0xff] %v7229_v51  ;;  %5649 = vmatprep.subr.bf16.mxu0 %v7229_v51  ;;  %v3600_v61 = vld [vmem:[#allocation9 + $0x460] sm:$0xff] }
 0x259   : > { %5482 = vmatprep.subr.bf16.mxu1 %v8076_v0  ;;  %5651 = vmatpush3.bf16.msra.mxu0 %v7229_v51 }
 0x25a   : > { %2202 = vmatmul.mubr.f32.gmra.mrb[22].mxu0 %v787_v60  ;;  %v3598_v60 = vld [vmem:[#allocation9 + $0x450] sm:$0xff] }
 0x25b   : > { %2206 = vmatprep.mubr.f32.mxu0 %v852_v58  ;;  %v3599_v58 = vld [vmem:[#allocation9 + $0x458] sm:$0xff] }
 0x25c   : > { %5484 = vmatpush1.bf16.msra.mxu1 %v5483_v23  ;;  %v7232_v46 = vpack.c.bf16 %v3599_v58, %v3598_v60  ;;  %v5495_v23 = vpack.c.bf16 %v3497_v14, %v3496_v48  ;;  %v3508_v58 = vld [vmem:[#allocation9 + $0x180] sm:$0xff]  ;;  %v3514_v14 = vld [vmem:[#allocation9 + $0x1b0] sm:$0xff] }
 0x25d   : > { %5485 = vmatprep.subr.bf16.mxu1 %v8076_v0 }
 0x25e   : > { %2207 = vmatmul.mubr.f32.gmra.mrb[24].mxu0 %v788_v2  ;;  %8123 = vst [vmem:[#allocation19_spill] sm:$0xff] %v7232_v46  ;;  %5653 = vmatprep.subr.bf16.mxu0 %v7232_v46 }
 0x25f   : > { %2211 = vmatprep.mubr.f32.mxu0 %v853_v55  ;;  %5655 = vmatpush3.bf16.msra.mxu0 %v7232_v46 }
 0x260   : > { %5487 = vmatpush1.bf16.msra.mxu1 %v5486_v34  ;;  %v3499_v34 = vld [vmem:[#allocation9 + $0x138] sm:$0xff] }
 0x261   : > { %5488 = vmatprep.subr.bf16.mxu1 %v8076_v0 }
 0x262   : > { %2212 = vmatmul.mubr.f32.gmra.mrb[26].mxu0 %v789_v54  ;;  %v3601_v54 = vld [vmem:[#allocation9 + $0x468] sm:$0xff] }
 0x263   : > { %2216 = vmatprep.mubr.f32.mxu0 %v854_v31  ;;  %3676 = vmatmul.mubr.f32.vlgmr.msra.gmra.mrb[32].mxu1 %v7215_v7  ;;  %v802_v31 = vld [vmem:[#allocation2 + $0x168] sm:$0xff] }
 0x264   : > { %3680 = vmatprep.mubr.f32.mxu1 %v2661_v36  ;;  %5490 = vmatpush1.bf16.msra.mxu1 %v5489_v10  ;;  %v3503_v36 = vld [vmem:[#allocation9 + $0x158] sm:$0xff] }
 0x265   : > { %5491 = vmatprep.subr.bf16.mxu1 %v8076_v0 }
 0x266   : > { %2217 = vmatmul.mubr.f32.gmra.mrb[28].mxu0 %v790_v8  ;;  %v7241_v8 = vpack.c.bf16 %v3601_v54, %v3600_v61 }
 0x267   : > { %2221 = vmatprep.mubr.f32.mxu0 %v855_v26  ;;  %3681 = vmatmul.mubr.f32.gmra.mrb[34].mxu1 %v7215_v7  ;;  %v867_v26 = vld [vmem:[#allocation2 + $0x171] sm:$0xff] }
 0x268   : > { %8124 = vst [vmem:[#allocation20_spill] sm:$0xff] %v7241_v8  ;;  %5657 = vmatprep.subr.bf16.mxu0 %v7241_v8 }
 0x269   : > { %5659 = vmatpush3.bf16.msra.mxu0 %v7241_v8 }
 0x26a   : > { %2222 = vmatmul.mubr.f32.gmra.mrb[30].mxu0 %v791_v19  ;;  %v3494_v19 = vld [vmem:[#allocation9 + $0x110] sm:$0xff] }
 0x26b   : > { %2226 = vmatprep.mubr.f32.mxu0 %v856_v17  ;;  %v3495_v17 = vld [vmem:[#allocation9 + $0x118] sm:$0xff] }
 0x26e   : > { %2227 = vmatmul.mubr.f32.gmra.mrb[32].mxu0 %v792_v59  ;;  %v5492_v59 = vpack.c.bf16 %v3495_v17, %v3494_v19 }
 0x26f   : > { %2231 = vmatprep.mubr.f32.mxu0 %v857_v37  ;;  %v3602_v37 = vld [vmem:[#allocation9 + $0x470] sm:$0xff] }
 0x270   : > { %5493 = vmatpush1.bf16.msra.mxu1 %v5492_v59 }
 0x271   : > { %5494 = vmatprep.subr.bf16.mxu1 %v8076_v0 }
 0x272   : > { %2232 = vmatmul.mubr.f32.gmra.mrb[34].mxu0 %v793_v20  ;;  %v3603_v20 = vld [vmem:[#allocation9 + $0x478] sm:$0xff] }
 0x273   : > { %2236 = vmatprep.mubr.f32.mxu0 %v858_v40  ;;  %v803_v40 = vld [vmem:[#allocation2 + $0x170] sm:$0xff] }
 0x274   : > { %5496 = vmatpush1.bf16.msra.mxu1 %v5495_v23  ;;  %v3515_v23 = vld [vmem:[#allocation9 + $0x1b8] sm:$0xff] }
 0x275   : > { %5497 = vmatprep.subr.bf16.mxu1 %v8076_v0 }
 0x276   : > { %2237 = vmatmul.mubr.f32.gmra.mrb[36].mxu0 %v794_v44  ;;  %v7245_v44 = vpack.c.bf16 %v3603_v20, %v3602_v37  ;;  %v3512_v37 = vld [vmem:[#allocation9 + $0x1a0] sm:$0xff]  ;;  %v3513_v20 = vld [vmem:[#allocation9 + $0x1a8] sm:$0xff] }
 0x277   : > { %2241 = vmatprep.mubr.f32.mxu0 %v859_v21 }
 0x278   : > { %8125 = vst [vmem:[#allocation21_spill] sm:$0xff] %v7245_v44  ;;  %5661 = vmatprep.subr.bf16.mxu0 %v7245_v44 }
 0x279   : > { %5663 = vmatpush3.bf16.msra.mxu0 %v7245_v44 }
 0x27a   : > { %2242 = vmatmul.mubr.f32.gmra.mrb[38].mxu0 %v795_v50 }
 0x27b   : > { %2246 = vmatprep.mubr.f32.mxu0 %v860_v53  ;;  %v6232_v53 = vld [vmem:[#allocation2 + $0x181] sm:$0xff] }
 0x27c   : > { %v7207_v27 = vpop.f32.mrb[0].mxu1 }
 0x27d   : > { %v7210_v24 = vpop.f32.mrb[1].mxu1 }
 0x27e   : > { %2247 = vmatmul.mubr.f32.gmra.mrb[40].mxu0 %v796_v29  ;;  %v6233_v29 = vld [vmem:[#allocation2 + $0x189] sm:$0xff] }
 0x27f   : > { %2251 = vmatprep.mubr.f32.mxu0 %v861_v11  ;;  %v870_v11 = vld [vmem:[#allocation2 + $0x199] sm:$0xff] }
 0x280   : > { %v7224_v5 = vpop.f32.mrb[2].mxu1 }
 0x281   : > { %v7226_v41 = vpop.f32.mrb[3].mxu1 }
 0x282   : > { %2252 = vmatmul.mubr.f32.gmra.mrb[42].mxu0 %v797_v15  ;;  %v5498_v15 = vpack.c.bf16 %v3499_v34, %v3498_v30  ;;  %v3516_v30 = vld [vmem:[#allocation9 + $0x1c0] sm:$0xff]  ;;  %v3517_v34 = vld [vmem:[#allocation9 + $0x1c8] sm:$0xff] }
 0x283   : > { %2256 = vmatprep.mubr.f32.mxu0 %v862_v18 }
 0x284   : > { %v7237_v2 = vpop.f32.mrb[4].mxu1  ;;  %5499 = vmatpush1.bf16.msra.mxu1 %v5498_v15  ;;  %v5525_v15 = vpack.c.bf16 %v3517_v34, %v3516_v30 }
 0x285   : > { %v7239_v55 = vpop.f32.mrb[5].mxu1  ;;  %5500 = vmatprep.subr.bf16.mxu1 %v8076_v0 }
 0x286   : > { %2257 = vmatmul.mubr.f32.gmra.mrb[44].mxu0 %v798_v6 }
 0x287   : > { %2261 = vmatprep.mubr.f32.mxu0 %v863_v33  ;;  %v3502_v33 = vld [vmem:[#allocation9 + $0x150] sm:$0xff] }
 0x288   : > { %v7250_v21 = vpop.f32.mrb[6].mxu1  ;;  %v5504_v12 = vpack.c.bf16 %v3503_v36, %v3502_v33  ;;  %v3519_v33 = vld [vmem:[#allocation9 + $0x1d8] sm:$0xff] }
 0x289   : > { %v7252_v50 = vpop.f32.mrb[7].mxu1 }
 0x28a   : > { %2262 = vmatmul.mubr.f32.gmra.mrb[46].mxu0 %v799_v4  ;;  %v3504_v4 = vld [vmem:[#allocation9 + $0x160] sm:$0xff] }
 0x28b   : > { %2266 = vmatprep.mubr.f32.mxu0 %v864_v38  ;;  %v3505_v38 = vld [vmem:[#allocation9 + $0x168] sm:$0xff] }
 0x28c   : > { %v7257_v25 = vpop.f32.mrb[8].mxu1  ;;  %v5507_v42 = vpack.c.bf16 %v3505_v38, %v3504_v4  ;;  %v3520_v38 = vld [vmem:[#allocation9 + $0x1e0] sm:$0xff] }
 0x28d   : > { %v7260_v1 = vpop.f32.mrb[9].mxu1 }
 0x28e   : > { %2267 = vmatmul.mubr.f32.gmra.mrb[48].mxu0 %v800_v49 }
 0x28f   : > { %2271 = vmatprep.mubr.f32.mxu0 %v865_v52  ;;  %v3506_v52 = vld [vmem:[#allocation9 + $0x170] sm:$0xff] }
 0x290   : > { %v5510_v56 = vpack.c.bf16 %v3507_v13, %v3506_v52  ;;  %v7322_v13 = vld [vmem:[%s8069_s2] ss:$0 sm:$0xff] }
 0x292   : > { %2272 = vmatmul.mubr.f32.gmra.mrb[50].mxu0 %v801_v16  ;;  %v3509_v16 = vld [vmem:[#allocation9 + $0x188] sm:$0xff] }
 0x293   : > { %2276 = vmatprep.mubr.f32.mxu0 %v866_v45  ;;  %v5513_v45 = vpack.c.bf16 %v3509_v16, %v3508_v58 }
 0x296   : > { %2277 = vmatmul.mubr.f32.gmra.mrb[52].mxu0 %v802_v31  ;;  %v3510_v31 = vld [vmem:[#allocation9 + $0x190] sm:$0xff] }
 0x297   : > { %2281 = vmatprep.mubr.f32.mxu0 %v867_v26  ;;  %v3511_v26 = vld [vmem:[#allocation9 + $0x198] sm:$0xff] }
 0x298   : > { %v5516_v19 = vpack.c.bf16 %v3511_v26, %v3510_v31  ;;  %v3523_v31 = vld [vmem:[#allocation9 + $0x1f8] sm:$0xff] }
 0x29a   : > { %2282 = vmatmul.mubr.f32.gmra.mrb[54].mxu0 %v803_v40  ;;  %v5519_v40 = vpack.c.bf16 %v3513_v20, %v3512_v37 }
 0x29b   : > { %2286 = vmatprep.mubr.f32.mxu0 %v6232_v53 }
 0x29e   : > { %2287 = vmatmul.mubr.f32.gmra.mrb[56].mxu0 %v7097_v39  ;;  %v7264_v39 = vpop.f32.mrb[10].mxu1 }
 0x29f   : > { %2291 = vmatprep.mubr.f32.mxu0 %v6233_v29  ;;  %v7267_v18 = vpop.f32.mrb[11].mxu1  ;;  %v5522_v29 = vpack.c.bf16 %v3515_v23, %v3514_v14 }
 0x2a0   : > { %v7270_v9 = vpop.f32.mrb[12].mxu1 }
 0x2a1   : > { %v7272_v6 = vpop.f32.mrb[13].mxu1 }
 0x2a2   : > { %2292 = vmatmul.mubr.f32.gmra.mrb[58].mxu0 %v7103_v22  ;;  %v3500_v22 = vld [vmem:[#allocation9 + $0x140] sm:$0xff]  ;;  %v7275_v43 = vpop.f32.mrb[14].mxu1 }
 0x2a3   : > { %2296 = vmatprep.mubr.f32.mxu0 %v870_v11  ;;  %v5501_v3 = vpack.c.bf16 %v3501_v32, %v3500_v22 }
 0x2a5   : > { %5502 = vmatpush1.bf16.msra.mxu1 %v5501_v3  ;;  %v3518_v3 = vld [vmem:[#allocation9 + $0x1d0] sm:$0xff] }
 0x2a6   : > { %2297 = vmatmul.mubr.f32.gmra.mrb[60].mxu0 %v7215_v7  ;;  %5503 = vmatprep.subr.bf16.mxu1 %v8076_v0  ;;  %v5528_v36 = vpack.c.bf16 %v3519_v33, %v3518_v3 }
 0x2a7   : > { %2301 = vmatprep.mubr.f32.mxu0 %v871_v57 }
 0x2a9   : > { %5505 = vmatpush1.bf16.msra.mxu1 %v5504_v12 }
 0x2aa   : > { %2302 = vmatmul.mubr.f32.gmra.mrb[62].mxu0 %v7215_v7  ;;  %5506 = vmatprep.subr.bf16.mxu1 %v8076_v0  ;;  %v7277_v7 = vpop.f32.mrb[15].mxu1 }
 0x2ab   : > { %v7280_v47 = vpop.f32.mrb[16].mxu1 }
 0x2ac   : > { %v7282_v49 = vpop.f32.mrb[17].mxu1 }
 0x2ad   : > { %5508 = vmatpush1.bf16.msra.mxu1 %v5507_v42  ;;  %v7285_v10 = vpop.f32.mrb[18].mxu1  ;;  %v3521_v42 = vld [vmem:[#allocation9 + $0x1e8] sm:$0xff] }
 0x2ae   : > { %5509 = vmatprep.subr.bf16.mxu1 %v8076_v0  ;;  %v7287_v60 = vpop.f32.mrb[19].mxu1  ;;  %v5531_v52 = vpack.c.bf16 %v3521_v42, %v3520_v38 }
 0x2af   : > { %v7290_v61 = vpop.f32.mrb[20].mxu1 }
 0x2b0   : > { %v7292_v54 = vpop.f32.mrb[21].mxu1 }
 0x2b1   : > { %5511 = vmatpush1.bf16.msra.mxu1 %v5510_v56  ;;  %v7295_v17 = vpop.f32.mrb[22].mxu1 }
 0x2b2   : > { %5512 = vmatprep.subr.bf16.mxu1 %v8076_v0  ;;  %v7297_v59 = vpop.f32.mrb[23].mxu1 }
 0x2b3   : > { %v7300_v53 = vpop.f32.mrb[24].mxu1 }
 0x2b4   : > { %v7302_v48 = vpop.f32.mrb[25].mxu1 }
 0x2b5   : > { %5514 = vmatpush1.bf16.msra.mxu1 %v5513_v45  ;;  %v7305_v11 = vpop.f32.mrb[26].mxu1  ;;  %v3522_v45 = vld [vmem:[#allocation9 + $0x1f0] sm:$0xff] }
 0x2b6   : > { %5515 = vmatprep.subr.bf16.mxu1 %v8076_v0  ;;  %v7307_v57 = vpop.f32.mrb[27].mxu1  ;;  %v5534_v26 = vpack.c.bf16 %v3523_v31, %v3522_v45 }
 0x2b7   : > { %v7310_v22 = vpop.f32.mrb[28].mxu1 }
 0x2b8   : > { %v7312_v32 = vpop.f32.mrb[29].mxu1 }
 0x2b9   : > { %5517 = vmatpush1.bf16.msra.mxu1 %v5516_v19 }
 0x2ba   : > { %5518 = vmatprep.subr.bf16.mxu1 %v8076_v0 }
 0x2bd   : > { %5520 = vmatpush1.bf16.msra.mxu1 %v5519_v40 }
 0x2be   : > { %5521 = vmatprep.subr.bf16.mxu1 %v8076_v0 }
 0x2c1   : > { %5523 = vmatpush1.bf16.msra.mxu1 %v5522_v29 }
 0x2c2   : > { %5524 = vmatprep.subr.bf16.mxu1 %v8076_v0 }
 0x2c5   : > { %5526 = vmatpush1.bf16.msra.mxu1 %v5525_v15 }
 0x2c6   : > { %5527 = vmatprep.subr.bf16.mxu1 %v8076_v0 }
 0x2c9   : > { %5529 = vmatpush1.bf16.msra.mxu1 %v5528_v36 }
 0x2ca   : > { %5530 = vmatprep.subr.bf16.mxu1 %v8076_v0 }
 0x2cd   : > { %5532 = vmatpush1.bf16.msra.mxu1 %v5531_v52 }
 0x2ce   : > { %5533 = vmatprep.subr.bf16.mxu1 %v8076_v0 }
 0x2d1   : > { %5535 = vmatpush1.bf16.msra.mxu1 %v5534_v26 }
 0x2d2   : > { %5536 = vmatprep.subr.bf16.mxu1 %v8076_v0 }
 0x2e7   : > { %v7315_v12 = vpop.f32.mrb[30].mxu1 }
 0x2e8   : > { %v7317_v4 = vpop.f32.mrb[31].mxu1 }
 0x301   : > { %v2148_v56 = vpop.f32.mrb[0].mxu0 }
 0x302   : > { %v5680_v58 = vadd.f32 %v7322_v13, %v2148_v56  ;;  %v2150_v16 = vpop.f32.mrb[1].mxu0 }
 0x304   : > { %v2374_v19 = vadd.f32 %v5680_v58, %v7210_v24 }
 0x305   : > { %v2153_v37 = vpop.f32.mrb[2].mxu0 }
 0x306   : > { %v2532_v20 = vmax.f32 %v2374_v19, 0.0  ;;  %v5681_v40 = vadd.f32 %v7322_v13, %v2153_v37  ;;  %v2155_v14 = vpop.f32.mrb[3].mxu0 }
 0x308   : > { %2564 = vst [vmem:[#allocation2 + $0x19] sm:$0xff] %v2532_v20  ;;  %v2379_v23 = vadd.f32 %v5681_v40, %v7207_v27  ;;  %3685 = vmatprep.mubr.f32.mxu1 %v2532_v20 }
 0x309   : > { %v2158_v29 = vpop.f32.mrb[4].mxu0 }
 0x30a   : > { %v2533_v30 = vmax.f32 %v2379_v23, 0.0  ;;  %v5682_v34 = vadd.f32 %v7322_v13, %v2158_v29  ;;  %v2160_v15 = vpop.f32.mrb[5].mxu0 }
 0x30c   : > { %2565 = vst [vmem:[#allocation2 + $0x21] sm:$0xff] %v2533_v30  ;;  %v2384_v24 = vadd.f32 %v5682_v34, %v7226_v41 }
 0x30d   : > { %v2163_v3 = vpop.f32.mrb[6].mxu0 }
 0x30e   : > { %v2534_v33 = vmax.f32 %v2384_v24, 0.0  ;;  %v5683_v36 = vadd.f32 %v7322_v13, %v2163_v3  ;;  %v2165_v38 = vpop.f32.mrb[7].mxu0 }
 0x30f   : > { %v7333_v42 = vld [vmem:[#allocation2 + $0x18] sm:$0xff] }
 0x310   : > { %2566 = vst [vmem:[#allocation2 + $0x31] sm:$0xff] %v2534_v33  ;;  %v2389_v52 = vadd.f32 %v5683_v36, %v7224_v5  ;;  %3686 = vmatmul.mubr.f32.gmra.mrb[36].mxu1 %v7333_v42 }
 0x311   : > { %v2168_v27 = vpop.f32.mrb[8].mxu0  ;;  %3690 = vmatprep.mubr.f32.mxu1 %v2533_v30 }
 0x312   : > { %v2535_v56 = vmax.f32 %v2389_v52, 0.0  ;;  %v5684_v58 = vadd.f32 %v7322_v13, %v2168_v27  ;;  %v2170_v16 = vpop.f32.mrb[9].mxu0 }
 0x313   : > { %v7338_v45 = vld [vmem:[#allocation2 + $0x20] sm:$0xff] }
 0x314   : > { %2567 = vst [vmem:[#allocation2 + $0x39] sm:$0xff] %v2535_v56  ;;  %v2394_v41 = vadd.f32 %v5684_v58, %v7239_v55  ;;  %3691 = vmatmul.mubr.f32.gmra.mrb[38].mxu1 %v7338_v45 }
 0x315   : > { %v2173_v31 = vpop.f32.mrb[10].mxu0  ;;  %3695 = vmatprep.mubr.f32.mxu1 %v2534_v33 }
 0x316   : > { %v2536_v26 = vmax.f32 %v2394_v41, 0.0  ;;  %v5685_v5 = vadd.f32 %v7322_v13, %v2173_v31  ;;  %v2175_v19 = vpop.f32.mrb[11].mxu0 }
 0x317   : > { %v7343_v37 = vld [vmem:[#allocation2 + $0x30] sm:$0xff] }
 0x318   : > { %2568 = vst [vmem:[#allocation2 + $0x49] sm:$0xff] %v2536_v26  ;;  %v2399_v20 = vadd.f32 %v5685_v5, %v7237_v2  ;;  %3696 = vmatmul.mubr.f32.gmra.mrb[40].mxu1 %v7343_v37 }
 0x319   : > { %v2178_v40 = vpop.f32.mrb[12].mxu0  ;;  %3700 = vmatprep.mubr.f32.mxu1 %v2535_v56 }
 0x31a   : > { %v2537_v14 = vmax.f32 %v2399_v20, 0.0  ;;  %v5686_v55 = vadd.f32 %v7322_v13, %v2178_v40  ;;  %v2180_v23 = vpop.f32.mrb[13].mxu0 }
 0x31b   : > { %v7348_v29 = vld [vmem:[#allocation2 + $0x32] sm:$0xff]  ;;  %v7352_v34 = vld [vmem:[#allocation2 + $0x3a] sm:$0xff] }
 0x31c   : > { %v7350_v30 = vld [vmem:[#allocation2 + $0x38] sm:$0xff]  ;;  %2569 = vst [vmem:[#allocation2 + $0x51] sm:$0xff] %v2537_v14  ;;  %v2404_v15 = vadd.f32 %v5686_v55, %v7252_v50  ;;  %5168 = vmatprep.mubr.f32.mxu0 %v7348_v29 }
 0x31d   : > { %3701 = vmatmul.mubr.f32.gmra.mrb[42].mxu1 %v7350_v30  ;;  %v2183_v2 = vpop.f32.mrb[14].mxu0  ;;  %5169 = vmatmul.mubr.f32.vlgmr.msra.gmra.mrb[64].mxu0 %v7352_v34 }
 0x31e   : > { %3705 = vmatprep.mubr.f32.mxu1 %v2536_v26  ;;  %v2538_v24 = vmax.f32 %v2404_v15, 0.0  ;;  %v5687_v3 = vadd.f32 %v7322_v13, %v2183_v2  ;;  %v2185_v33 = vpop.f32.mrb[15].mxu0 }
 0x31f   : > { %v7359_v36 = vld [vmem:[#allocation2 + $0x48] sm:$0xff] }
 0x320   : > { %2570 = vst [vmem:[#allocation2 + $0x61] sm:$0xff] %v2538_v24  ;;  %v2409_v38 = vadd.f32 %v5687_v3, %v7250_v21 }
 0x321   : > { %3706 = vmatmul.mubr.f32.gmra.mrb[44].mxu1 %v7359_v36  ;;  %v2188_v50 = vpop.f32.mrb[16].mxu0 }
 0x322   : > { %3710 = vmatprep.mubr.f32.mxu1 %v2537_v14  ;;  %v2539_v52 = vmax.f32 %v2409_v38, 0.0  ;;  %v5688_v27 = vadd.f32 %v7322_v13, %v2188_v50  ;;  %v2190_v56 = vpop.f32.mrb[17].mxu0 }
 0x323   : > { %v7364_v58 = vld [vmem:[#allocation2 + $0x4a] sm:$0xff]  ;;  %v7368_v41 = vld [vmem:[#allocation2 + $0x52] sm:$0xff] }
 0x324   : > { %v7366_v16 = vld [vmem:[#allocation2 + $0x50] sm:$0xff]  ;;  %2571 = vst [vmem:[#allocation2 + $0x69] sm:$0xff] %v2539_v52  ;;  %v2414_v31 = vadd.f32 %v5688_v27, %v7260_v1  ;;  %5171 = vmatprep.mubr.f32.mxu0 %v7364_v58 }
 0x325   : > { %3711 = vmatmul.mubr.f32.gmra.mrb[46].mxu1 %v7366_v16  ;;  %v2193_v21 = vpop.f32.mrb[18].mxu0  ;;  %5172 = vmatmul.mubr.f32.gmra.mrb[66].mxu0 %v7368_v41 }
 0x326   : > { %3715 = vmatprep.mubr.f32.mxu1 %v2538_v24  ;;  %v2540_v26 = vmax.f32 %v2414_v31, 0.0  ;;  %v5689_v5 = vadd.f32 %v7322_v13, %v2193_v21  ;;  %v2195_v19 = vpop.f32.mrb[19].mxu0 }
 0x327   : > { %v7375_v20 = vld [vmem:[#allocation2 + $0x60] sm:$0xff] }
 0x328   : > { %2572 = vst [vmem:[#allocation2 + $0x79] sm:$0xff] %v2540_v26  ;;  %v2419_v40 = vadd.f32 %v5689_v5, %v7257_v25 }
 0x329   : > { %3716 = vmatmul.mubr.f32.gmra.mrb[48].mxu1 %v7375_v20  ;;  %v2198_v1 = vpop.f32.mrb[20].mxu0 }
 0x32a   : > { %3720 = vmatprep.mubr.f32.mxu1 %v2539_v52  ;;  %v2541_v14 = vmax.f32 %v2419_v40, 0.0  ;;  %v5690_v55 = vadd.f32 %v7322_v13, %v2198_v1  ;;  %v2200_v23 = vpop.f32.mrb[21].mxu0 }
 0x32b   : > { %v7380_v15 = vld [vmem:[#allocation2 + $0x62] sm:$0xff]  ;;  %v7384_v24 = vld [vmem:[#allocation2 + $0x6a] sm:$0xff] }
 0x32c   : > { %v7382_v2 = vld [vmem:[#allocation2 + $0x68] sm:$0xff]  ;;  %2573 = vst [vmem:[#allocation2 + $0x81] sm:$0xff] %v2541_v14  ;;  %v2424_v3 = vadd.f32 %v5690_v55, %v7267_v18  ;;  %5174 = vmatprep.mubr.f32.mxu0 %v7380_v15 }
 0x32d   : > { %3721 = vmatmul.mubr.f32.gmra.mrb[50].mxu1 %v7382_v2  ;;  %v2203_v25 = vpop.f32.mrb[22].mxu0  ;;  %5175 = vmatmul.mubr.f32.gmra.mrb[68].mxu0 %v7384_v24 }
 0x32e   : > { %3725 = vmatprep.mubr.f32.mxu1 %v2540_v26  ;;  %v2542_v33 = vmax.f32 %v2424_v3, 0.0  ;;  %v5691_v38 = vadd.f32 %v7322_v13, %v2203_v25  ;;  %v2205_v50 = vpop.f32.mrb[23].mxu0 }
 0x32f   : > { %v7391_v52 = vld [vmem:[#allocation2 + $0x78] sm:$0xff] }
 0x330   : > { %2574 = vst [vmem:[#allocation2 + $0x91] sm:$0xff] %v2542_v33  ;;  %v2429_v27 = vadd.f32 %v5691_v38, %v7264_v39 }
 0x331   : > { %3726 = vmatmul.mubr.f32.gmra.mrb[52].mxu1 %v7391_v52  ;;  %v2208_v18 = vpop.f32.mrb[24].mxu0 }
 0x332   : > { %3730 = vmatprep.mubr.f32.mxu1 %v2541_v14  ;;  %v2543_v56 = vmax.f32 %v2429_v27, 0.0  ;;  %v5692_v31 = vadd.f32 %v7322_v13, %v2208_v18  ;;  %v2210_v21 = vpop.f32.mrb[25].mxu0 }
 0x333   : > { %v7396_v5 = vld [vmem:[#allocation2 + $0x7a] sm:$0xff]  ;;  %v7400_v19 = vld [vmem:[#allocation2 + $0x82] sm:$0xff] }
 0x334   : > { %v7398_v26 = vld [vmem:[#allocation2 + $0x80] sm:$0xff]  ;;  %2575 = vst [vmem:[#allocation2 + $0x99] sm:$0xff] %v2543_v56  ;;  %v2434_v40 = vadd.f32 %v5692_v31, %v7272_v6  ;;  %5177 = vmatprep.mubr.f32.mxu0 %v7396_v5 }
 0x335   : > { %3731 = vmatmul.mubr.f32.gmra.mrb[54].mxu1 %v7398_v26  ;;  %v2213_v39 = vpop.f32.mrb[26].mxu0  ;;  %5178 = vmatmul.mubr.f32.gmra.mrb[70].mxu0 %v7400_v19 }
 0x336   : > { %3735 = vmatprep.mubr.f32.mxu1 %v2542_v33  ;;  %v2544_v1 = vmax.f32 %v2434_v40, 0.0  ;;  %v5693_v14 = vadd.f32 %v7322_v13, %v2213_v39  ;;  %v2215_v55 = vpop.f32.mrb[27].mxu0 }
 0x337   : > { %v7407_v23 = vld [vmem:[#allocation2 + $0x90] sm:$0xff] }
 0x338   : > { %2576 = vst [vmem:[#allocation2 + $0xa9] sm:$0xff] %v2544_v1  ;;  %v2439_v3 = vadd.f32 %v5693_v14, %v7270_v9 }
 0x339   : > { %3736 = vmatmul.mubr.f32.gmra.mrb[56].mxu1 %v7407_v23  ;;  %v2218_v6 = vpop.f32.mrb[28].mxu0 }
 0x33a   : > { %3740 = vmatprep.mubr.f32.mxu1 %v2543_v56  ;;  %v2545_v25 = vmax.f32 %v2439_v3, 0.0  ;;  %v5694_v38 = vadd.f32 %v7322_v13, %v2218_v6  ;;  %v2220_v50 = vpop.f32.mrb[29].mxu0 }
 0x33b   : > { %v7412_v27 = vld [vmem:[#allocation2 + $0x92] sm:$0xff]  ;;  %v7416_v18 = vld [vmem:[#allocation2 + $0x9a] sm:$0xff] }
 0x33c   : > { %v7414_v33 = vld [vmem:[#allocation2 + $0x98] sm:$0xff]  ;;  %2577 = vst [vmem:[#allocation2 + $0xb1] sm:$0xff] %v2545_v25  ;;  %v2444_v31 = vadd.f32 %v5694_v38, %v7277_v7  ;;  %5180 = vmatprep.mubr.f32.mxu0 %v7412_v27 }
 0x33d   : > { %3741 = vmatmul.mubr.f32.gmra.mrb[58].mxu1 %v7414_v33  ;;  %v2223_v9 = vpop.f32.mrb[30].mxu0  ;;  %5181 = vmatmul.mubr.f32.gmra.mrb[72].mxu0 %v7416_v18 }
 0x33e   : > { %3745 = vmatprep.mubr.f32.mxu1 %v2544_v1  ;;  %v2546_v56 = vmax.f32 %v2444_v31, 0.0  ;;  %v5695_v21 = vadd.f32 %v7322_v13, %v2223_v9  ;;  %v2225_v40 = vpop.f32.mrb[31].mxu0 }
 0x33f   : > { %v7423_v39 = vld [vmem:[#allocation2 + $0xa8] sm:$0xff] }
 0x340   : > { %2578 = vst [vmem:[#allocation2 + $0xc1] sm:$0xff] %v2546_v56  ;;  %v2449_v14 = vadd.f32 %v5695_v21, %v7275_v43 }
 0x341   : > { %3746 = vmatmul.mubr.f32.gmra.mrb[60].mxu1 %v7423_v39  ;;  %v2228_v7 = vpop.f32.mrb[32].mxu0 }
 0x342   : > { %3750 = vmatprep.mubr.f32.mxu1 %v2545_v25  ;;  %v2547_v55 = vmax.f32 %v2449_v14, 0.0  ;;  %v5696_v3 = vadd.f32 %v7322_v13, %v2228_v7  ;;  %v2230_v6 = vpop.f32.mrb[33].mxu0 }
 0x343   : > { %v7428_v38 = vld [vmem:[#allocation2 + $0xaa] sm:$0xff]  ;;  %v7432_v50 = vld [vmem:[#allocation2 + $0xb2] sm:$0xff] }
 0x344   : > { %v7430_v1 = vld [vmem:[#allocation2 + $0xb0] sm:$0xff]  ;;  %2579 = vst [vmem:[#allocation2 + $0xc9] sm:$0xff] %v2547_v55  ;;  %v2454_v31 = vadd.f32 %v5696_v3, %v7282_v49  ;;  %5183 = vmatprep.mubr.f32.mxu0 %v7428_v38 }
 0x345   : > { %3751 = vmatmul.mubr.f32.gmra.mrb[62].mxu1 %v7430_v1  ;;  %v2233_v43 = vpop.f32.mrb[34].mxu0  ;;  %5184 = vmatmul.mubr.f32.gmra.mrb[74].mxu0 %v7432_v50 }
 0x346   : > { %3755 = vmatprep.mubr.f32.mxu1 %v2546_v56  ;;  %v2548_v25 = vmax.f32 %v2454_v31, 0.0  ;;  %v5697_v9 = vadd.f32 %v7322_v13, %v2233_v43  ;;  %v2235_v21 = vpop.f32.mrb[35].mxu0 }
 0x347   : > { %v7439_v40 = vld [vmem:[#allocation2 + $0xc0] sm:$0xff] }
 0x348   : > { %2580 = vst [vmem:[#allocation2 + $0xd9] sm:$0xff] %v2548_v25  ;;  %v2459_v14 = vadd.f32 %v5697_v9, %v7280_v47 }
 0x349   : > { %3756 = vmatmul.mubr.f32.gmra.mrb[64].mxu1 %v7439_v40  ;;  %v2238_v49 = vpop.f32.mrb[36].mxu0 }
 0x34a   : > { %3760 = vmatprep.mubr.f32.mxu1 %v2547_v55  ;;  %v2549_v7 = vmax.f32 %v2459_v14, 0.0  ;;  %v5698_v3 = vadd.f32 %v7322_v13, %v2238_v49  ;;  %v2240_v6 = vpop.f32.mrb[37].mxu0 }
 0x34b   : > { %v7444_v0 = vld [vmem:[#allocation2 + $0xc2] sm:$0xff]  ;;  %v7448_v31 = vld [vmem:[#allocation2 + $0xca] sm:$0xff] }
 0x34c   : > { %v7446_v56 = vld [vmem:[#allocation2 + $0xc8] sm:$0xff]  ;;  %2581 = vst [vmem:[#allocation2 + $0xe1] sm:$0xff] %v2549_v7  ;;  %v2464_v43 = vadd.f32 %v5698_v3, %v7287_v60  ;;  %5186 = vmatprep.mubr.f32.mxu0 %v7444_v0 }
 0x34d   : > { %3761 = vmatmul.mubr.f32.gmra.mrb[66].mxu1 %v7446_v56  ;;  %v2243_v47 = vpop.f32.mrb[38].mxu0  ;;  %5187 = vmatmul.mubr.f32.gmra.mrb[76].mxu0 %v7448_v31 }
 0x34e   : > { %3765 = vmatprep.mubr.f32.mxu1 %v2548_v25  ;;  %v2550_v55 = vmax.f32 %v2464_v43, 0.0  ;;  %v5699_v9 = vadd.f32 %v7322_v13, %v2243_v47  ;;  %v2245_v21 = vpop.f32.mrb[39].mxu0 }
 0x34f   : > { %v7455_v14 = vld [vmem:[#allocation2 + $0xd8] sm:$0xff] }
 0x350   : > { %2582 = vst [vmem:[#allocation2 + $0xf1] sm:$0xff] %v2550_v55  ;;  %v2469_v49 = vadd.f32 %v5699_v9, %v7285_v10 }
 0x351   : > { %3766 = vmatmul.mubr.f32.gmra.mrb[68].mxu1 %v7455_v14  ;;  %v2248_v60 = vpop.f32.mrb[40].mxu0 }
 0x352   : > { %3770 = vmatprep.mubr.f32.mxu1 %v2549_v7  ;;  %v2551_v3 = vmax.f32 %v2469_v49, 0.0  ;;  %v5700_v6 = vadd.f32 %v7322_v13, %v2248_v60  ;;  %v2250_v44 = vpop.f32.mrb[41].mxu0 }
 0x353   : > { %v7460_v8 = vld [vmem:[#allocation2 + $0xda] sm:$0xff]  ;;  %v7464_v43 = vld [vmem:[#allocation2 + $0xe2] sm:$0xff] }
 0x354   : > { %v7462_v25 = vld [vmem:[#allocation2 + $0xe0] sm:$0xff]  ;;  %2583 = vst [vmem:[#allocation2 + $0xf9] sm:$0xff] %v2551_v3  ;;  %v2474_v47 = vadd.f32 %v5700_v6, %v7292_v54  ;;  %5189 = vmatprep.mubr.f32.mxu0 %v7460_v8 }
 0x355   : > { %3771 = vmatmul.mubr.f32.gmra.mrb[70].mxu1 %v7462_v25  ;;  %v2253_v10 = vpop.f32.mrb[42].mxu0  ;;  %5190 = vmatmul.mubr.f32.gmra.mrb[78].mxu0 %v7464_v43 }
 0x356   : > { %3775 = vmatprep.mubr.f32.mxu1 %v2550_v55  ;;  %v2552_v7 = vmax.f32 %v2474_v47, 0.0  ;;  %v5701_v44 = vadd.f32 %v7322_v13, %v2253_v10  ;;  %v2255_v9 = vpop.f32.mrb[43].mxu0 }
 0x357   : > { %v7471_v21 = vld [vmem:[#allocation2 + $0xf0] sm:$0xff] }
 0x358   : > { %2584 = vst [vmem:[#allocation2 + $0x109] sm:$0xff] %v2552_v7  ;;  %v2479_v49 = vadd.f32 %v5701_v44, %v7290_v61 }
 0x359   : > { %3776 = vmatmul.mubr.f32.gmra.mrb[72].mxu1 %v7471_v21  ;;  %v2258_v54 = vpop.f32.mrb[44].mxu0 }
 0x35a   : > { %3780 = vmatprep.mubr.f32.mxu1 %v2551_v3  ;;  %v2553_v60 = vmax.f32 %v2479_v49, 0.0  ;;  %v5702_v6 = vadd.f32 %v7322_v13, %v2258_v54  ;;  %v2260_v46 = vpop.f32.mrb[45].mxu0 }
 0x35b   : > { %v7476_v51 = vld [vmem:[#allocation2 + $0xf2] sm:$0xff]  ;;  %v7480_v47 = vld [vmem:[#allocation2 + $0xfa] sm:$0xff] }
 0x35c   : > { %v7478_v55 = vld [vmem:[#allocation2 + $0xf8] sm:$0xff]  ;;  %2585 = vst [vmem:[#allocation2 + $0x111] sm:$0xff] %v2553_v60  ;;  %v2484_v10 = vadd.f32 %v5702_v6, %v7297_v59  ;;  %5192 = vmatprep.mubr.f32.mxu0 %v7476_v51 }
 0x35d   : > { %3781 = vmatmul.mubr.f32.gmra.mrb[74].mxu1 %v7478_v55  ;;  %v2263_v61 = vpop.f32.mrb[46].mxu0  ;;  %5193 = vmatmul.mubr.f32.gmra.mrb[80].mxu0 %v7480_v47 }
 0x35e   : > { %3785 = vmatprep.mubr.f32.mxu1 %v2552_v7  ;;  %v2554_v3 = vmax.f32 %v2484_v10, 0.0  ;;  %v5703_v46 = vadd.f32 %v7322_v13, %v2263_v61  ;;  %v2265_v44 = vpop.f32.mrb[47].mxu0 }
 0x35f   : > { %v7487_v9 = vld [vmem:[#allocation2 + $0x108] sm:$0xff] }
 0x360   : > { %2586 = vst [vmem:[#allocation2 + $0x121] sm:$0xff] %v2554_v3  ;;  %v2489_v49 = vadd.f32 %v5703_v46, %v7295_v17 }
 0x361   : > { %3786 = vmatmul.mubr.f32.gmra.mrb[76].mxu1 %v7487_v9  ;;  %v2268_v59 = vpop.f32.mrb[48].mxu0 }
 0x362   : > { %3790 = vmatprep.mubr.f32.mxu1 %v2553_v60  ;;  %v2555_v54 = vmax.f32 %v2489_v49, 0.0  ;;  %v5704_v6 = vadd.f32 %v7322_v13, %v2268_v59  ;;  %v2270_v28 = vpop.f32.mrb[49].mxu0 }
 0x363   : > { %v7492_v35 = vld [vmem:[#allocation2 + $0x10a] sm:$0xff]  ;;  %v7496_v10 = vld [vmem:[#allocation2 + $0x112] sm:$0xff] }
 0x364   : > { %v7494_v7 = vld [vmem:[#allocation2 + $0x110] sm:$0xff]  ;;  %2587 = vst [vmem:[#allocation2 + $0x129] sm:$0xff] %v2555_v54  ;;  %v2494_v61 = vadd.f32 %v5704_v6, %v7302_v48  ;;  %5195 = vmatprep.mubr.f32.mxu0 %v7492_v35 }
 0x365   : > { %3791 = vmatmul.mubr.f32.gmra.mrb[78].mxu1 %v7494_v7  ;;  %v2273_v17 = vpop.f32.mrb[50].mxu0  ;;  %5196 = vmatmul.mubr.f32.gmra.mrb[82].mxu0 %v7496_v10 }
 0x366   : > { %3795 = vmatprep.mubr.f32.mxu1 %v2554_v3  ;;  %v7502_v60 = vmax.f32 %v2494_v61, 0.0  ;;  %v5705_v28 = vadd.f32 %v7322_v13, %v2273_v17  ;;  %v2275_v46 = vpop.f32.mrb[51].mxu0 }
 0x367   : > { %v7505_v44 = vld [vmem:[#allocation2 + $0x120] sm:$0xff] }
 0x368   : > { %8126 = vst [vmem:[#allocation22_spill] sm:$0xff] %v7502_v60  ;;  %2588 = vst [vmem:[#allocation2 + $0x139] sm:$0xff] %v7502_v60  ;;  %v2499_v49 = vadd.f32 %v5705_v28, %v7300_v53 }
 0x369   : > { %3796 = vmatmul.mubr.f32.gmra.mrb[80].mxu1 %v7505_v44  ;;  %v2278_v48 = vpop.f32.mrb[52].mxu0 }
 0x36a   : > { %3800 = vmatprep.mubr.f32.mxu1 %v2555_v54  ;;  %v7510_v59 = vmax.f32 %v2499_v49, 0.0  ;;  %v5706_v6 = vadd.f32 %v7322_v13, %v2278_v48  ;;  %v2280_v3 = vpop.f32.mrb[53].mxu0 }
 0x36b   : > { %v7513_v61 = vld [vmem:[#allocation2 + $0x122] sm:$0xff]  ;;  %v7517_v17 = vld [vmem:[#allocation2 + $0x12a] sm:$0xff] }
 0x36c   : > { %8127 = vst [vmem:[#allocation23_spill] sm:$0xff] %v7510_v59  ;;  %v7515_v62 = vld [vmem:[#allocation2 + $0x128] sm:$0xff]  ;;  %2589 = vst [vmem:[#allocation2 + $0x141] sm:$0xff] %v7510_v59  ;;  %v2504_v46 = vadd.f32 %v5706_v6, %v7307_v57  ;;  %5198 = vmatprep.mubr.f32.mxu0 %v7513_v61 }
 0x36d   : > { %3801 = vmatmul.mubr.f32.gmra.mrb[82].mxu1 %v7515_v62  ;;  %v2283_v53 = vpop.f32.mrb[54].mxu0  ;;  %5199 = vmatmul.mubr.f32.gmra.mrb[84].mxu0 %v7517_v17 }
 0x36e   : > { %3805 = vmatprep.mubr.f32.mxu1 %v7502_v60  ;;  %v7525_v54 = vmax.f32 %v2504_v46, 0.0  ;;  %v5707_v28 = vadd.f32 %v7322_v13, %v2283_v53  ;;  %v2285_v49 = vpop.f32.mrb[55].mxu0 }
 0x36f   : > { %v7528_v48 = vld [vmem:[#allocation2 + $0x138] sm:$0xff] }
 0x370   : > { %8128 = vst [vmem:[#allocation24_spill] sm:$0xff] %v7525_v54  ;;  %2590 = vst [vmem:[#allocation2 + $0x151] sm:$0xff] %v7525_v54  ;;  %v2509_v57 = vadd.f32 %v5707_v28, %v7305_v11 }
 0x371   : > { %3806 = vmatmul.mubr.f32.gmra.mrb[84].mxu1 %v7528_v48  ;;  %v2288_v6 = vpop.f32.mrb[56].mxu0 }
 0x372   : > { %3810 = vmatprep.mubr.f32.mxu1 %v7510_v59  ;;  %v7534_v3 = vmax.f32 %v2509_v57, 0.0  ;;  %v5708_v60 = vadd.f32 %v7322_v13, %v2288_v6  ;;  %v2290_v46 = vpop.f32.mrb[57].mxu0 }
 0x373   : > { %v7537_v63 = vld [vmem:[#allocation2 + $0x13a] sm:$0xff]  ;;  %v7541_v49 = vld [vmem:[#allocation2 + $0x142] sm:$0xff] }
 0x374   : > { %8129 = vst [vmem:[#allocation25_spill] sm:$0xff] %v7534_v3  ;;  %8130 = vst [vmem:[#allocation26_spill] sm:$0xff] %v7537_v63  ;;  %v7539_v53 = vld [vmem:[#allocation2 + $0x140] sm:$0xff]  ;;  %v2514_v11 = vadd.f32 %v5708_v60, %v7312_v32  ;;  %5201 = vmatprep.mubr.f32.mxu0 %v7537_v63 }
 0x375   : > { %8131 = vst [vmem:[#allocation27_spill] sm:$0xff] %v7541_v49  ;;  %2591 = vst [vmem:[#allocation2 + $0x159] sm:$0xff] %v7534_v3  ;;  %3811 = vmatmul.mubr.f32.gmra.mrb[86].mxu1 %v7539_v53  ;;  %v2293_v28 = vpop.f32.mrb[58].mxu0  ;;  %5202 = vmatmul.mubr.f32.gmra.mrb[86].mxu0 %v7541_v49 }
 0x376   : > { %3815 = vmatprep.mubr.f32.mxu1 %v7525_v54  ;;  %v7549_v57 = vmax.f32 %v2514_v11, 0.0  ;;  %v5709_v6 = vadd.f32 %v7322_v13, %v2293_v28  ;;  %v2295_v46 = vpop.f32.mrb[59].mxu0 }
 0x377   : > { %v7552_v59 = vld [vmem:[#allocation2 + $0x150] sm:$0xff] }
 0x378   : > { %8132 = vst [vmem:[#allocation28_spill] sm:$0xff] %v7549_v57  ;;  %2592 = vst [vmem:[#allocation2 + $0x169] sm:$0xff] %v7549_v57  ;;  %v2519_v32 = vadd.f32 %v5709_v6, %v7310_v22 }
 0x379   : > { %3816 = vmatmul.mubr.f32.gmra.mrb[88].mxu1 %v7552_v59  ;;  %v2298_v60 = vpop.f32.mrb[60].mxu0 }
 0x37a   : > { %3820 = vmatprep.mubr.f32.mxu1 %v7534_v3  ;;  %v7558_v63 = vmax.f32 %v2519_v32, 0.0  ;;  %v5710_v54 = vadd.f32 %v7322_v13, %v2298_v60  ;;  %v2300_v11 = vpop.f32.mrb[61].mxu0 }
 0x37b   : > { %v3525_v11 = vld [vmem:[#allocation9 + $0x208] sm:$0xff] }
 0x37c   : > { %8133 = vst [vmem:[#allocation29_spill] sm:$0xff] %v7558_v63  ;;  %v7561_v49 = vld [vmem:[#allocation2 + $0x158] sm:$0xff]  ;;  %2593 = vst [vmem:[#allocation2 + $0x171] sm:$0xff] %v7558_v63  ;;  %v7565_v28 = vadd.f32 %v5710_v54, %v7317_v4  ;;  %v3524_v54 = vld [vmem:[#allocation9 + $0x200] sm:$0xff] }
 0x37d   : > { %3821 = vmatmul.mubr.f32.gmra.mrb[90].mxu1 %v7561_v49  ;;  %v2303_v22 = vpop.f32.mrb[62].mxu0 }
 0x37e   : > { %8134 = vst [vmem:[#allocation30_spill] sm:$0xff] %v7565_v28  ;;  %3825 = vmatprep.mubr.f32.mxu1 %v7549_v57  ;;  %v8103_v6 = vmax.f32 %v7565_v28, 0.0  ;;  %v5711_v46 = vadd.f32 %v7322_v13, %v2303_v22  ;;  %v2305_v32 = vpop.f32.mrb[63].mxu0  ;;  %v2724_v13 = vld [vmem:[#allocation2 + $0x2] sm:$0xff]  ;;  %v8136_v28 = vmov 0.0|0.0  }
 0x37f   : > { %v7571_v3 = vld [vmem:[#allocation2 + $0x168] sm:$0xff]  ;;  %v3526_v22 = vld [vmem:[#allocation9 + $0x210] sm:$0xff] }
 0x380   : > { %8135 = vst [vmem:[#allocation31_spill] sm:$0xff] %v7571_v3  ;;  %2594 = vst [vmem:[#allocation2 + $0x181] sm:$0xff] %v8103_v6  ;;  %v7576_v60 = vadd.f32 %v5711_v46, %v7315_v12  ;;  %v5537_v12 = vpack.c.bf16 %v3525_v11, %v3524_v54  ;;  %v3527_v46 = vld [vmem:[#allocation9 + $0x218] sm:$0xff]  ;;  %v7591_v11 = vld [vmem:[#allocation2 + $0x1a] sm:$0xff] }
 0x381   : > { %3826 = vmatmul.mubr.f32.gmra.mrb[92].mxu1 %v7571_v3  ;;  %v2725_v32 = vld [vmem:[#allocation2 + $0xa] sm:$0xff]  ;;  %v5540_v6 = vpack.c.bf16 %v3527_v46, %v3526_v22  ;;  %v3529_v3 = vld [vmem:[#allocation9 + $0x228] sm:$0xff]  ;;  %v7596_v22 = vld [vmem:[#allocation2 + $0x22] sm:$0xff] }
 0x382   : > { %3830 = vmatprep.mubr.f32.mxu1 %v7558_v63  ;;  %v8107_v4 = vmax.f32 %v7576_v60, 0.0  ;;  %v3528_v63 = vld [vmem:[#allocation9 + $0x220] sm:$0xff]  ;;  %v3531_v54 = vld [vmem:[#allocation9 + $0x238] sm:$0xff]  ;;  %v3538_v46 = vld [vmem:[#allocation9 + $0x270] sm:$0xff] }
 0x383   : > { %v7581_v57 = vld [vmem:[#allocation2 + $0x170] sm:$0xff] }
 0x384   : > { %2595 = vst [vmem:[#allocation2 + $0x189] sm:$0xff] %v8107_v4  ;;  %v5543_v4 = vpack.c.bf16 %v3529_v3, %v3528_v63  ;;  %v3535_v3 = vld [vmem:[#allocation9 + $0x258] sm:$0xff] }
 0x385   : > { %3831 = vmatmul.mubr.f32.gmra.mrb[94].mxu1 %v7581_v57 }
 0x386   : > { %3900 = vmatprep.mubr.f32.mxu1 %v7333_v42  ;;  %v3530_v42 = vld [vmem:[#allocation9 + $0x230] sm:$0xff] }
 0x389   : > { %3901 = vmatmul.mubr.f32.vlgmr.msra.gmra.mrb[32].mxu1 %v2724_v13  ;;  %v3532_v13 = vld [vmem:[#allocation9 + $0x240] sm:$0xff] }
 0x38a   : > { %3905 = vmatprep.mubr.f32.mxu1 %v7338_v45  ;;  %5538 = vmatpush1.bf16.msra.mxu1 %v5537_v12  ;;  %v5546_v45 = vpack.c.bf16 %v3531_v54, %v3530_v42  ;;  %v3533_v12 = vld [vmem:[#allocation9 + $0x248] sm:$0xff]  ;;  %v3543_v54 = vld [vmem:[#allocation9 + $0x298] sm:$0xff] }
 0x38b   : > { %5539 = vmatprep.subr.bf16.mxu1 %v8136_v28  ;;  %v5549_v63 = vpack.c.bf16 %v3533_v12, %v3532_v13  ;;  %v3541_v42 = vld [vmem:[#allocation9 + $0x288] sm:$0xff]  ;;  %v3547_v13 = vld [vmem:[#allocation9 + $0x2b8] sm:$0xff] }
 0x38c   : > { %v3549_v12 = vld [vmem:[#allocation9 + $0x2c8] sm:$0xff] }
 0x38d   : > { %3906 = vmatmul.mubr.f32.gmra.mrb[34].mxu1 %v2725_v32  ;;  %v3539_v32 = vld [vmem:[#allocation9 + $0x278] sm:$0xff] }
 0x38e   : > { %3910 = vmatprep.mubr.f32.mxu1 %v7343_v37  ;;  %5541 = vmatpush1.bf16.msra.mxu1 %v5540_v6  ;;  %v3534_v37 = vld [vmem:[#allocation9 + $0x250] sm:$0xff]  ;;  %v3536_v6 = vld [vmem:[#allocation9 + $0x260] sm:$0xff] }
 0x38f   : > { %5542 = vmatprep.subr.bf16.mxu1 %v8136_v28 }
 0x391   : > { %3911 = vmatmul.mubr.f32.gmra.mrb[36].mxu1 %v7591_v11 }
 0x392   : > { %3915 = vmatprep.mubr.f32.mxu1 %v7350_v30  ;;  %5544 = vmatpush1.bf16.msra.mxu1 %v5543_v4  ;;  %v5552_v30 = vpack.c.bf16 %v3535_v3, %v3534_v37  ;;  %v3537_v4 = vld [vmem:[#allocation9 + $0x268] sm:$0xff]  ;;  %v3555_v3 = vld [vmem:[#allocation9 + $0x2f8] sm:$0xff] }
 0x393   : > { %5545 = vmatprep.subr.bf16.mxu1 %v8136_v28  ;;  %v3553_v37 = vld [vmem:[#allocation9 + $0x2e8] sm:$0xff] }
 0x395   : > { %3916 = vmatmul.mubr.f32.gmra.mrb[38].mxu1 %v7596_v22 }
 0x396   : > { %3920 = vmatprep.mubr.f32.mxu1 %v7359_v36  ;;  %5547 = vmatpush1.bf16.msra.mxu1 %v5546_v45  ;;  %v5555_v36 = vpack.c.bf16 %v3537_v4, %v3536_v6  ;;  %v3545_v45 = vld [vmem:[#allocation9 + $0x2a8] sm:$0xff] }
 0x397   : > { %5548 = vmatprep.subr.bf16.mxu1 %v8136_v28 }
 0x399   : > { %3921 = vmatmul.mubr.f32.gmra.mrb[40].mxu1 %v7348_v29  ;;  %v5558_v29 = vpack.c.bf16 %v3539_v32, %v3538_v46  ;;  %v3561_v46 = vld [vmem:[#allocation9 + $0x328] sm:$0xff]  ;;  %v2853_v32 = vld [vmem:[#allocation2 + $0x21] sm:$0xff] }
 0x39a   : > { %3925 = vmatprep.mubr.f32.mxu1 %v7366_v16  ;;  %5550 = vmatpush1.bf16.msra.mxu1 %v5549_v63  ;;  %v3540_v16 = vld [vmem:[#allocation9 + $0x280] sm:$0xff]  ;;  %v3551_v63 = vld [vmem:[#allocation9 + $0x2d8] sm:$0xff] }
 0x39b   : > { %5551 = vmatprep.subr.bf16.mxu1 %v8136_v28 }
 0x39d   : > { %3926 = vmatmul.mubr.f32.gmra.mrb[42].mxu1 %v7352_v34  ;;  %v5561_v34 = vpack.c.bf16 %v3541_v42, %v3540_v16  ;;  %v3562_v16 = vld [vmem:[#allocation9 + $0x330] sm:$0xff]  ;;  %v3563_v42 = vld [vmem:[#allocation9 + $0x338] sm:$0xff] }
 0x39e   : > { %3930 = vmatprep.mubr.f32.mxu1 %v7375_v20  ;;  %5553 = vmatpush1.bf16.msra.mxu1 %v5552_v30  ;;  %v3542_v20 = vld [vmem:[#allocation9 + $0x290] sm:$0xff] }
 0x39f   : > { %5554 = vmatprep.subr.bf16.mxu1 %v8136_v28 }
 0x3a1   : > { %3931 = vmatmul.mubr.f32.gmra.mrb[44].mxu1 %v7364_v58  ;;  %v5564_v58 = vpack.c.bf16 %v3543_v54, %v3542_v20 }
 0x3a2   : > { %3935 = vmatprep.mubr.f32.mxu1 %v7382_v2  ;;  %5556 = vmatpush1.bf16.msra.mxu1 %v5555_v36  ;;  %v3544_v2 = vld [vmem:[#allocation9 + $0x2a0] sm:$0xff] }
 0x3a3   : > { %5557 = vmatprep.subr.bf16.mxu1 %v8136_v28  ;;  %v3560_v36 = vld [vmem:[#allocation9 + $0x320] sm:$0xff] }
 0x3a5   : > { %3936 = vmatmul.mubr.f32.gmra.mrb[46].mxu1 %v7368_v41  ;;  %v5567_v41 = vpack.c.bf16 %v3545_v45, %v3544_v2  ;;  %v3564_v2 = vld [vmem:[#allocation9 + $0x340] sm:$0xff]  ;;  %v3565_v45 = vld [vmem:[#allocation9 + $0x348] sm:$0xff] }
 0x3a6   : > { %3940 = vmatprep.mubr.f32.mxu1 %v7391_v52  ;;  %5559 = vmatpush1.bf16.msra.mxu1 %v5558_v29  ;;  %v3546_v52 = vld [vmem:[#allocation9 + $0x2b0] sm:$0xff]  ;;  %v5591_v29 = vpack.c.bf16 %v3561_v46, %v3560_v36  ;;  %v7732_v36 = vld [vmem:[#allocation2 + $0x69] sm:$0xff] }
 0x3a7   : > { %5560 = vmatprep.subr.bf16.mxu1 %v8136_v28  ;;  %v2924_v46 = vld [vmem:[#allocation2 + $0x7a] sm:$0xff] }
 0x3a9   : > { %3941 = vmatmul.mubr.f32.gmra.mrb[48].mxu1 %v7380_v15  ;;  %v5570_v15 = vpack.c.bf16 %v3547_v13, %v3546_v52  ;;  %v2920_v52 = vld [vmem:[#allocation2 + $0x4a] sm:$0xff]  ;;  %v5597_v13 = vpack.c.bf16 %v3565_v45, %v3564_v2 }
 0x3aa   : > { %3945 = vmatprep.mubr.f32.mxu1 %v7398_v26  ;;  %5562 = vmatpush1.bf16.msra.mxu1 %v5561_v34  ;;  %v3548_v26 = vld [vmem:[#allocation9 + $0x2c0] sm:$0xff] }
 0x3ab   : > { %5563 = vmatprep.subr.bf16.mxu1 %v8136_v28  ;;  %v7700_v34 = vld [vmem:[#allocation2 + $0x31] sm:$0xff] }
 0x3ac   : > { %v3576_v45 = vld [vmem:[#allocation9 + $0x3a0] sm:$0xff] }
 0x3ad   : > { %3946 = vmatmul.mubr.f32.gmra.mrb[50].mxu1 %v7384_v24  ;;  %v5573_v24 = vpack.c.bf16 %v3549_v12, %v3548_v26  ;;  %v3567_v26 = vld [vmem:[#allocation9 + $0x358] sm:$0xff] }
 0x3ae   : > { %3950 = vmatprep.mubr.f32.mxu1 %v7407_v23  ;;  %5565 = vmatpush1.bf16.msra.mxu1 %v5564_v58  ;;  %v3550_v23 = vld [vmem:[#allocation9 + $0x2d0] sm:$0xff]  ;;  %v5594_v58 = vpack.c.bf16 %v3563_v42, %v3562_v16  ;;  %v7712_v12 = vld [vmem:[#allocation2 + $0x49] sm:$0xff] }
 0x3af   : > { %5566 = vmatprep.subr.bf16.mxu1 %v8136_v28  ;;  %v7736_v16 = vld [vmem:[#allocation2 + $0x79] sm:$0xff] }
 0x3b1   : > { %3951 = vmatmul.mubr.f32.gmra.mrb[52].mxu1 %v7396_v5  ;;  %v5576_v5 = vpack.c.bf16 %v3551_v63, %v3550_v23  ;;  %v2921_v23 = vld [vmem:[#allocation2 + $0x52] sm:$0xff] }
 0x3b2   : > { %3955 = vmatprep.mubr.f32.mxu1 %v7414_v33  ;;  %5568 = vmatpush1.bf16.msra.mxu1 %v5567_v41  ;;  %v3552_v33 = vld [vmem:[#allocation9 + $0x2e0] sm:$0xff]  ;;  %v7708_v41 = vld [vmem:[#allocation2 + $0x39] sm:$0xff] }
 0x3b3   : > { %5569 = vmatprep.subr.bf16.mxu1 %v8136_v28 }
 0x3b5   : > { %3956 = vmatmul.mubr.f32.gmra.mrb[54].mxu1 %v7400_v19  ;;  %v5579_v19 = vpack.c.bf16 %v3553_v37, %v3552_v33  ;;  %v3568_v33 = vld [vmem:[#allocation9 + $0x360] sm:$0xff]  ;;  %v3569_v37 = vld [vmem:[#allocation9 + $0x368] sm:$0xff] }
 0x3b6   : > { %3960 = vmatprep.mubr.f32.mxu1 %v7423_v39  ;;  %5571 = vmatpush1.bf16.msra.mxu1 %v5570_v15  ;;  %v3554_v39 = vld [vmem:[#allocation9 + $0x2f0] sm:$0xff] }
 0x3b7   : > { %5572 = vmatprep.subr.bf16.mxu1 %v8136_v28  ;;  %v3566_v15 = vld [vmem:[#allocation9 + $0x350] sm:$0xff] }
 0x3b9   : > { %3961 = vmatmul.mubr.f32.gmra.mrb[56].mxu1 %v7412_v27  ;;  %v5582_v27 = vpack.c.bf16 %v3555_v3, %v3554_v39  ;;  %v2922_v39 = vld [vmem:[#allocation2 + $0x62] sm:$0xff]  ;;  %v5603_v3 = vpack.c.bf16 %v3569_v37, %v3568_v33  ;;  %v7748_v33 = vld [vmem:[#allocation2 + $0x91] sm:$0xff] }
 0x3ba   : > { %3965 = vmatprep.mubr.f32.mxu1 %v7430_v1  ;;  %5574 = vmatpush1.bf16.msra.mxu1 %v5573_v24  ;;  %v8139_v1 = vld [vmem:[#allocation31_spill] sm:$0xff] }
 0x3bb   : > { %5575 = vmatprep.subr.bf16.mxu1 %v8136_v28 }
 0x3bd   : > { %3966 = vmatmul.mubr.f32.gmra.mrb[58].mxu1 %v7416_v18  ;;  %v8137_v18 = vld [vmem:[#allocation26_spill] sm:$0xff] }
 0x3be   : > { %3970 = vmatprep.mubr.f32.mxu1 %v7439_v40  ;;  %5577 = vmatpush1.bf16.msra.mxu1 %v5576_v5  ;;  %v5600_v5 = vpack.c.bf16 %v3567_v26, %v3566_v15  ;;  %v2926_v15 = vld [vmem:[#allocation2 + $0x92] sm:$0xff] }
 0x3bf   : > { %5578 = vmatprep.subr.bf16.mxu1 %v8136_v28 }
 0x3c1   : > { %3971 = vmatmul.mubr.f32.gmra.mrb[60].mxu1 %v7428_v38 }
 0x3c2   : > { %3975 = vmatprep.mubr.f32.mxu1 %v7446_v56  ;;  %5580 = vmatpush1.bf16.msra.mxu1 %v5579_v19  ;;  %v7720_v19 = vld [vmem:[#allocation2 + $0x51] sm:$0xff] }
 0x3c3   : > { %5581 = vmatprep.subr.bf16.mxu1 %v8136_v28 }
 0x3c5   : > { %3976 = vmatmul.mubr.f32.gmra.mrb[62].mxu1 %v7432_v50  ;;  %v7665_v50 = vld [vmem:[#allocation2 + $0x152] sm:$0xff] }
 0x3c6   : > { %3980 = vmatprep.mubr.f32.mxu1 %v7455_v14  ;;  %5583 = vmatpush1.bf16.msra.mxu1 %v5582_v27  ;;  %v7676_v14 = vld [vmem:[#allocation2 + $0x180] sm:$0xff] }
 0x3c7   : > { %5584 = vmatprep.subr.bf16.mxu1 %v8136_v28  ;;  %v3570_v27 = vld [vmem:[#allocation9 + $0x370] sm:$0xff] }
 0x3c9   : > { %3981 = vmatmul.mubr.f32.gmra.mrb[64].mxu1 %v7444_v0 }
 0x3ca   : > { %3985 = vmatprep.mubr.f32.mxu1 %v7462_v25  ;;  %v7679_v25 = vld [vmem:[#allocation2 + $0x16a] sm:$0xff] }
 0x3cd   : > { %3986 = vmatmul.mubr.f32.gmra.mrb[66].mxu1 %v7448_v31  ;;  %v7673_v31 = vld [vmem:[#allocation2 + $0x15a] sm:$0xff] }
 0x3ce   : > { %3990 = vmatprep.mubr.f32.mxu1 %v7471_v21 }
 0x3d1   : > { %3991 = vmatmul.mubr.f32.gmra.mrb[68].mxu1 %v7460_v8 }
 0x3d2   : > { %3995 = vmatprep.mubr.f32.mxu1 %v7478_v55  ;;  %v7684_v55 = vld [vmem:[#allocation2 + $0x188] sm:$0xff] }
 0x3d5   : > { %3996 = vmatmul.mubr.f32.gmra.mrb[70].mxu1 %v7464_v43 }
 0x3d6   : > { %4000 = vmatprep.mubr.f32.mxu1 %v7487_v9 }
 0x3d9   : > { %4001 = vmatmul.mubr.f32.gmra.mrb[72].mxu1 %v7476_v51 }
 0x3da   : > { %4005 = vmatprep.mubr.f32.mxu1 %v7494_v7  ;;  %v3556_v7 = vld [vmem:[#allocation9 + $0x300] sm:$0xff] }
 0x3dd   : > { %4006 = vmatmul.mubr.f32.gmra.mrb[74].mxu1 %v7480_v47 }
 0x3de   : > { %4010 = vmatprep.mubr.f32.mxu1 %v7505_v44  ;;  %v3557_v44 = vld [vmem:[#allocation9 + $0x308] sm:$0xff] }
 0x3e1   : > { %4011 = vmatmul.mubr.f32.gmra.mrb[76].mxu1 %v7492_v35 }
 0x3e2   : > { %4015 = vmatprep.mubr.f32.mxu1 %v7515_v62  ;;  %v8138_v62 = vld [vmem:[#allocation27_spill] sm:$0xff] }
 0x3e5   : > { %4016 = vmatmul.mubr.f32.gmra.mrb[78].mxu1 %v7496_v10 }
 0x3e6   : > { %4020 = vmatprep.mubr.f32.mxu1 %v7528_v48  ;;  %v5585_v48 = vpack.c.bf16 %v3557_v44, %v3556_v7  ;;  %v7724_v7 = vld [vmem:[#allocation2 + $0x61] sm:$0xff] }
 0x3e9   : > { %4021 = vmatmul.mubr.f32.gmra.mrb[80].mxu1 %v7513_v61 }
 0x3ea   : > { %4025 = vmatprep.mubr.f32.mxu1 %v7539_v53  ;;  %v3558_v53 = vld [vmem:[#allocation9 + $0x310] sm:$0xff] }
 0x3ed   : > { %4026 = vmatmul.mubr.f32.gmra.mrb[82].mxu1 %v7517_v17 }
 0x3ee   : > { %4030 = vmatprep.mubr.f32.mxu1 %v7552_v59  ;;  %v7689_v59 = vld [vmem:[#allocation2 + $0x172] sm:$0xff] }
 0x3f0   : > { %v7657_v0 = vpop.f32.mrb[64].mxu0 }
 0x3f1   : > { %4031 = vmatmul.mubr.f32.gmra.mrb[84].mxu1 %v8137_v18  ;;  %v7660_v38 = vpop.f32.mrb[65].mxu0 }
 0x3f2   : > { %4035 = vmatprep.mubr.f32.mxu1 %v7561_v49  ;;  %v3559_v49 = vld [vmem:[#allocation9 + $0x318] sm:$0xff] }
 0x3f3   : > { %v5588_v4 = vpack.c.bf16 %v3559_v49, %v3558_v53 }
 0x3f5   : > { %4036 = vmatmul.mubr.f32.gmra.mrb[86].mxu1 %v8138_v62 }
 0x3f6   : > { %4040 = vmatprep.mubr.f32.mxu1 %v8139_v1  ;;  %v3571_v1 = vld [vmem:[#allocation9 + $0x378] sm:$0xff] }
 0x3f7   : > { %v5606_v49 = vpack.c.bf16 %v3571_v1, %v3570_v27  ;;  %v3580_v1 = vld [vmem:[#allocation9 + $0x3c0] sm:$0xff] }
 0x3f8   : > { %v7667_v40 = vpop.f32.mrb[66].mxu0 }
 0x3f9   : > { %4041 = vmatmul.mubr.f32.gmra.mrb[88].mxu1 %v7665_v50  ;;  %v7670_v56 = vpop.f32.mrb[67].mxu0 }
 0x3fa   : > { %4045 = vmatprep.mubr.f32.mxu1 %v7581_v57  ;;  %v2852_v57 = vld [vmem:[#allocation2 + $0x19] sm:$0xff] }
 0x3fd   : > { %4046 = vmatmul.mubr.f32.gmra.mrb[90].mxu1 %v7673_v31 }
 0x3fe   : > { %4050 = vmatprep.mubr.f32.mxu1 %v7676_v14 }
 0x400   : > { %v7681_v21 = vpop.f32.mrb[68].mxu0 }
 0x401   : > { %4051 = vmatmul.mubr.f32.gmra.mrb[92].mxu1 %v7679_v25  ;;  %v7686_v9 = vpop.f32.mrb[69].mxu0 }
 0x402   : > { %4055 = vmatprep.mubr.f32.mxu1 %v7684_v55 }
 0x405   : > { %4056 = vmatmul.mubr.f32.gmra.mrb[94].mxu1 %v7689_v59 }
 0x406   : > { %4125 = vmatprep.mubr.f32.mxu1 %v7591_v11  ;;  %v2918_v11 = vld [vmem:[#allocation2 + $0x32] sm:$0xff] }
 0x408   : > { %v7693_v30 = vpop.f32.mrb[70].mxu0 }
 0x409   : > { %4126 = vmatmul.mubr.f32.vlgmr.msra.gmra.mrb[32].mxu1 %v2852_v57  ;;  %v7695_v6 = vpop.f32.mrb[71].mxu0  ;;  %v3572_v57 = vld [vmem:[#allocation9 + $0x380] sm:$0xff] }
 0x40a   : > { %4130 = vmatprep.mubr.f32.mxu1 %v7596_v22  ;;  %5586 = vmatpush1.bf16.msra.mxu1 %v5585_v48  ;;  %v2919_v22 = vld [vmem:[#allocation2 + $0x3a] sm:$0xff]  ;;  %v2923_v48 = vld [vmem:[#allocation2 + $0x6a] sm:$0xff] }
 0x40b   : > { %5587 = vmatprep.subr.bf16.mxu1 %v8136_v28 }
 0x40d   : > { %4131 = vmatmul.mubr.f32.gmra.mrb[34].mxu1 %v2853_v32 }
 0x40e   : > { %4135 = vmatprep.mubr.f32.mxu1 %v2918_v11  ;;  %5589 = vmatpush1.bf16.msra.mxu1 %v5588_v4  ;;  %v3573_v4 = vld [vmem:[#allocation9 + $0x388] sm:$0xff]  ;;  %v3574_v11 = vld [vmem:[#allocation9 + $0x390] sm:$0xff] }
 0x40f   : > { %5590 = vmatprep.subr.bf16.mxu1 %v8136_v28  ;;  %v5609_v32 = vpack.c.bf16 %v3573_v4, %v3572_v57  ;;  %v2928_v57 = vld [vmem:[#allocation2 + $0xaa] sm:$0xff] }
 0x410   : > { %v7702_v20 = vpop.f32.mrb[72].mxu0 }
 0x411   : > { %4136 = vmatmul.mubr.f32.gmra.mrb[36].mxu1 %v7700_v34  ;;  %v7705_v54 = vpop.f32.mrb[73].mxu0 }
 0x412   : > { %4140 = vmatprep.mubr.f32.mxu1 %v2919_v22  ;;  %5592 = vmatpush1.bf16.msra.mxu1 %v5591_v29  ;;  %v3575_v29 = vld [vmem:[#allocation9 + $0x398] sm:$0xff] }
 0x413   : > { %5593 = vmatprep.subr.bf16.mxu1 %v8136_v28  ;;  %v2925_v22 = vld [vmem:[#allocation2 + $0x82] sm:$0xff]  ;;  %v5612_v2 = vpack.c.bf16 %v3575_v29, %v3574_v11 }
 0x414   : > { %v7760_v11 = vld [vmem:[#allocation2 + $0xa9] sm:$0xff] }
 0x415   : > { %4141 = vmatmul.mubr.f32.gmra.mrb[38].mxu1 %v7708_v41 }
 0x416   : > { %4145 = vmatprep.mubr.f32.mxu1 %v2920_v52  ;;  %5595 = vmatpush1.bf16.msra.mxu1 %v5594_v58  ;;  %v3577_v52 = vld [vmem:[#allocation9 + $0x3a8] sm:$0xff] }
 0x417   : > { %5596 = vmatprep.subr.bf16.mxu1 %v8136_v28  ;;  %v5615_v26 = vpack.c.bf16 %v3577_v52, %v3576_v45  ;;  %v3584_v52 = vld [vmem:[#allocation9 + $0x3e0] sm:$0xff] }
 0x418   : > { %v7714_v24 = vpop.f32.mrb[74].mxu0 }
 0x419   : > { %4146 = vmatmul.mubr.f32.gmra.mrb[40].mxu1 %v7712_v12  ;;  %v7717_v63 = vpop.f32.mrb[75].mxu0 }
 0x41a   : > { %4150 = vmatprep.mubr.f32.mxu1 %v2921_v23  ;;  %5598 = vmatpush1.bf16.msra.mxu1 %v5597_v13  ;;  %v7744_v13 = vld [vmem:[#allocation2 + $0x81] sm:$0xff] }
 0x41b   : > { %5599 = vmatprep.subr.bf16.mxu1 %v8136_v28  ;;  %v3578_v23 = vld [vmem:[#allocation9 + $0x3b0] sm:$0xff] }
 0x41d   : > { %4151 = vmatmul.mubr.f32.gmra.mrb[42].mxu1 %v7720_v19 }
 0x41e   : > { %4155 = vmatprep.mubr.f32.mxu1 %v2922_v39  ;;  %5601 = vmatpush1.bf16.msra.mxu1 %v5600_v5  ;;  %v3579_v5 = vld [vmem:[#allocation9 + $0x3b8] sm:$0xff]  ;;  %v2927_v39 = vld [vmem:[#allocation2 + $0x9a] sm:$0xff] }
 0x41f   : > { %5602 = vmatprep.subr.bf16.mxu1 %v8136_v28  ;;  %v5618_v27 = vpack.c.bf16 %v3579_v5, %v3578_v23  ;;  %v2930_v23 = vld [vmem:[#allocation2 + $0xc2] sm:$0xff] }
 0x420   : > { %v7726_v44 = vpop.f32.mrb[76].mxu0 }
 0x421   : > { %4156 = vmatmul.mubr.f32.gmra.mrb[44].mxu1 %v7724_v7  ;;  %v7729_v53 = vpop.f32.mrb[77].mxu0 }
 0x422   : > { %4160 = vmatprep.mubr.f32.mxu1 %v2923_v48  ;;  %5604 = vmatpush1.bf16.msra.mxu1 %v5603_v3  ;;  %v3581_v48 = vld [vmem:[#allocation9 + $0x3c8] sm:$0xff] }
 0x423   : > { %5605 = vmatprep.subr.bf16.mxu1 %v8136_v28  ;;  %v5621_v4 = vpack.c.bf16 %v3581_v48, %v3580_v1  ;;  %v7772_v1 = vld [vmem:[#allocation2 + $0xc1] sm:$0xff] }
 0x425   : > { %4161 = vmatmul.mubr.f32.gmra.mrb[46].mxu1 %v7732_v36 }
 0x426   : > { %4165 = vmatprep.mubr.f32.mxu1 %v2924_v46  ;;  %5607 = vmatpush1.bf16.msra.mxu1 %v5606_v49  ;;  %v7756_v49 = vld [vmem:[#allocation2 + $0x99] sm:$0xff] }
 0x427   : > { %5608 = vmatprep.subr.bf16.mxu1 %v8136_v28  ;;  %v3582_v46 = vld [vmem:[#allocation9 + $0x3d0] sm:$0xff] }
 0x428   : > { %v7738_v42 = vpop.f32.mrb[78].mxu0 }
 0x429   : > { %4166 = vmatmul.mubr.f32.gmra.mrb[48].mxu1 %v7736_v16  ;;  %v7741_v58 = vpop.f32.mrb[79].mxu0 }
 0x42a   : > { %4170 = vmatprep.mubr.f32.mxu1 %v2925_v22  ;;  %5610 = vmatpush1.bf16.msra.mxu1 %v5609_v32  ;;  %v3583_v32 = vld [vmem:[#allocation9 + $0x3d8] sm:$0xff]  ;;  %v2929_v22 = vld [vmem:[#allocation2 + $0xb2] sm:$0xff] }
 0x42b   : > { %5611 = vmatprep.subr.bf16.mxu1 %v8136_v28  ;;  %v5624_v45 = vpack.c.bf16 %v3583_v32, %v3582_v46  ;;  %v7780_v32 = vld [vmem:[#allocation2 + $0xc9] sm:$0xff] }
 0x42d   : > { %4171 = vmatmul.mubr.f32.gmra.mrb[50].mxu1 %v7744_v13 }
 0x42e   : > { %4175 = vmatprep.mubr.f32.mxu1 %v2926_v15  ;;  %5613 = vmatpush1.bf16.msra.mxu1 %v5612_v2  ;;  %v3585_v15 = vld [vmem:[#allocation9 + $0x3e8] sm:$0xff] }
 0x42f   : > { %5614 = vmatprep.subr.bf16.mxu1 %v8136_v28  ;;  %v5627_v5 = vpack.c.bf16 %v3585_v15, %v3584_v52 }
 0x430   : > { %v7750_v37 = vpop.f32.mrb[80].mxu0 }
 0x431   : > { %4176 = vmatmul.mubr.f32.gmra.mrb[52].mxu1 %v7748_v33  ;;  %v7753_v3 = vpop.f32.mrb[81].mxu0 }
 0x432   : > { %4180 = vmatprep.mubr.f32.mxu1 %v2927_v39  ;;  %5616 = vmatpush1.bf16.msra.mxu1 %v5615_v26  ;;  %v7768_v26 = vld [vmem:[#allocation2 + $0xb1] sm:$0xff]  ;;  %v3586_v39 = vld [vmem:[#allocation9 + $0x3f0] sm:$0xff] }
 0x433   : > { %5617 = vmatprep.subr.bf16.mxu1 %v8136_v28 }
 0x435   : > { %4181 = vmatmul.mubr.f32.gmra.mrb[54].mxu1 %v7756_v49 }
 0x436   : > { %4185 = vmatprep.mubr.f32.mxu1 %v2928_v57  ;;  %5619 = vmatpush1.bf16.msra.mxu1 %v5618_v27  ;;  %v3587_v27 = vld [vmem:[#allocation9 + $0x3f8] sm:$0xff] }
 0x437   : > { %5620 = vmatprep.subr.bf16.mxu1 %v8136_v28  ;;  %v2931_v57 = vld [vmem:[#allocation2 + $0xca] sm:$0xff]  ;;  %v5630_v46 = vpack.c.bf16 %v3587_v27, %v3586_v39  ;;  %v7832_v27 = vld [vmem:[#allocation2 + $0x182] sm:$0xff] }
 0x438   : > { %v7762_v29 = vpop.f32.mrb[82].mxu0  ;;  %v8144_v39 = vld [vmem:[#allocation25_spill] sm:$0xff] }
 0x439   : > { %4186 = vmatmul.mubr.f32.gmra.mrb[56].mxu1 %v7760_v11  ;;  %v7765_v2 = vpop.f32.mrb[83].mxu0 }
 0x43a   : > { %4190 = vmatprep.mubr.f32.mxu1 %v2929_v22  ;;  %5622 = vmatpush1.bf16.msra.mxu1 %v5621_v4  ;;  %v8140_v22 = vld [vmem:[#allocation14_spill] sm:$0xff] }
 0x43b   : > { %5623 = vmatprep.subr.bf16.mxu1 %v8136_v28 }
 0x43d   : > { %4191 = vmatmul.mubr.f32.gmra.mrb[58].mxu1 %v7768_v26 }
 0x43e   : > { %4195 = vmatprep.mubr.f32.mxu1 %v2930_v23  ;;  %5625 = vmatpush1.bf16.msra.mxu1 %v5624_v45  ;;  %v7785_v45 = vld [vmem:[#allocation2 + $0xd9] sm:$0xff] }
 0x43f   : > { %5626 = vmatprep.subr.bf16.mxu1 %v8136_v28  ;;  %v7801_v23 = vld [vmem:[#allocation2 + $0xf9] sm:$0xff] }
 0x440   : > { %v7774_v48 = vpop.f32.mrb[84].mxu0 }
 0x441   : > { %4196 = vmatmul.mubr.f32.gmra.mrb[60].mxu1 %v7772_v1  ;;  %v7777_v4 = vpop.f32.mrb[85].mxu0 }
 0x442   : > { %4200 = vmatprep.mubr.f32.mxu1 %v2931_v57  ;;  %5628 = vmatpush1.bf16.msra.mxu1 %v5627_v5  ;;  %v7805_v5 = vld [vmem:[#allocation2 + $0x109] sm:$0xff] }
 0x443   : > { %5629 = vmatprep.subr.bf16.mxu1 %v8136_v28  ;;  %v7793_v28 = vld [vmem:[#allocation2 + $0xe1] sm:$0xff] }
 0x445   : > { %4201 = vmatmul.mubr.f32.gmra.mrb[62].mxu1 %v7780_v32 }
 0x446   : > { %4205 = vmatprep.mubr.f32.mxu1 %v7460_v8  ;;  %5631 = vmatpush1.bf16.msra.mxu1 %v5630_v46  ;;  %v7797_v8 = vld [vmem:[#allocation2 + $0xf1] sm:$0xff] }
 0x447   : > { %5664 = vmatprep.subr.bf16.mxu1 %v8140_v22  ;;  %v7837_v46 = vld [vmem:[#allocation2 + $0x18a] sm:$0xff] }
 0x448   : > { %v7787_v52 = vpop.f32.mrb[86].mxu0 }
 0x449   : > { %4206 = vmatmul.mubr.f32.gmra.mrb[64].mxu1 %v7785_v45  ;;  %v7790_v15 = vpop.f32.mrb[87].mxu0 }
 0x44a   : > { %4210 = vmatprep.mubr.f32.mxu1 %v7464_v43  ;;  %v7809_v43 = vld [vmem:[#allocation2 + $0x111] sm:$0xff] }
 0x44d   : > { %4211 = vmatmul.mubr.f32.gmra.mrb[66].mxu1 %v7793_v28 }
 0x44e   : > { %4215 = vmatprep.mubr.f32.mxu1 %v7476_v51  ;;  %v7813_v51 = vld [vmem:[#allocation2 + $0x121] sm:$0xff] }
 0x451   : > { %4216 = vmatmul.mubr.f32.gmra.mrb[68].mxu1 %v7797_v8 }
 0x452   : > { %4220 = vmatprep.mubr.f32.mxu1 %v7480_v47  ;;  %v7817_v47 = vld [vmem:[#allocation2 + $0x129] sm:$0xff] }
 0x455   : > { %4221 = vmatmul.mubr.f32.gmra.mrb[70].mxu1 %v7801_v23 }
 0x456   : > { %4225 = vmatprep.mubr.f32.mxu1 %v7492_v35  ;;  %v8141_v35 = vld [vmem:[#allocation22_spill] sm:$0xff] }
 0x459   : > { %4226 = vmatmul.mubr.f32.gmra.mrb[72].mxu1 %v7805_v5 }
 0x45a   : > { %4230 = vmatprep.mubr.f32.mxu1 %v7496_v10  ;;  %v8142_v10 = vld [vmem:[#allocation23_spill] sm:$0xff] }
 0x45d   : > { %4231 = vmatmul.mubr.f32.gmra.mrb[74].mxu1 %v7809_v43 }
 0x45e   : > { %4235 = vmatprep.mubr.f32.mxu1 %v7513_v61  ;;  %v8143_v61 = vld [vmem:[#allocation24_spill] sm:$0xff] }
 0x461   : > { %4236 = vmatmul.mubr.f32.gmra.mrb[76].mxu1 %v7813_v51 }
 0x462   : > { %4240 = vmatprep.mubr.f32.mxu1 %v7517_v17  ;;  %v8145_v17 = vld [vmem:[#allocation28_spill] sm:$0xff] }
 0x465   : > { %4241 = vmatmul.mubr.f32.gmra.mrb[78].mxu1 %v7817_v47 }
 0x466   : > { %4245 = vmatprep.mubr.f32.mxu1 %v8137_v18  ;;  %v8146_v18 = vld [vmem:[#allocation29_spill] sm:$0xff] }
 0x469   : > { %4246 = vmatmul.mubr.f32.gmra.mrb[80].mxu1 %v8141_v35  ;;  %v8149_v35 = vmax.f32 %v7576_v60, 0.0  ;;  %v2982_v60 = vld [vmem:[#allocation2 + $0x48] sm:$0xff] }
 0x46a   : > { %4250 = vmatprep.mubr.f32.mxu1 %v8138_v62  ;;  %v8147_v62 = vld [vmem:[#allocation30_spill] sm:$0xff] }
 0x46b   : > { %v8148_v57 = vmax.f32 %v8147_v62, 0.0  ;;  %v8155_v62 = vld [vmem:[#allocation20_spill] sm:$0xff] }
 0x46d   : > { %4251 = vmatmul.mubr.f32.gmra.mrb[82].mxu1 %v8142_v10  ;;  %v2980_v10 = vld [vmem:[#allocation2 + $0x30] sm:$0xff] }
 0x46e   : > { %4255 = vmatprep.mubr.f32.mxu1 %v7665_v50 }
 0x471   : > { %4256 = vmatmul.mubr.f32.gmra.mrb[84].mxu1 %v8143_v61  ;;  %v8150_v61 = vld [vmem:[#allocation15_spill] sm:$0xff] }
 0x472   : > { %4260 = vmatprep.mubr.f32.mxu1 %v7673_v31 }
 0x475   : > { %4261 = vmatmul.mubr.f32.gmra.mrb[86].mxu1 %v8144_v39  ;;  %v2981_v39 = vld [vmem:[#allocation2 + $0x38] sm:$0xff] }
 0x476   : > { %4265 = vmatprep.mubr.f32.mxu1 %v7679_v25 }
 0x479   : > { %4266 = vmatmul.mubr.f32.gmra.mrb[88].mxu1 %v8145_v17  ;;  %v8151_v17 = vld [vmem:[#allocation16_spill] sm:$0xff] }
 0x47a   : > { %4270 = vmatprep.mubr.f32.mxu1 %v7689_v59 }
 0x47d   : > { %4271 = vmatmul.mubr.f32.gmra.mrb[90].mxu1 %v8146_v18  ;;  %v8154_v18 = vld [vmem:[#allocation19_spill] sm:$0xff] }
 0x47e   : > { %4275 = vmatprep.mubr.f32.mxu1 %v7832_v27 }
 0x481   : > { %4276 = vmatmul.mubr.f32.gmra.mrb[92].mxu1 %v8148_v57  ;;  %v8156_v57 = vld [vmem:[#allocation21_spill] sm:$0xff] }
 0x482   : > { %4280 = vmatprep.mubr.f32.mxu1 %v7837_v46 }
 0x485   : > { %4281 = vmatmul.mubr.f32.gmra.mrb[94].mxu1 %v8149_v35  ;;  %v2988_v35 = vld [vmem:[#allocation2 + $0x90] sm:$0xff] }
 0x486   : > { %4350 = vmatprep.mubr.f32.mxu1 %v7700_v34  ;;  %v8152_v34 = vld [vmem:[#allocation17_spill] sm:$0xff] }
 0x489   : > { %4351 = vmatmul.mubr.f32.vlgmr.msra.gmra.mrb[32].mxu1 %v2980_v10  ;;  %v2990_v10 = vld [vmem:[#allocation2 + $0xa8] sm:$0xff] }
 0x48a   : > { %4355 = vmatprep.mubr.f32.mxu1 %v7708_v41  ;;  %5672 = vmatpush3.bf16.msra.mxu1 %v8140_v22  ;;  %v2983_v41 = vld [vmem:[#allocation2 + $0x50] sm:$0xff] }
 0x48b   : > { %5665 = vmatprep.subr.bf16.mxu1 %v8150_v61  ;;  %v8153_v22 = vld [vmem:[#allocation18_spill] sm:$0xff] }
 0x48d   : > { %4356 = vmatmul.mubr.f32.gmra.mrb[34].mxu1 %v2981_v39  ;;  %v3066_v39 = vld [vmem:[#allocation2 + $0x139] sm:$0xff] }
 0x48e   : > { %4360 = vmatprep.mubr.f32.mxu1 %v7712_v12  ;;  %5673 = vmatpush3.bf16.msra.mxu1 %v8150_v61  ;;  %v2984_v12 = vld [vmem:[#allocation2 + $0x60] sm:$0xff] }
 0x48f   : > { %5666 = vmatprep.subr.bf16.mxu1 %v8151_v17  ;;  %v2992_v61 = vld [vmem:[#allocation2 + $0xc0] sm:$0xff] }
 0x491   : > { %4361 = vmatmul.mubr.f32.gmra.mrb[36].mxu1 %v2982_v60  ;;  %v3068_v60 = vld [vmem:[#allocation2 + $0x151] sm:$0xff] }
 0x492   : > { %4365 = vmatprep.mubr.f32.mxu1 %v7720_v19  ;;  %5674 = vmatpush3.bf16.msra.mxu1 %v8151_v17  ;;  %v2985_v19 = vld [vmem:[#allocation2 + $0x68] sm:$0xff] }
 0x493   : > { %5667 = vmatprep.subr.bf16.mxu1 %v8152_v34  ;;  %v3067_v17 = vld [vmem:[#allocation2 + $0x141] sm:$0xff] }
 0x495   : > { %4366 = vmatmul.mubr.f32.gmra.mrb[38].mxu1 %v2983_v41  ;;  %v3070_v41 = vld [vmem:[#allocation2 + $0x169] sm:$0xff] }
 0x496   : > { %4370 = vmatprep.mubr.f32.mxu1 %v7724_v7  ;;  %5675 = vmatpush3.bf16.msra.mxu1 %v8152_v34  ;;  %v2986_v7 = vld [vmem:[#allocation2 + $0x78] sm:$0xff] }
 0x497   : > { %5668 = vmatprep.subr.bf16.mxu1 %v8153_v22  ;;  %v3069_v34 = vld [vmem:[#allocation2 + $0x159] sm:$0xff] }
 0x499   : > { %4371 = vmatmul.mubr.f32.gmra.mrb[40].mxu1 %v2984_v12  ;;  %v3007_v12 = vld [vmem:[#allocation2 + $0x170] sm:$0xff] }
 0x49a   : > { %4375 = vmatprep.mubr.f32.mxu1 %v7732_v36  ;;  %5676 = vmatpush3.bf16.msra.mxu1 %v8153_v22  ;;  %v2987_v36 = vld [vmem:[#allocation2 + $0x80] sm:$0xff]  ;;  %v3071_v22 = vld [vmem:[#allocation2 + $0x171] sm:$0xff] }
 0x49b   : > { %5669 = vmatprep.subr.bf16.mxu1 %v8154_v18 }
 0x49d   : > { %4376 = vmatmul.mubr.f32.gmra.mrb[42].mxu1 %v2985_v19  ;;  %v3073_v19 = vld [vmem:[#allocation2 + $0x189] sm:$0xff] }
 0x49e   : > { %4380 = vmatprep.mubr.f32.mxu1 %v7736_v16  ;;  %5677 = vmatpush3.bf16.msra.mxu1 %v8154_v18  ;;  %v2989_v16 = vld [vmem:[#allocation2 + $0x98] sm:$0xff]  ;;  %v3072_v18 = vld [vmem:[#allocation2 + $0x181] sm:$0xff] }
 0x49f   : > { %5670 = vmatprep.subr.bf16.mxu1 %v8155_v62 }
 0x4a1   : > { %4381 = vmatmul.mubr.f32.gmra.mrb[44].mxu1 %v2986_v7  ;;  %v3075_v7 = vld [vmem:[#allocation2 + $0x1a1] sm:$0xff] }
 0x4a2   : > { %4385 = vmatprep.mubr.f32.mxu1 %v7744_v13  ;;  %5678 = vmatpush3.bf16.msra.mxu1 %v8155_v62  ;;  %v2991_v13 = vld [vmem:[#allocation2 + $0xb0] sm:$0xff]  ;;  %v3074_v62 = vld [vmem:[#allocation2 + $0x199] sm:$0xff] }
 0x4a3   : > { %5671 = vmatprep.subr.bf16.mxu1 %v8156_v57 }
 0x4a5   : > { %4386 = vmatmul.mubr.f32.gmra.mrb[46].mxu1 %v2987_v36  ;;  %v4736_v36 = vld [vmem:[%s6620_s12] sm:$0xff] }
 0x4a6   : > { %4390 = vmatprep.mubr.f32.mxu1 %v7748_v33  ;;  %5679 = vmatpush3.bf16.msra.mxu1 %v8156_v57  ;;  %v2993_v33 = vld [vmem:[#allocation2 + $0xc8] sm:$0xff]  ;;  %v6234_v57 = vld [vmem:[#allocation2] sm:$0xff] }
 0x4a9   : > { %4391 = vmatmul.mubr.f32.gmra.mrb[48].mxu1 %v2988_v35 }
 0x4aa   : > { %4395 = vmatprep.mubr.f32.mxu1 %v7756_v49  ;;  %v2994_v49 = vld [vmem:[#allocation2 + $0xd8] sm:$0xff] }
 0x4ad   : > { %4396 = vmatmul.mubr.f32.gmra.mrb[50].mxu1 %v2989_v16 }
 0x4ae   : > { %4400 = vmatprep.mubr.f32.mxu1 %v7760_v11  ;;  %v2995_v11 = vld [vmem:[#allocation2 + $0xe0] sm:$0xff] }
 0x4b1   : > { %4401 = vmatmul.mubr.f32.gmra.mrb[52].mxu1 %v2990_v10 }
 0x4b2   : > { %4405 = vmatprep.mubr.f32.mxu1 %v7768_v26  ;;  %v2996_v26 = vld [vmem:[#allocation2 + $0xf0] sm:$0xff] }
 0x4b5   : > { %4406 = vmatmul.mubr.f32.gmra.mrb[54].mxu1 %v2991_v13  ;;  %v4737_v13 = vld [vmem:[%s6620_s12 + $0x8] sm:$0xff] }
 0x4b6   : > { %4410 = vmatprep.mubr.f32.mxu1 %v7772_v1  ;;  %v2997_v1 = vld [vmem:[#allocation2 + $0xf8] sm:$0xff] }
 0x4b9   : > { %4411 = vmatmul.mubr.f32.gmra.mrb[56].mxu1 %v2992_v61 }
 0x4ba   : > { %4415 = vmatprep.mubr.f32.mxu1 %v7780_v32  ;;  %v2998_v32 = vld [vmem:[#allocation2 + $0x108] sm:$0xff] }
 0x4bd   : > { %4416 = vmatmul.mubr.f32.gmra.mrb[58].mxu1 %v2993_v33 }
 0x4be   : > { %4420 = vmatprep.mubr.f32.mxu1 %v7785_v45  ;;  %v2999_v45 = vld [vmem:[#allocation2 + $0x110] sm:$0xff] }
 0x4c1   : > { %4421 = vmatmul.mubr.f32.gmra.mrb[60].mxu1 %v2994_v49 }
 0x4c2   : > { %4425 = vmatprep.mubr.f32.mxu1 %v7793_v28  ;;  %v3000_v28 = vld [vmem:[#allocation2 + $0x120] sm:$0xff] }
 0x4c5   : > { %4426 = vmatmul.mubr.f32.gmra.mrb[62].mxu1 %v2995_v11 }
 0x4c6   : > { %4430 = vmatprep.mubr.f32.mxu1 %v7797_v8  ;;  %v3001_v8 = vld [vmem:[#allocation2 + $0x128] sm:$0xff] }
 0x4c9   : > { %4431 = vmatmul.mubr.f32.gmra.mrb[64].mxu1 %v2996_v26  ;;  %v4738_v26 = vld [vmem:[%s6620_s12 + $0x10] sm:$0xff] }
 0x4ca   : > { %4435 = vmatprep.mubr.f32.mxu1 %v7801_v23  ;;  %v3002_v23 = vld [vmem:[#allocation2 + $0x138] sm:$0xff] }
 0x4cd   : > { %4436 = vmatmul.mubr.f32.gmra.mrb[66].mxu1 %v2997_v1 }
 0x4ce   : > { %4440 = vmatprep.mubr.f32.mxu1 %v7805_v5  ;;  %v3003_v5 = vld [vmem:[#allocation2 + $0x140] sm:$0xff] }
 0x4d1   : > { %4441 = vmatmul.mubr.f32.gmra.mrb[68].mxu1 %v2998_v32 }
 0x4d2   : > { %4445 = vmatprep.mubr.f32.mxu1 %v7809_v43  ;;  %v3004_v43 = vld [vmem:[#allocation2 + $0x150] sm:$0xff] }
 0x4d5   : > { %4446 = vmatmul.mubr.f32.gmra.mrb[70].mxu1 %v2999_v45 }
 0x4d6   : > { %4450 = vmatprep.mubr.f32.mxu1 %v7813_v51  ;;  %v3005_v51 = vld [vmem:[#allocation2 + $0x158] sm:$0xff] }
 0x4d9   : > { %4451 = vmatmul.mubr.f32.gmra.mrb[72].mxu1 %v3000_v28 }
 0x4da   : > { %4455 = vmatprep.mubr.f32.mxu1 %v7817_v47  ;;  %v3006_v47 = vld [vmem:[#allocation2 + $0x168] sm:$0xff] }
 0x4dd   : > { %4456 = vmatmul.mubr.f32.gmra.mrb[74].mxu1 %v3001_v8 }
 0x4de   : > { %4460 = vmatprep.mubr.f32.mxu1 %v3066_v39  ;;  %v4739_v39 = vld [vmem:[%s6620_s12 + $0x18] sm:$0xff] }
 0x4e1   : > { %4461 = vmatmul.mubr.f32.gmra.mrb[76].mxu1 %v3002_v23 }
 0x4e2   : > { %4465 = vmatprep.mubr.f32.mxu1 %v3067_v17 }
 0x4e5   : > { %4466 = vmatmul.mubr.f32.gmra.mrb[78].mxu1 %v3003_v5 }
 0x4e6   : > { %4470 = vmatprep.mubr.f32.mxu1 %v3068_v60 }
 0x4e9   : > { %4471 = vmatmul.mubr.f32.gmra.mrb[80].mxu1 %v3004_v43  ;;  %v4740_v43 = vld [vmem:[%s6620_s12 + $0x20] sm:$0xff] }
 0x4ea   : > { %4475 = vmatprep.mubr.f32.mxu1 %v3069_v34 }
 0x4ed   : > { %4476 = vmatmul.mubr.f32.gmra.mrb[82].mxu1 %v3005_v51 }
 0x4ee   : > { %4480 = vmatprep.mubr.f32.mxu1 %v3070_v41 }
 0x4f1   : > { %4481 = vmatmul.mubr.f32.gmra.mrb[84].mxu1 %v3006_v47 }
 0x4f2   : > { %4485 = vmatprep.mubr.f32.mxu1 %v3071_v22  ;;  %v4741_v22 = vld [vmem:[%s6620_s12 + $0x28] sm:$0xff] }
 0x4f5   : > { %4486 = vmatmul.mubr.f32.gmra.mrb[86].mxu1 %v3007_v12 }
 0x4f6   : > { %4490 = vmatprep.mubr.f32.mxu1 %v3072_v18 }
 0x4f9   : > { %4491 = vmatmul.mubr.f32.gmra.mrb[88].mxu1 %v7676_v14  ;;  %v3138_v14 = vld [vmem:[#allocation2 + $0x19a] sm:$0xff] }
 0x4fa   : > { %4495 = vmatprep.mubr.f32.mxu1 %v3073_v19 }
 0x4fd   : > { %4496 = vmatmul.mubr.f32.gmra.mrb[90].mxu1 %v7684_v55  ;;  %v3139_v55 = vld [vmem:[#allocation2 + $0x1a2] sm:$0xff] }
 0x4fe   : > { %4500 = vmatprep.mubr.f32.mxu1 %v3074_v62 }
 0x501   : > { %4501 = vmatmul.mubr.f32.gmra.mrb[92].mxu1 %v6234_v57 }
 0x502   : > { %4505 = vmatprep.mubr.f32.mxu1 %v3075_v7  ;;  %v4742_v7 = vld [vmem:[%s6620_s12 + $0x30] sm:$0xff] }
 0x505   : > { %4506 = vmatmul.mubr.f32.gmra.mrb[94].mxu1 %v6234_v57 }
 0x506   : > { %5204 = vmatprep.mubr.f32.mxu1 %v7665_v50  ;;  %v7890_v50 = vld [vmem:[%s8071_s4] ss:$0 sm:$0xff] }
 0x509   : > { %5205 = vmatmul.mubr.f32.vlgmr.msra.gmra.mrb[96].mxu1 %v7673_v31 }
 0x50a   : > { %5207 = vmatprep.mubr.f32.mxu1 %v7679_v25 }
 0x50d   : > { %5208 = vmatmul.mubr.f32.gmra.mrb[98].mxu1 %v7689_v59 }
 0x50e   : > { %5210 = vmatprep.mubr.f32.mxu1 %v7832_v27 }
 0x511   : > { %5211 = vmatmul.mubr.f32.gmra.mrb[100].mxu1 %v7837_v46 }
 0x512   : > { %5213 = vmatprep.mubr.f32.mxu1 %v3138_v14 }
 0x515   : > { %5214 = vmatmul.mubr.f32.gmra.mrb[102].mxu1 %v3139_v55 }
 0x55c   : > { %v4352_v31 = vpop.f32.mrb[32].mxu1 }
 0x55d   : > { %v5712_v25 = vadd.f32 %v7890_v50, %v4352_v31  ;;  %v4354_v59 = vpop.f32.mrb[33].mxu1 }
 0x55f   : > { %v4578_v27 = vadd.f32 %v5712_v25, %v7660_v38  ;;  %v4743_v25 = vld [vmem:[%s6620_s12 + $0x38] sm:$0xff] }
 0x560   : > { %v4357_v35 = vpop.f32.mrb[34].mxu1 }
 0x561   : > { %v4768_v16 = vadd.f32 %v4736_v36, %v4578_v27  ;;  %v5713_v46 = vadd.f32 %v7890_v50, %v4357_v35  ;;  %v4359_v10 = vpop.f32.mrb[35].mxu1 }
 0x563   : > { %4800 = vst [vmem:[%s7899_s10] sm:$0xff] %v4768_v16  ;;  %v4583_v61 = vadd.f32 %v5713_v46, %v7657_v0  ;;  %v4744_v16 = vld [vmem:[%s6620_s12 + $0x40] sm:$0xff] }
 0x564   : > { %v4362_v33 = vpop.f32.mrb[36].mxu1 }
 0x565   : > { %v4769_v49 = vadd.f32 %v4737_v13, %v4583_v61  ;;  %v5714_v38 = vadd.f32 %v7890_v50, %v4362_v33  ;;  %v4364_v11 = vpop.f32.mrb[37].mxu1  ;;  %v4745_v33 = vld [vmem:[%s6620_s12 + $0x48] sm:$0xff] }
 0x567   : > { %4801 = vst [vmem:[%s7899_s10 + $0x8] sm:$0xff] %v4769_v49  ;;  %v4588_v1 = vadd.f32 %v5714_v38, %v7670_v56 }
 0x568   : > { %v4367_v32 = vpop.f32.mrb[38].mxu1 }
 0x569   : > { %v4770_v45 = vadd.f32 %v4738_v26, %v4588_v1  ;;  %v5715_v28 = vadd.f32 %v7890_v50, %v4367_v32  ;;  %v4369_v8 = vpop.f32.mrb[39].mxu1  ;;  %v4746_v1 = vld [vmem:[%s6620_s12 + $0x50] sm:$0xff] }
 0x56b   : > { %4802 = vst [vmem:[%s7899_s10 + $0x10] sm:$0xff] %v4770_v45  ;;  %v4593_v0 = vadd.f32 %v5715_v28, %v7667_v40 }
 0x56c   : > { %v4372_v23 = vpop.f32.mrb[40].mxu1 }
 0x56d   : > { %v4771_v17 = vadd.f32 %v4739_v39, %v4593_v0  ;;  %v5716_v5 = vadd.f32 %v7890_v50, %v4372_v23  ;;  %v4374_v60 = vpop.f32.mrb[41].mxu1  ;;  %v4747_v39 = vld [vmem:[%s6620_s12 + $0x58] sm:$0xff] }
 0x56e   : > { %v4748_v60 = vld [vmem:[%s6620_s12 + $0x60] sm:$0xff] }
 0x56f   : > { %4803 = vst [vmem:[%s7899_s10 + $0x18] sm:$0xff] %v4771_v17  ;;  %v4598_v56 = vadd.f32 %v5716_v5, %v7686_v9 }
 0x570   : > { %v4377_v34 = vpop.f32.mrb[42].mxu1 }
 0x571   : > { %v4772_v51 = vadd.f32 %v4740_v43, %v4598_v56  ;;  %v5717_v41 = vadd.f32 %v7890_v50, %v4377_v34  ;;  %v4379_v47 = vpop.f32.mrb[43].mxu1 }
 0x573   : > { %4804 = vst [vmem:[%s7899_s10 + $0x20] sm:$0xff] %v4772_v51  ;;  %v4603_v40 = vadd.f32 %v5717_v41, %v7681_v21  ;;  %v4749_v41 = vld [vmem:[%s6620_s12 + $0x68] sm:$0xff] }
 0x574   : > { %v4382_v12 = vpop.f32.mrb[44].mxu1 }
 0x575   : > { %v4773_v18 = vadd.f32 %v4741_v22, %v4603_v40  ;;  %v5718_v19 = vadd.f32 %v7890_v50, %v4382_v12  ;;  %v4384_v62 = vpop.f32.mrb[45].mxu1 }
 0x577   : > { %4805 = vst [vmem:[%s7899_s10 + $0x28] sm:$0xff] %v4773_v18  ;;  %v4608_v9 = vadd.f32 %v5718_v19, %v7695_v6  ;;  %v4750_v18 = vld [vmem:[%s6620_s12 + $0x70] sm:$0xff] }
 0x578   : > { %v4387_v57 = vpop.f32.mrb[46].mxu1 }
 0x579   : > { %v4774_v14 = vadd.f32 %v4742_v7, %v4608_v9  ;;  %v5719_v55 = vadd.f32 %v7890_v50, %v4387_v57  ;;  %v4389_v31 = vpop.f32.mrb[47].mxu1  ;;  %v4751_v57 = vld [vmem:[%s6620_s12 + $0x78] sm:$0xff] }
 0x57b   : > { %4806 = vst [vmem:[%s7899_s10 + $0x30] sm:$0xff] %v4774_v14  ;;  %v4613_v21 = vadd.f32 %v5719_v55, %v7693_v30 }
 0x57c   : > { %v4392_v59 = vpop.f32.mrb[48].mxu1 }
 0x57d   : > { %v4775_v36 = vadd.f32 %v4743_v25, %v4613_v21  ;;  %v5720_v27 = vadd.f32 %v7890_v50, %v4392_v59  ;;  %v4394_v35 = vpop.f32.mrb[49].mxu1  ;;  %v4752_v21 = vld [vmem:[%s6620_s12 + $0x80] sm:$0xff] }
 0x57f   : > { %4807 = vst [vmem:[%s7899_s10 + $0x38] sm:$0xff] %v4775_v36  ;;  %v4618_v6 = vadd.f32 %v5720_v27, %v7705_v54 }
 0x580   : > { %v4397_v46 = vpop.f32.mrb[50].mxu1 }
 0x581   : > { %v4776_v10 = vadd.f32 %v4744_v16, %v4618_v6  ;;  %v5721_v13 = vadd.f32 %v7890_v50, %v4397_v46  ;;  %v4399_v61 = vpop.f32.mrb[51].mxu1  ;;  %v4753_v16 = vld [vmem:[%s6620_s12 + $0x88] sm:$0xff] }
 0x582   : > { %v4754_v61 = vld [vmem:[%s6620_s12 + $0x90] sm:$0xff] }
 0x583   : > { %4808 = vst [vmem:[%s7899_s10 + $0x40] sm:$0xff] %v4776_v10  ;;  %v4623_v30 = vadd.f32 %v5721_v13, %v7702_v20 }
 0x584   : > { %v4402_v49 = vpop.f32.mrb[52].mxu1 }
 0x585   : > { %v4777_v38 = vadd.f32 %v4745_v33, %v4623_v30  ;;  %v5722_v11 = vadd.f32 %v7890_v50, %v4402_v49  ;;  %v4404_v26 = vpop.f32.mrb[53].mxu1 }
 0x587   : > { %4809 = vst [vmem:[%s7899_s10 + $0x48] sm:$0xff] %v4777_v38  ;;  %v4628_v54 = vadd.f32 %v5722_v11, %v7717_v63  ;;  %v4755_v11 = vld [vmem:[%s6620_s12 + $0x98] sm:$0xff] }
 0x588   : > { %v4407_v32 = vpop.f32.mrb[54].mxu1 }
 0x589   : > { %v4778_v45 = vadd.f32 %v4746_v1, %v4628_v54  ;;  %v5723_v28 = vadd.f32 %v7890_v50, %v4407_v32  ;;  %v4409_v8 = vpop.f32.mrb[55].mxu1 }
 0x58b   : > { %4810 = vst [vmem:[%s7899_s10 + $0x50] sm:$0xff] %v4778_v45  ;;  %v4633_v20 = vadd.f32 %v5723_v28, %v7714_v24  ;;  %v4756_v45 = vld [vmem:[%s6620_s12 + $0xa0] sm:$0xff] }
 0x58c   : > { %v4412_v0 = vpop.f32.mrb[56].mxu1 }
 0x58d   : > { %v4779_v23 = vadd.f32 %v4747_v39, %v4633_v20  ;;  %v5724_v17 = vadd.f32 %v7890_v50, %v4412_v0  ;;  %v4414_v5 = vpop.f32.mrb[57].mxu1  ;;  %v4757_v0 = vld [vmem:[%s6620_s12 + $0xa8] sm:$0xff] }
 0x58f   : > { %4811 = vst [vmem:[%s7899_s10 + $0x58] sm:$0xff] %v4779_v23  ;;  %v4638_v63 = vadd.f32 %v5724_v17, %v7729_v53 }
 0x590   : > { %v4417_v43 = vpop.f32.mrb[58].mxu1 }
 0x591   : > { %v4780_v56 = vadd.f32 %v4748_v60, %v4638_v63  ;;  %v5725_v34 = vadd.f32 %v7890_v50, %v4417_v43  ;;  %v4419_v51 = vpop.f32.mrb[59].mxu1  ;;  %v4758_v63 = vld [vmem:[%s6620_s12 + $0xb0] sm:$0xff] }
 0x593   : > { %4812 = vst [vmem:[%s7899_s10 + $0x60] sm:$0xff] %v4780_v56  ;;  %v4643_v24 = vadd.f32 %v5725_v34, %v7726_v44 }
 0x594   : > { %v4422_v47 = vpop.f32.mrb[60].mxu1 }
 0x595   : > { %v4781_v22 = vadd.f32 %v4749_v41, %v4643_v24  ;;  %v5726_v40 = vadd.f32 %v7890_v50, %v4422_v47  ;;  %v4424_v12 = vpop.f32.mrb[61].mxu1  ;;  %v4759_v41 = vld [vmem:[%s6620_s12 + $0xb8] sm:$0xff] }
 0x597   : > { %4813 = vst [vmem:[%s7899_s10 + $0x68] sm:$0xff] %v4781_v22  ;;  %v4648_v53 = vadd.f32 %v5726_v40, %v7741_v58 }
 0x598   : > { %v4427_v19 = vpop.f32.mrb[62].mxu1 }
 0x599   : > { %v4782_v62 = vadd.f32 %v4750_v18, %v4648_v53  ;;  %v5727_v7 = vadd.f32 %v7890_v50, %v4427_v19  ;;  %v4429_v9 = vpop.f32.mrb[63].mxu1 }
 0x59b   : > { %4814 = vst [vmem:[%s7899_s10 + $0x70] sm:$0xff] %v4782_v62  ;;  %v4653_v44 = vadd.f32 %v5727_v7, %v7738_v42 }
 0x59c   : > { %v4432_v14 = vpop.f32.mrb[64].mxu1 }
 0x59d   : > { %v4783_v55 = vadd.f32 %v4751_v57, %v4653_v44  ;;  %v5728_v31 = vadd.f32 %v7890_v50, %v4432_v14  ;;  %v4434_v25 = vpop.f32.mrb[65].mxu1 }
 0x59f   : > { %4815 = vst [vmem:[%s7899_s10 + $0x78] sm:$0xff] %v4783_v55  ;;  %v4658_v58 = vadd.f32 %v5728_v31, %v7753_v3 }
 0x5a0   : > { %v4437_v59 = vpop.f32.mrb[66].mxu1 }
 0x5a1   : > { %v4784_v36 = vadd.f32 %v4752_v21, %v4658_v58  ;;  %v5729_v27 = vadd.f32 %v7890_v50, %v4437_v59  ;;  %v4439_v35 = vpop.f32.mrb[67].mxu1  ;;  %v4761_v58 = vld [vmem:[%s6620_s12 + $0xc8] sm:$0xff] }
 0x5a3   : > { %4816 = vst [vmem:[%s7899_s10 + $0x80] sm:$0xff] %v4784_v36  ;;  %v4663_v42 = vadd.f32 %v5729_v27, %v7750_v37  ;;  %v4760_v27 = vld [vmem:[%s6620_s12 + $0xc0] sm:$0xff] }
 0x5a4   : > { %v4442_v6 = vpop.f32.mrb[68].mxu1 }
 0x5a5   : > { %v4785_v46 = vadd.f32 %v4753_v16, %v4663_v42  ;;  %v5730_v10 = vadd.f32 %v7890_v50, %v4442_v6  ;;  %v4444_v13 = vpop.f32.mrb[69].mxu1 }
 0x5a6   : > { %v4763_v13 = vld [vmem:[%s6620_s12 + $0xd8] sm:$0xff] }
 0x5a7   : > { %4817 = vst [vmem:[%s7899_s10 + $0x88] sm:$0xff] %v4785_v46  ;;  %v4668_v3 = vadd.f32 %v5730_v10, %v7765_v2 }
 0x5a8   : > { %v4447_v33 = vpop.f32.mrb[70].mxu1 }
 0x5a9   : > { %v4786_v30 = vadd.f32 %v4754_v61, %v4668_v3  ;;  %v5731_v49 = vadd.f32 %v7890_v50, %v4447_v33  ;;  %v4449_v38 = vpop.f32.mrb[71].mxu1  ;;  %v4762_v33 = vld [vmem:[%s6620_s12 + $0xd0] sm:$0xff] }
 0x5ab   : > { %4818 = vst [vmem:[%s7899_s10 + $0x90] sm:$0xff] %v4786_v30  ;;  %v4673_v37 = vadd.f32 %v5731_v49, %v7762_v29 }
 0x5ac   : > { %v4452_v26 = vpop.f32.mrb[72].mxu1 }
 0x5ad   : > { %v4787_v1 = vadd.f32 %v4755_v11, %v4673_v37  ;;  %v5732_v54 = vadd.f32 %v7890_v50, %v4452_v26  ;;  %v4454_v32 = vpop.f32.mrb[73].mxu1 }
 0x5af   : > { %4819 = vst [vmem:[%s7899_s10 + $0x98] sm:$0xff] %v4787_v1  ;;  %v4678_v2 = vadd.f32 %v5732_v54, %v7777_v4  ;;  %v4765_v1 = vld [vmem:[%s6620_s12 + $0xe8] sm:$0xff] }
 0x5b0   : > { %v4457_v28 = vpop.f32.mrb[74].mxu1 }
 0x5b1   : > { %v4788_v8 = vadd.f32 %v4756_v45, %v4678_v2  ;;  %v5733_v39 = vadd.f32 %v7890_v50, %v4457_v28  ;;  %v4459_v20 = vpop.f32.mrb[75].mxu1  ;;  %v4764_v45 = vld [vmem:[%s6620_s12 + $0xe0] sm:$0xff] }
 0x5b3   : > { %4820 = vst [vmem:[%s7899_s10 + $0xa0] sm:$0xff] %v4788_v8  ;;  %v4683_v29 = vadd.f32 %v5733_v39, %v7774_v48 }
 0x5b4   : > { %v4462_v23 = vpop.f32.mrb[76].mxu1 }
 0x5b5   : > { %v4789_v17 = vadd.f32 %v4757_v0, %v4683_v29  ;;  %v5734_v5 = vadd.f32 %v7890_v50, %v4462_v23  ;;  %v4464_v60 = vpop.f32.mrb[77].mxu1  ;;  %v4767_v29 = vld [vmem:[%s6620_s12 + $0xf8] sm:$0xff] }
 0x5b7   : > { %4821 = vst [vmem:[%s7899_s10 + $0xa8] sm:$0xff] %v4789_v17  ;;  %v4688_v4 = vadd.f32 %v5734_v5, %v7790_v15  ;;  %v4766_v5 = vld [vmem:[%s6620_s12 + $0xf0] sm:$0xff] }
 0x5b8   : > { %v4467_v43 = vpop.f32.mrb[78].mxu1 }
 0x5b9   : > { %v4790_v56 = vadd.f32 %v4758_v63, %v4688_v4  ;;  %v5735_v34 = vadd.f32 %v7890_v50, %v4467_v43  ;;  %v4469_v51 = vpop.f32.mrb[79].mxu1 }
 0x5bb   : > { %4822 = vst [vmem:[%s7899_s10 + $0xb0] sm:$0xff] %v4790_v56  ;;  %v4693_v24 = vadd.f32 %v5735_v34, %v7787_v52 }
 0x5bc   : > { %v4472_v48 = vpop.f32.mrb[80].mxu1 }
 0x5bd   : > { %v4791_v47 = vadd.f32 %v4759_v41, %v4693_v24  ;;  %v4474_v22 = vpop.f32.mrb[81].mxu1  ;;  %v5736_v25 = vadd.f32 %v7890_v50, %v4472_v48 }
 0x5bf   : > { %4823 = vst [vmem:[%s7899_s10 + $0xb8] sm:$0xff] %v4791_v47 }
 0x5c0   : > { %v4477_v40 = vpop.f32.mrb[82].mxu1 }
 0x5c1   : > { %v4479_v12 = vpop.f32.mrb[83].mxu1  ;;  %v5737_v31 = vadd.f32 %v7890_v50, %v4477_v40 }
 0x5c4   : > { %v4482_v18 = vpop.f32.mrb[84].mxu1 }
 0x5c5   : > { %v4484_v53 = vpop.f32.mrb[85].mxu1  ;;  %v5738_v6 = vadd.f32 %v7890_v50, %v4482_v18 }
 0x5c8   : > { %v4487_v19 = vpop.f32.mrb[86].mxu1 }
 0x5c9   : > { %v4489_v15 = vpop.f32.mrb[87].mxu1  ;;  %v5739_v16 = vadd.f32 %v7890_v50, %v4487_v19 }
 0x5cc   : > { %v4492_v62 = vpop.f32.mrb[88].mxu1 }
 0x5cd   : > { %v4494_v7 = vpop.f32.mrb[89].mxu1  ;;  %v5740_v11 = vadd.f32 %v7890_v50, %v4492_v62 }
 0x5d0   : > { %v4497_v9 = vpop.f32.mrb[90].mxu1 }
 0x5d1   : > { %v4499_v57 = vpop.f32.mrb[91].mxu1  ;;  %v5741_v49 = vadd.f32 %v7890_v50, %v4497_v9 }
 0x5d4   : > { %v4502_v44 = vpop.f32.mrb[92].mxu1 }
 0x5d5   : > { %v4504_v14 = vpop.f32.mrb[93].mxu1  ;;  %v5742_v39 = vadd.f32 %v7890_v50, %v4502_v44 }
 0x5d8   : > { %v4507_v52 = vpop.f32.mrb[94].mxu1 }
 0x5d9   : > { %v4509_v55 = vpop.f32.mrb[95].mxu1  ;;  %v5743_v28 = vadd.f32 %v7890_v50, %v4507_v52 }
 0x5dc   : > { %v5206_v21 = vpop.f32.mrb[96].mxu1 }
 0x5dd   : > { %v4703_v59 = vadd.f32 %v5737_v31, %v5206_v21  ;;  %v4697_v36 = vpop.f32.mrb[97].mxu1 }
 0x5de   : > { %v4698_v35 = vadd.f32 %v5736_v25, %v4697_v36 }
 0x5df   : > { %v4793_v42 = vadd.f32 %v4761_v58, %v4703_v59 }
 0x5e0   : > { %v4792_v46 = vadd.f32 %v4760_v27, %v4698_v35  ;;  %v5209_v10 = vpop.f32.mrb[98].mxu1 }
 0x5e1   : > { %4825 = vst [vmem:[%s7899_s10 + $0xc8] sm:$0xff] %v4793_v42  ;;  %v4713_v61 = vadd.f32 %v5739_v16, %v5209_v10  ;;  %v4707_v3 = vpop.f32.mrb[99].mxu1 }
 0x5e2   : > { %4824 = vst [vmem:[%s7899_s10 + $0xc0] sm:$0xff] %v4792_v46  ;;  %v4708_v30 = vadd.f32 %v5738_v6, %v4707_v3 }
 0x5e3   : > { %v4795_v38 = vadd.f32 %v4763_v13, %v4713_v61 }
 0x5e4   : > { %v4794_v37 = vadd.f32 %v4762_v33, %v4708_v30  ;;  %v5212_v26 = vpop.f32.mrb[100].mxu1 }
 0x5e5   : > { %4827 = vst [vmem:[%s7899_s10 + $0xd8] sm:$0xff] %v4795_v38  ;;  %v4723_v54 = vadd.f32 %v5741_v49, %v5212_v26  ;;  %v4717_v32 = vpop.f32.mrb[101].mxu1 }
 0x5e6   : > { %4826 = vst [vmem:[%s7899_s10 + $0xd0] sm:$0xff] %v4794_v37  ;;  %v4718_v2 = vadd.f32 %v5740_v11, %v4717_v32 }
 0x5e7   : > { %v4797_v8 = vadd.f32 %v4765_v1, %v4723_v54 }
 0x5e8   : > { %v4796_v20 = vadd.f32 %v4764_v45, %v4718_v2  ;;  %v5215_v0 = vpop.f32.mrb[102].mxu1 }
 0x5e9   : > { %4829 = vst [vmem:[%s7899_s10 + $0xe8] sm:$0xff] %v4797_v8  ;;  %v4733_v23 = vadd.f32 %v5743_v28, %v5215_v0  ;;  %v4727_v17 = vpop.f32.mrb[103].mxu1 }
 0x5ea   : > { %4828 = vst [vmem:[%s7899_s10 + $0xe0] sm:$0xff] %v4796_v20  ;;  %v4728_v60 = vadd.f32 %v5742_v39, %v4727_v17 }
 0x5eb   : > { %v4799_v63 = vadd.f32 %v4767_v29, %v4733_v23 }
 0x5ec   : > { %v4798_v50 = vadd.f32 %v4766_v5, %v4728_v60 }
 0x5ed   : > { %4831 = vst [vmem:[%s7899_s10 + $0xf8] sm:$0xff] %v4799_v63 }
 0x5ee   : > { %4830 = vst [vmem:[%s7899_s10 + $0xf0] sm:$0xff] %v4798_v50 }
 0x5ef   : > { %6334 = shalt.err (!%p6331_p1)
}
 0x5f0   : > { %s6335_s12 = scalar_lea.hbm %s8019_s11, 4096  ;;  %s6339_s15 = scalar_lea.hbm %s8072_s5, 8192 }
 0x5f1   : > { %p6336_p13 = scmp.ne.s32.totalorder %s8019_s11, %s6335_s12  ;;  %p6340_p4 = scmp.lt.u32.totalorder %s8019_s11, %s8072_s5 }
 0x5f2   : > { %p6341_p5 = scmp.lt.u32.totalorder %s6339_s15, %s6335_s12  ;;  %p6343_p11 = scmp.lt.u32.totalorder %s6335_s12, %s8019_s11 }
 0x5f3   : > { %p6337_p6 = pnand %p6336_p13, %p8157_p0 }
 0x5f4   : > { %p6342_p8 = por %p6341_p5, %p6340_p4 }
 0x5f5   : > { %p6338_p10 = pneg %p6337_p6 }
 0x5f6   : > { %p6344_p2 = por %p6343_p11, %p6342_p8 }
 0x5f8   : > { %p6345_p3 = pnand %p6344_p2, %p6338_p10 }
 0x5fa   : > { %6348 = shalt.err (!%p6345_p3)
}
 0x5fb   : > { %s6401_s28 = smov 128   ;;  %s6402_s9 = smov 8  }
 0x5fc   : > { %6138 = dma.vmem_to_hbm [thread:$0]  (%p8157_p0), %s8021_s13, 4096, %s8019_s11, %s4833_s22, %s6401_s28, %s6401_s28, %s6402_s9  }
 0x5fd PF: > { %s4861_s30 = sand.u32 1, %s6379_s18   ;;  %p8158_p7 = scmp.ne.s32.totalorder %s8109_s25, 0 }
 0x5fe   : > { %p8159_p9 = scmp.ge.s32.totalorder %s6391_s21, 2  ;;  %s4862_s17 = scalar_lea.sflag [#allocation6], %s4861_s30 }
 0x600   : > { %p6152_p12 = pnand %p8159_p9, %p8158_p7 }
 0x602   : > { %6374 = dma.done.wait (!%p6152_p12), %s4862_s17, 4096  }
 0x603   : > { %6376 = vsyncadd (!%p6152_p12), %s4862_s17, 4294963200  ;;  %p19_p1 = scmp.ge.s32.totalorder %s6549_s29, 4   ;;  %s8160_s18 = smov %s6383_s19 }
 0x604   : > { %s8161_s19 = smov %s6387_s20  ;;  %s8162_s20 = smov %s6565_s27 }
 0x605   : > { %s8163_s21 = smov %s6549_s29  ;;  %21 = sbr.rel (!%p19_p1) target bundleno = 6 (0x6), region = 95 }
 0x60c   :  { %4867 = vsyncpa [#allocation5], 1 }
 0x60d   :  { %4869 = vsyncpa [#allocation5 + $0x1], 1 }
 0x60e   :  { %4870 = vsyncpa [#allocation8], 1 }
 0x60f   :  { %4871 = vsyncpa [#allocation6], 1 }
 0x610   :  { %4873 = vsyncpa [#allocation6 + $0x1], 1 }

</bundles_post_ra>
